<compile_context>
chip_gen: v7x
topology: tpu7x:2x2x1
jax: 0.10.0
libtpu: 0.0.40
codegen_flags: <defaults>
</compile_context>

<pallas_src>
import math

import jax
import jax.numpy as jnp
from jax.experimental import pallas as pl
from jax.experimental.pallas import tpu as pltpu


# ---------------------------------------------------------------------------
# In-kernel helpers (plain jnp, traced inside the Pallas kernel body)
# ---------------------------------------------------------------------------
def _layer_norm(x, gamma, beta, eps=1e-5):
    mean = jnp.mean(x, axis=-1, keepdims=True)
    var = jnp.mean((x - mean) ** 2, axis=-1, keepdims=True)
    return (x - mean) * jax.lax.rsqrt(var + eps) * gamma + beta


def _gelu(x):
    # TODO(synk): PyTorch nn.GELU() default is the exact erf form; the tanh
    # approximation (max err ~1e-3) is used to avoid relying on a Mosaic erf
    # lowering.
    c = math.sqrt(2.0 / math.pi)
    return 0.5 * x * (1.0 + jnp.tanh(c * (x + 0.044715 * x * x * x)))


# ---------------------------------------------------------------------------
# Fused kernel: grid = (batch, layer). One grid step = one EncoderBlock applied
# to one batch element; the activation stays resident in VMEM across layers.
# ---------------------------------------------------------------------------
def encoder_stack_kernel(x_ref, cos_ref, sin_ref,
                         ln1_g_ref, ln1_b_ref, wqkv_ref, wo_ref,
                         ln2_g_ref, ln2_b_ref, w1_ref, b1_ref, w2_ref, b2_ref,
                         o_ref, x_vmem):
    layer = pl.program_id(1)

    # Load activations into the persistent VMEM scratch once per batch element.
    @pl.when(layer == 0)
    def _():
        x_vmem[...] = x_ref[0]

    x = x_vmem[...]                                   # (T, D) float32
    T, D = x.shape
    H = wqkv_ref.shape[1]
    dh = wqkv_ref.shape[3] // 3
    half = dh // 2

    # ---------------- self-attention sub-block ----------------
    xn = _layer_norm(x, ln1_g_ref[0], ln1_b_ref[0])
    xn_b = jnp.broadcast_to(xn.astype(jnp.bfloat16)[None], (H, T, D))
    # Fused head-major QKV projection: one batched MXU op, heads batch-leading.
    qkv = jnp.einsum("htd,hde->hte", xn_b, wqkv_ref[0],
                     preferred_element_type=jnp.float32)        # (H, T, 3*dh)
    q = qkv[:, :, :dh]          # 1/sqrt(dh) already folded into the Q weights
    k = qkv[:, :, dh:2 * dh]
    v = qkv[:, :, 2 * dh:]

    # RoPE (half-split convention), vectorized across all heads at once.
    cos = cos_ref[...]                                # (T, dh) = [ cos | cos ]
    sin = sin_ref[...]                                # (T, dh) = [ -sin | sin ]

    def rope(t):                                      # t: (H, T, dh)
        swapped = jnp.concatenate([t[..., half:], t[..., :half]], axis=-1)
        return t * cos + swapped * sin

    q = rope(q)
    k = rope(k)

    s = jnp.einsum("hqd,hkd->hqk",
                   q.astype(jnp.bfloat16), k.astype(jnp.bfloat16),
                   preferred_element_type=jnp.float32)          # (H, T, T)
    s = s - jnp.max(s, axis=-1, keepdims=True)
    p = jnp.exp(s)
    p = p * pl.reciprocal(jnp.sum(p, axis=-1, keepdims=True), approx=True)
    ctx = jnp.einsum("hqk,hkd->hqd",
                     p.astype(jnp.bfloat16), v.astype(jnp.bfloat16),
                     preferred_element_type=jnp.float32)        # (H, T, dh)
    # Output projection with head-major weights; sum over heads replaces the
    # concatenate + (T, inner) @ (inner, D) matmul.
    attn = jnp.einsum("hqd,hde->hqe",
                      ctx.astype(jnp.bfloat16), wo_ref[0],
                      preferred_element_type=jnp.float32)       # (H, T, D)
    x = x + jnp.sum(attn, axis=0)                     # residual 1

    # ---------------- MLP sub-block ----------------
    xn2 = _layer_norm(x, ln2_g_ref[0], ln2_b_ref[0])
    h1 = jnp.dot(xn2.astype(jnp.bfloat16), w1_ref[0],
                 preferred_element_type=jnp.float32) + b1_ref[0]
    h1 = _gelu(h1)
    h2 = jnp.dot(h1.astype(jnp.bfloat16), w2_ref[0],
                 preferred_element_type=jnp.float32) + b2_ref[0]
    x = x + h2                                        # residual 2

    x_vmem[...] = x

    # Write the result to HBM only after the last layer.
    @pl.when(layer == pl.num_programs(1) - 1)
    def _():
        o_ref[0] = x


# ---------------------------------------------------------------------------
# Wrapper: one pallas_call for the whole stack
# ---------------------------------------------------------------------------
def audio_encoders(x, params, cos_t, sin_t):
    B, T, D = x.shape
    L, H, _, three_dh = params["wqkv"].shape
    dh = three_dh // 3
    hidden = params["w1"].shape[-1]

    layer_idx = lambda b, l: (l, 0, 0)
    in_specs = [
        pl.BlockSpec((1, T, D), lambda b, l: (b, 0, 0)),               # x
        pl.BlockSpec((T, dh), lambda b, l: (0, 0)),                    # cos
        pl.BlockSpec((T, dh), lambda b, l: (0, 0)),                    # sin
        pl.BlockSpec((1, 1, D), layer_idx),                            # ln1_g
        pl.BlockSpec((1, 1, D), layer_idx),                            # ln1_b
        pl.BlockSpec((1, H, D, three_dh), lambda b, l: (l, 0, 0, 0)),  # wqkv
        pl.BlockSpec((1, H, dh, D), lambda b, l: (l, 0, 0, 0)),        # wo
        pl.BlockSpec((1, 1, D), layer_idx),                            # ln2_g
        pl.BlockSpec((1, 1, D), layer_idx),                            # ln2_b
        pl.BlockSpec((1, D, hidden), layer_idx),                       # w1
        pl.BlockSpec((1, 1, hidden), layer_idx),                       # b1
        pl.BlockSpec((1, hidden, D), layer_idx),                       # w2
        pl.BlockSpec((1, 1, D), layer_idx),                            # b2
    ]
    return pl.pallas_call(
        encoder_stack_kernel,
        out_shape=jax.ShapeDtypeStruct((B, T, D), jnp.float32),
        grid=(B, L),
        in_specs=in_specs,
        out_specs=pl.BlockSpec((1, T, D), lambda b, l: (b, 0, 0)),
        scratch_shapes=[pltpu.VMEM((T, D), jnp.float32)],
        compiler_params=pltpu.CompilerParams(
            dimension_semantics=("parallel", "arbitrary")),
    )(x, cos_t, sin_t,
      params["ln1_g"], params["ln1_b"], params["wqkv"], params["wo"],
      params["ln2_g"], params["ln2_b"],
      params["w1"], params["b1"], params["w2"], params["b2"])


# ---------------------------------------------------------------------------
# Deterministic parameter construction (synthetic weights, no checkpoint load)
# ---------------------------------------------------------------------------
def make_stacked_params(key, n_layer, dim, inner, n_head, dim_mult):
    dh = inner // n_head
    hidden = dim * dim_mult
    std = 0.02
    ks = jax.random.split(key, 8)
    wq = jax.random.normal(ks[0], (n_layer, dim, inner), jnp.float32) * std
    wk = jax.random.normal(ks[1], (n_layer, dim, inner), jnp.float32) * std
    wv = jax.random.normal(ks[2], (n_layer, dim, inner), jnp.float32) * std
    wo = jax.random.normal(ks[3], (n_layer, inner, dim), jnp.float32) * std
    w1 = jax.random.normal(ks[4], (n_layer, dim, hidden), jnp.float32) * std
    b1 = jax.random.normal(ks[5], (n_layer, 1, hidden), jnp.float32) * std
    w2 = jax.random.normal(ks[6], (n_layer, hidden, dim), jnp.float32) * std
    b2 = jax.random.normal(ks[7], (n_layer, 1, dim), jnp.float32) * std

    # Fold the attention scale into the Q projection (RoPE is a rotation, so
    # scaling before or after the rotation is equivalent).
    wq = wq / math.sqrt(dh)

    # Head-major fused QKV weight: (L, H, D, 3*dh) with per-head [ q | k | v ].
    def to_head_major(w):                       # (L, D, inner) -> (L, H, D, dh)
        return w.reshape(n_layer, dim, n_head, dh).transpose(0, 2, 1, 3)

    wqkv = jnp.concatenate(
        [to_head_major(wq), to_head_major(wk), to_head_major(wv)], axis=-1)
    wo_h = wo.reshape(n_layer, n_head, dh, dim)          # (L, H, dh, D)

    return {
        "ln1_g": jnp.ones((n_layer, 1, dim), jnp.float32),
        "ln1_b": jnp.zeros((n_layer, 1, dim), jnp.float32),
        "ln2_g": jnp.ones((n_layer, 1, dim), jnp.float32),
        "ln2_b": jnp.zeros((n_layer, 1, dim), jnp.float32),
        "wqkv": wqkv.astype(jnp.bfloat16),
        "wo": wo_h.astype(jnp.bfloat16),
        "w1": w1.astype(jnp.bfloat16),
        "b1": b1,
        "w2": w2.astype(jnp.bfloat16),
        "b2": b2,
    }


def make_rope_tables(seq_len, head_dim):
    half = head_dim // 2
    pos = jnp.arange(seq_len, dtype=jnp.float32)[:, None]               # (T, 1)
    inv_freq = 1.0 / (10000.0 ** (jnp.arange(half, dtype=jnp.float32) / half))
    ang = pos * inv_freq[None, :]                                       # (T, half)
    cos, sin = jnp.cos(ang), jnp.sin(ang)
    # Full-width tables arranged for the "swap halves" formulation:
    #   rope(t) = t * [cos|cos] + swap_halves(t) * [-sin|sin]
    cos_t = jnp.concatenate([cos, cos], axis=-1)                        # (T, dh)
    sin_t = jnp.concatenate([-sin, sin], axis=-1)                       # (T, dh)
    return cos_t, sin_t


if __name__ == "__main__":
    # Small, lane-aligned demo config (dim == innerDim, dim % nHead == 0).
    B, T = 2, 16
    DIM, INNER, N_HEAD, DIM_MULT, N_ENCODER = 256, 256, 2, 4, 2
    HEAD_DIM = INNER // N_HEAD                       # 128 -> lane-aligned heads

    root = jax.random.PRNGKey(0)
    x_key, p_key = jax.random.split(root)
    x = jax.random.normal(x_key, (B, T, DIM), jnp.float32)

    params = make_stacked_params(p_key, N_ENCODER, DIM, INNER, N_HEAD, DIM_MULT)
    cos_t, sin_t = make_rope_tables(T, HEAD_DIM)

    out = audio_encoders(x, params, cos_t, sin_t)
    out = jax.block_until_ready(out)

    assert out.shape == (B, T, DIM)
    assert bool(jnp.all(jnp.isfinite(out)))
    print("KERNEL_OK")
</pallas_src>

<mosaic_0001>
module attributes {stable_mosaic.version = 11 : i64} {
  func.func @encoder_stack_kernel(%arg0: i32, %arg1: i32, %arg2: memref<1x16x256xf32, #tpu.memory_space<vmem>>, %arg3: memref<16x128xf32, #tpu.memory_space<vmem>>, %arg4: memref<16x128xf32, #tpu.memory_space<vmem>>, %arg5: memref<1x1x256xf32, #tpu.memory_space<vmem>>, %arg6: memref<1x1x256xf32, #tpu.memory_space<vmem>>, %arg7: memref<1x2x256x384xbf16, #tpu.memory_space<vmem>>, %arg8: memref<1x2x128x256xbf16, #tpu.memory_space<vmem>>, %arg9: memref<1x1x256xf32, #tpu.memory_space<vmem>>, %arg10: memref<1x1x256xf32, #tpu.memory_space<vmem>>, %arg11: memref<1x256x1024xbf16, #tpu.memory_space<vmem>>, %arg12: memref<1x1x1024xf32, #tpu.memory_space<vmem>>, %arg13: memref<1x1024x256xbf16, #tpu.memory_space<vmem>>, %arg14: memref<1x1x256xf32, #tpu.memory_space<vmem>>, %arg15: memref<1x16x256xf32, #tpu.memory_space<vmem>>, %arg16: memref<16x256xf32, #tpu.memory_space<vmem>>) attributes {dimension_semantics = [#tpu.dimension_semantics<parallel>, #tpu.dimension_semantics<arbitrary>], iteration_bounds = array<i64: 2, 2>, scalar_prefetch = 0 : i64, scratch_operands = 1 : i64, tpu.core_type = #tpu.core_type<tc>, window_params = [{transform_indices = @transform_0, window_bounds = array<i64: 1, 16, 256>}, {pipeline_mode = #tpu.pipeline_mode<synchronous>, transform_indices = @transform_1, window_bounds = array<i64: 16, 128>}, {pipeline_mode = #tpu.pipeline_mode<synchronous>, transform_indices = @transform_2, window_bounds = array<i64: 16, 128>}, {transform_indices = @transform_3, window_bounds = array<i64: 1, 1, 256>}, {transform_indices = @transform_4, window_bounds = array<i64: 1, 1, 256>}, {transform_indices = @transform_5, window_bounds = array<i64: 1, 2, 256, 384>}, {transform_indices = @transform_6, window_bounds = array<i64: 1, 2, 128, 256>}, {transform_indices = @transform_7, window_bounds = array<i64: 1, 1, 256>}, {transform_indices = @transform_8, window_bounds = array<i64: 1, 1, 256>}, {transform_indices = @transform_9, window_bounds = array<i64: 1, 256, 1024>}, {transform_indices = @transform_10, window_bounds = array<i64: 1, 1, 1024>}, {transform_indices = @transform_11, window_bounds = array<i64: 1, 1024, 256>}, {transform_indices = @transform_12, window_bounds = array<i64: 1, 1, 256>}, {transform_indices = @transform_13, window_bounds = array<i64: 1, 16, 256>}]} {
    %c0_i32 = arith.constant 0 : i32
    %0 = arith.cmpi eq, %arg1, %c0_i32 : i32
    %1 = arith.extui %0 : i1 to i32
    %c0_i32_0 = arith.constant 0 : i32
    %2 = arith.cmpi ne, %1, %c0_i32_0 : i32
    scf.if %2 {
      %c0_63 = arith.constant 0 : index
      %c0_64 = arith.constant 0 : index
      %c0_65 = arith.constant 0 : index
      %144 = vector.load %arg2[%c0_63, %c0_64, %c0_65] : memref<1x16x256xf32, #tpu.memory_space<vmem>>, vector<1x16x256xf32>
      %145 = vector.shape_cast %144 : vector<1x16x256xf32> to vector<16x256xf32>
      %c0_66 = arith.constant 0 : index
      %c0_67 = arith.constant 0 : index
      %146 = vector.load %arg16[%c0_66, %c0_67] : memref<16x256xf32, #tpu.memory_space<vmem>>, vector<16x256xf32>
      tpu.vector_store %arg16[%c0_66, %c0_67], %145 {strides = array<i32>} : memref<16x256xf32, #tpu.memory_space<vmem>>, vector<16x256xf32>,
    } else {
    }
    %c0 = arith.constant 0 : index
    %c0_1 = arith.constant 0 : index
    %3 = vector.load %arg16[%c0, %c0_1] : memref<16x256xf32, #tpu.memory_space<vmem>>, vector<16x256xf32>
    %c0_2 = arith.constant 0 : index
    %c0_3 = arith.constant 0 : index
    %c0_4 = arith.constant 0 : index
    %4 = vector.load %arg5[%c0_2, %c0_3, %c0_4] : memref<1x1x256xf32, #tpu.memory_space<vmem>>, vector<1x1x256xf32>
    %5 = vector.shape_cast %4 : vector<1x1x256xf32> to vector<1x256xf32>
    %c0_5 = arith.constant 0 : index
    %c0_6 = arith.constant 0 : index
    %c0_7 = arith.constant 0 : index
    %6 = vector.load %arg6[%c0_5, %c0_6, %c0_7] : memref<1x1x256xf32, #tpu.memory_space<vmem>>, vector<1x1x256xf32>
    %7 = vector.shape_cast %6 : vector<1x1x256xf32> to vector<1x256xf32>
    %cst = arith.constant dense<0.000000e+00> : vector<16xf32>
    %8 = vector.multi_reduction <add>, %3, %cst [1] : vector<16x256xf32> to vector<16xf32>
    %9 = vector.shape_cast %8 : vector<16xf32> to vector<16x1xf32>
    %cst_8 = arith.constant 2.560000e+02 : f32
    %10 = vector.broadcast %cst_8 : f32 to vector<16x1xf32>
    %11 = arith.divf %9, %10 : vector<16x1xf32>
    %12 = vector.broadcast %11 : vector<16x1xf32> to vector<16x256xf32>
    %13 = arith.subf %3, %12 : vector<16x256xf32>
    %14 = arith.mulf %13, %13 : vector<16x256xf32>
    %cst_9 = arith.constant dense<0.000000e+00> : vector<16xf32>
    %15 = vector.multi_reduction <add>, %14, %cst_9 [1] : vector<16x256xf32> to vector<16xf32>
    %16 = vector.shape_cast %15 : vector<16xf32> to vector<16x1xf32>
    %cst_10 = arith.constant 2.560000e+02 : f32
    %17 = vector.broadcast %cst_10 : f32 to vector<16x1xf32>
    %18 = arith.divf %16, %17 : vector<16x1xf32>
    %19 = vector.broadcast %11 : vector<16x1xf32> to vector<16x256xf32>
    %20 = arith.subf %3, %19 : vector<16x256xf32>
    %cst_11 = arith.constant 9.99999974E-6 : f32
    %21 = vector.broadcast %cst_11 : f32 to vector<16x1xf32>
    %22 = arith.addf %18, %21 : vector<16x1xf32>
    %23 = math.rsqrt %22 : vector<16x1xf32>
    %24 = vector.broadcast %23 : vector<16x1xf32> to vector<16x256xf32>
    %25 = arith.mulf %20, %24 : vector<16x256xf32>
    %26 = vector.broadcast %5 : vector<1x256xf32> to vector<16x256xf32>
    %27 = arith.mulf %25, %26 : vector<16x256xf32>
    %28 = vector.broadcast %7 : vector<1x256xf32> to vector<16x256xf32>
    %29 = arith.addf %27, %28 : vector<16x256xf32>
    %30 = arith.truncf %29 : vector<16x256xf32> to vector<16x256xbf16>
    %31 = vector.shape_cast %30 : vector<16x256xbf16> to vector<1x16x256xbf16>
    %32 = vector.shape_cast %31 : vector<1x16x256xbf16> to vector<1x16x256xbf16>
    %33 = vector.broadcast %32 : vector<1x16x256xbf16> to vector<2x16x256xbf16>
    %c0_12 = arith.constant 0 : index
    %c0_13 = arith.constant 0 : index
    %c0_14 = arith.constant 0 : index
    %c0_15 = arith.constant 0 : index
    %34 = vector.load %arg7[%c0_12, %c0_13, %c0_14, %c0_15] : memref<1x2x256x384xbf16, #tpu.memory_space<vmem>>, vector<1x2x256x384xbf16>
    %35 = vector.shape_cast %34 : vector<1x2x256x384xbf16> to vector<2x256x384xbf16>
    "tpu.trace_start"() <{level = 10 : i32, message = "htd,hde->hte"}> : () -> ()
    %cst_16 = arith.constant dense<0.000000e+00> : vector<2x16x384xf32>
    %36 = tpu.matmul %33, %35, %cst_16 {dimension_numbers = #tpu.dot_dimension_numbers<[2], [1], [1], [2], [0, 0, 0, 1, 1, 2], [0], [0]>} : vector<2x16x256xbf16>, vector<2x256x384xbf16>, vector<2x16x384xf32> -> vector<2x16x384xf32>
    "tpu.trace_stop"() : () -> ()
    %37 = vector.extract_strided_slice %36 {offsets = [0, 0, 0], sizes = [2, 16, 128], strides = [1, 1, 1]} : vector<2x16x384xf32> to vector<2x16x128xf32>
    %38 = vector.extract_strided_slice %36 {offsets = [0, 0, 128], sizes = [2, 16, 128], strides = [1, 1, 1]} : vector<2x16x384xf32> to vector<2x16x128xf32>
    %39 = vector.extract_strided_slice %36 {offsets = [0, 0, 256], sizes = [2, 16, 128], strides = [1, 1, 1]} : vector<2x16x384xf32> to vector<2x16x128xf32>
    %c0_17 = arith.constant 0 : index
    %c0_18 = arith.constant 0 : index
    %40 = vector.load %arg3[%c0_17, %c0_18] : memref<16x128xf32, #tpu.memory_space<vmem>>, vector<16x128xf32>
    %c0_19 = arith.constant 0 : index
    %c0_20 = arith.constant 0 : index
    %41 = vector.load %arg4[%c0_19, %c0_20] : memref<16x128xf32, #tpu.memory_space<vmem>>, vector<16x128xf32>
    %42 = vector.extract_strided_slice %37 {offsets = [0, 0, 64], sizes = [2, 16, 64], strides = [1, 1, 1]} : vector<2x16x128xf32> to vector<2x16x64xf32>
    %43 = vector.extract_strided_slice %37 {offsets = [0, 0, 0], sizes = [2, 16, 64], strides = [1, 1, 1]} : vector<2x16x128xf32> to vector<2x16x64xf32>
    %44 = tpu.concatenate %42, %43 in 2 : vector<2x16x64xf32>, vector<2x16x64xf32> -> vector<2x16x128xf32>
    %45 = vector.shape_cast %40 : vector<16x128xf32> to vector<1x16x128xf32>
    %46 = vector.broadcast %45 : vector<1x16x128xf32> to vector<2x16x128xf32>
    %47 = arith.mulf %37, %46 : vector<2x16x128xf32>
    %48 = vector.shape_cast %41 : vector<16x128xf32> to vector<1x16x128xf32>
    %49 = vector.broadcast %48 : vector<1x16x128xf32> to vector<2x16x128xf32>
    %50 = arith.mulf %44, %49 : vector<2x16x128xf32>
    %51 = arith.addf %47, %50 : vector<2x16x128xf32>
    %52 = vector.extract_strided_slice %38 {offsets = [0, 0, 64], sizes = [2, 16, 64], strides = [1, 1, 1]} : vector<2x16x128xf32> to vector<2x16x64xf32>
    %53 = vector.extract_strided_slice %38 {offsets = [0, 0, 0], sizes = [2, 16, 64], strides = [1, 1, 1]} : vector<2x16x128xf32> to vector<2x16x64xf32>
    %54 = tpu.concatenate %52, %53 in 2 : vector<2x16x64xf32>, vector<2x16x64xf32> -> vector<2x16x128xf32>
    %55 = vector.shape_cast %40 : vector<16x128xf32> to vector<1x16x128xf32>
    %56 = vector.broadcast %55 : vector<1x16x128xf32> to vector<2x16x128xf32>
    %57 = arith.mulf %38, %56 : vector<2x16x128xf32>
    %58 = vector.shape_cast %41 : vector<16x128xf32> to vector<1x16x128xf32>
    %59 = vector.broadcast %58 : vector<1x16x128xf32> to vector<2x16x128xf32>
    %60 = arith.mulf %54, %59 : vector<2x16x128xf32>
    %61 = arith.addf %57, %60 : vector<2x16x128xf32>
    %62 = arith.truncf %51 : vector<2x16x128xf32> to vector<2x16x128xbf16>
    %63 = arith.truncf %61 : vector<2x16x128xf32> to vector<2x16x128xbf16>
    "tpu.trace_start"() <{level = 10 : i32, message = "hqd,hkd->hqk"}> : () -> ()
    %cst_21 = arith.constant dense<0.000000e+00> : vector<2x16x16xf32>
    %64 = tpu.matmul %62, %63, %cst_21 {dimension_numbers = #tpu.dot_dimension_numbers<[2], [2], [1], [1], [0, 0, 0, 1, 1, 1], [0], [0]>} : vector<2x16x128xbf16>, vector<2x16x128xbf16>, vector<2x16x16xf32> -> vector<2x16x16xf32>
    "tpu.trace_stop"() : () -> ()
    %cst_22 = arith.constant dense<0xFF800000> : vector<2x16xf32>
    %65 = vector.multi_reduction <maximumf>, %64, %cst_22 [2] : vector<2x16x16xf32> to vector<2x16xf32>
    %66 = vector.shape_cast %65 : vector<2x16xf32> to vector<2x16x1xf32>
    %67 = vector.broadcast %66 : vector<2x16x1xf32> to vector<2x16x16xf32>
    %68 = arith.subf %64, %67 : vector<2x16x16xf32>
    %69 = math.exp %68 : vector<2x16x16xf32>
    %cst_23 = arith.constant dense<0.000000e+00> : vector<2x16xf32>
    %70 = vector.multi_reduction <add>, %69, %cst_23 [2] : vector<2x16x16xf32> to vector<2x16xf32>
    %71 = vector.shape_cast %70 : vector<2x16xf32> to vector<2x16x1xf32>
    %72 = tpu.reciprocal %71 {approx = true} : vector<2x16x1xf32> -> vector<2x16x1xf32>
    %73 = vector.broadcast %72 : vector<2x16x1xf32> to vector<2x16x16xf32>
    %74 = arith.mulf %69, %73 : vector<2x16x16xf32>
    %75 = arith.truncf %74 : vector<2x16x16xf32> to vector<2x16x16xbf16>
    %76 = arith.truncf %39 : vector<2x16x128xf32> to vector<2x16x128xbf16>
    "tpu.trace_start"() <{level = 10 : i32, message = "hqk,hkd->hqd"}> : () -> ()
    %cst_24 = arith.constant dense<0.000000e+00> : vector<2x16x128xf32>
    %77 = tpu.matmul %75, %76, %cst_24 {dimension_numbers = #tpu.dot_dimension_numbers<[2], [1], [1], [2], [0, 0, 0, 1, 1, 2], [0], [0]>} : vector<2x16x16xbf16>, vector<2x16x128xbf16>, vector<2x16x128xf32> -> vector<2x16x128xf32>
    "tpu.trace_stop"() : () -> ()
    %78 = arith.truncf %77 : vector<2x16x128xf32> to vector<2x16x128xbf16>
    %c0_25 = arith.constant 0 : index
    %c0_26 = arith.constant 0 : index
    %c0_27 = arith.constant 0 : index
    %c0_28 = arith.constant 0 : index
    %79 = vector.load %arg8[%c0_25, %c0_26, %c0_27, %c0_28] : memref<1x2x128x256xbf16, #tpu.memory_space<vmem>>, vector<1x2x128x256xbf16>
    %80 = vector.shape_cast %79 : vector<1x2x128x256xbf16> to vector<2x128x256xbf16>
    "tpu.trace_start"() <{level = 10 : i32, message = "hqd,hde->hqe"}> : () -> ()
    %cst_29 = arith.constant dense<0.000000e+00> : vector<2x16x256xf32>
    %81 = tpu.matmul %78, %80, %cst_29 {dimension_numbers = #tpu.dot_dimension_numbers<[2], [1], [1], [2], [0, 0, 0, 1, 1, 2], [0], [0]>} : vector<2x16x128xbf16>, vector<2x128x256xbf16>, vector<2x16x256xf32> -> vector<2x16x256xf32>
    "tpu.trace_stop"() : () -> ()
    %cst_30 = arith.constant dense<0.000000e+00> : vector<16x256xf32>
    %82 = vector.multi_reduction <add>, %81, %cst_30 [0] : vector<2x16x256xf32> to vector<16x256xf32>
    %83 = arith.addf %3, %82 : vector<16x256xf32>
    %c0_31 = arith.constant 0 : index
    %c0_32 = arith.constant 0 : index
    %c0_33 = arith.constant 0 : index
    %84 = vector.load %arg9[%c0_31, %c0_32, %c0_33] : memref<1x1x256xf32, #tpu.memory_space<vmem>>, vector<1x1x256xf32>
    %85 = vector.shape_cast %84 : vector<1x1x256xf32> to vector<1x256xf32>
    %c0_34 = arith.constant 0 : index
    %c0_35 = arith.constant 0 : index
    %c0_36 = arith.constant 0 : index
    %86 = vector.load %arg10[%c0_34, %c0_35, %c0_36] : memref<1x1x256xf32, #tpu.memory_space<vmem>>, vector<1x1x256xf32>
    %87 = vector.shape_cast %86 : vector<1x1x256xf32> to vector<1x256xf32>
    %cst_37 = arith.constant dense<0.000000e+00> : vector<16xf32>
    %88 = vector.multi_reduction <add>, %83, %cst_37 [1] : vector<16x256xf32> to vector<16xf32>
    %89 = vector.shape_cast %88 : vector<16xf32> to vector<16x1xf32>
    %cst_38 = arith.constant 2.560000e+02 : f32
    %90 = vector.broadcast %cst_38 : f32 to vector<16x1xf32>
    %91 = arith.divf %89, %90 : vector<16x1xf32>
    %92 = vector.broadcast %91 : vector<16x1xf32> to vector<16x256xf32>
    %93 = arith.subf %83, %92 : vector<16x256xf32>
    %94 = arith.mulf %93, %93 : vector<16x256xf32>
    %cst_39 = arith.constant dense<0.000000e+00> : vector<16xf32>
    %95 = vector.multi_reduction <add>, %94, %cst_39 [1] : vector<16x256xf32> to vector<16xf32>
    %96 = vector.shape_cast %95 : vector<16xf32> to vector<16x1xf32>
    %cst_40 = arith.constant 2.560000e+02 : f32
    %97 = vector.broadcast %cst_40 : f32 to vector<16x1xf32>
    %98 = arith.divf %96, %97 : vector<16x1xf32>
    %99 = vector.broadcast %91 : vector<16x1xf32> to vector<16x256xf32>
    %100 = arith.subf %83, %99 : vector<16x256xf32>
    %cst_41 = arith.constant 9.99999974E-6 : f32
    %101 = vector.broadcast %cst_41 : f32 to vector<16x1xf32>
    %102 = arith.addf %98, %101 : vector<16x1xf32>
    %103 = math.rsqrt %102 : vector<16x1xf32>
    %104 = vector.broadcast %103 : vector<16x1xf32> to vector<16x256xf32>
    %105 = arith.mulf %100, %104 : vector<16x256xf32>
    %106 = vector.broadcast %85 : vector<1x256xf32> to vector<16x256xf32>
    %107 = arith.mulf %105, %106 : vector<16x256xf32>
    %108 = vector.broadcast %87 : vector<1x256xf32> to vector<16x256xf32>
    %109 = arith.addf %107, %108 : vector<16x256xf32>
    %110 = arith.truncf %109 : vector<16x256xf32> to vector<16x256xbf16>
    %c0_42 = arith.constant 0 : index
    %c0_43 = arith.constant 0 : index
    %c0_44 = arith.constant 0 : index
    %111 = vector.load %arg11[%c0_42, %c0_43, %c0_44] : memref<1x256x1024xbf16, #tpu.memory_space<vmem>>, vector<1x256x1024xbf16>
    %112 = vector.shape_cast %111 : vector<1x256x1024xbf16> to vector<256x1024xbf16>
    %cst_45 = arith.constant dense<0.000000e+00> : vector<16x1024xf32>
    %113 = tpu.matmul %110, %112, %cst_45 {dimension_numbers = #tpu.dot_dimension_numbers<[1], [0], [0], [1], [0, 0, 1, 1], [], []>} : vector<16x256xbf16>, vector<256x1024xbf16>, vector<16x1024xf32> -> vector<16x1024xf32>
    %c0_46 = arith.constant 0 : index
    %c0_47 = arith.constant 0 : index
    %c0_48 = arith.constant 0 : index
    %114 = vector.load %arg12[%c0_46, %c0_47, %c0_48] : memref<1x1x1024xf32, #tpu.memory_space<vmem>>, vector<1x1x1024xf32>
    %115 = vector.shape_cast %114 : vector<1x1x1024xf32> to vector<1x1024xf32>
    %116 = vector.broadcast %115 : vector<1x1024xf32> to vector<16x1024xf32>
    %117 = arith.addf %113, %116 : vector<16x1024xf32>
    %cst_49 = arith.constant 5.000000e-01 : f32
    %118 = vector.broadcast %cst_49 : f32 to vector<16x1024xf32>
    %119 = arith.mulf %118, %117 : vector<16x1024xf32>
    %cst_50 = arith.constant 4.471500e-02 : f32
    %120 = vector.broadcast %cst_50 : f32 to vector<16x1024xf32>
    %121 = arith.mulf %120, %117 : vector<16x1024xf32>
    %122 = arith.mulf %121, %117 : vector<16x1024xf32>
    %123 = arith.mulf %122, %117 : vector<16x1024xf32>
    %124 = arith.addf %117, %123 : vector<16x1024xf32>
    %cst_51 = arith.constant 0.797884583 : f32
    %125 = vector.broadcast %cst_51 : f32 to vector<16x1024xf32>
    %126 = arith.mulf %125, %124 : vector<16x1024xf32>
    %127 = math.tanh %126 : vector<16x1024xf32>
    %cst_52 = arith.constant 1.000000e+00 : f32
    %128 = vector.broadcast %cst_52 : f32 to vector<16x1024xf32>
    %129 = arith.addf %128, %127 : vector<16x1024xf32>
    %130 = arith.mulf %119, %129 : vector<16x1024xf32>
    %131 = arith.truncf %130 : vector<16x1024xf32> to vector<16x1024xbf16>
    %c0_53 = arith.constant 0 : index
    %c0_54 = arith.constant 0 : index
    %c0_55 = arith.constant 0 : index
    %132 = vector.load %arg13[%c0_53, %c0_54, %c0_55] : memref<1x1024x256xbf16, #tpu.memory_space<vmem>>, vector<1x1024x256xbf16>
    %133 = vector.shape_cast %132 : vector<1x1024x256xbf16> to vector<1024x256xbf16>
    %cst_56 = arith.constant dense<0.000000e+00> : vector<16x256xf32>
    %134 = tpu.matmul %131, %133, %cst_56 {dimension_numbers = #tpu.dot_dimension_numbers<[1], [0], [0], [1], [0, 0, 1, 1], [], []>} : vector<16x1024xbf16>, vector<1024x256xbf16>, vector<16x256xf32> -> vector<16x256xf32>
    %c0_57 = arith.constant 0 : index
    %c0_58 = arith.constant 0 : index
    %c0_59 = arith.constant 0 : index
    %135 = vector.load %arg14[%c0_57, %c0_58, %c0_59] : memref<1x1x256xf32, #tpu.memory_space<vmem>>, vector<1x1x256xf32>
    %136 = vector.shape_cast %135 : vector<1x1x256xf32> to vector<1x256xf32>
    %137 = vector.broadcast %136 : vector<1x256xf32> to vector<16x256xf32>
    %138 = arith.addf %134, %137 : vector<16x256xf32>
    %139 = arith.addf %83, %138 : vector<16x256xf32>
    %c0_60 = arith.constant 0 : index
    %c0_61 = arith.constant 0 : index
    %140 = vector.load %arg16[%c0_60, %c0_61] : memref<16x256xf32, #tpu.memory_space<vmem>>, vector<16x256xf32>
    tpu.vector_store %arg16[%c0_60, %c0_61], %139 {strides = array<i32>} : memref<16x256xf32, #tpu.memory_space<vmem>>, vector<16x256xf32>,
    %c1_i32 = arith.constant 1 : i32
    %141 = arith.cmpi eq, %arg1, %c1_i32 : i32
    %142 = arith.extui %141 : i1 to i32
    %c0_i32_62 = arith.constant 0 : i32
    %143 = arith.cmpi ne, %142, %c0_i32_62 : i32
    scf.if %143 {
      %c0_63 = arith.constant 0 : index
      %c0_64 = arith.constant 0 : index
      %c0_65 = arith.constant 0 : index
      %144 = vector.load %arg15[%c0_63, %c0_64, %c0_65] : memref<1x16x256xf32, #tpu.memory_space<vmem>>, vector<1x16x256xf32>
      %145 = vector.shape_cast %144 : vector<1x16x256xf32> to vector<16x256xf32>
      %146 = vector.shape_cast %139 : vector<16x256xf32> to vector<1x16x256xf32>
      tpu.vector_store %arg15[%c0_63, %c0_64, %c0_65], %146 {strides = array<i32>} : memref<1x16x256xf32, #tpu.memory_space<vmem>>, vector<1x16x256xf32>,
    } else {
    }
    return
  }
  func.func @transform_0(%arg0: i32, %arg1: i32) -> (i32, i32, i32) {
    %c0_i32 = arith.constant 0 : i32
    %c0_i32_0 = arith.constant 0 : i32
    %c0_i32_1 = arith.constant 0 : i32
    return %arg0, %c0_i32, %c0_i32_0 : i32, i32, i32
  }
  func.func @transform_1(%arg0: i32, %arg1: i32) -> (i32, i32) {
    %c0_i32 = arith.constant 0 : i32
    %c0_i32_0 = arith.constant 0 : i32
    %c0_i32_1 = arith.constant 0 : i32
    return %c0_i32, %c0_i32_0 : i32, i32
  }
  func.func @transform_2(%arg0: i32, %arg1: i32) -> (i32, i32) {
    %c0_i32 = arith.constant 0 : i32
    %c0_i32_0 = arith.constant 0 : i32
    %c0_i32_1 = arith.constant 0 : i32
    return %c0_i32, %c0_i32_0 : i32, i32
  }
  func.func @transform_3(%arg0: i32, %arg1: i32) -> (i32, i32, i32) {
    %c0_i32 = arith.constant 0 : i32
    %c0_i32_0 = arith.constant 0 : i32
    %c0_i32_1 = arith.constant 0 : i32
    return %arg1, %c0_i32, %c0_i32_0 : i32, i32, i32
  }
  func.func @transform_4(%arg0: i32, %arg1: i32) -> (i32, i32, i32) {
    %c0_i32 = arith.constant 0 : i32
    %c0_i32_0 = arith.constant 0 : i32
    %c0_i32_1 = arith.constant 0 : i32
    return %arg1, %c0_i32, %c0_i32_0 : i32, i32, i32
  }
  func.func @transform_5(%arg0: i32, %arg1: i32) -> (i32, i32, i32, i32) {
    %c0_i32 = arith.constant 0 : i32
    %c0_i32_0 = arith.constant 0 : i32
    %c0_i32_1 = arith.constant 0 : i32
    %c0_i32_2 = arith.constant 0 : i32
    return %arg1, %c0_i32, %c0_i32_0, %c0_i32_1 : i32, i32, i32, i32
  }
  func.func @transform_6(%arg0: i32, %arg1: i32) -> (i32, i32, i32, i32) {
    %c0_i32 = arith.constant 0 : i32
    %c0_i32_0 = arith.constant 0 : i32
    %c0_i32_1 = arith.constant 0 : i32
    %c0_i32_2 = arith.constant 0 : i32
    return %arg1, %c0_i32, %c0_i32_0, %c0_i32_1 : i32, i32, i32, i32
  }
  func.func @transform_7(%arg0: i32, %arg1: i32) -> (i32, i32, i32) {
    %c0_i32 = arith.constant 0 : i32
    %c0_i32_0 = arith.constant 0 : i32
    %c0_i32_1 = arith.constant 0 : i32
    return %arg1, %c0_i32, %c0_i32_0 : i32, i32, i32
  }
  func.func @transform_8(%arg0: i32, %arg1: i32) -> (i32, i32, i32) {
    %c0_i32 = arith.constant 0 : i32
    %c0_i32_0 = arith.constant 0 : i32
    %c0_i32_1 = arith.constant 0 : i32
    return %arg1, %c0_i32, %c0_i32_0 : i32, i32, i32
  }
  func.func @transform_9(%arg0: i32, %arg1: i32) -> (i32, i32, i32) {
    %c0_i32 = arith.constant 0 : i32
    %c0_i32_0 = arith.constant 0 : i32
    %c0_i32_1 = arith.constant 0 : i32
    return %arg1, %c0_i32, %c0_i32_0 : i32, i32, i32
  }
  func.func @transform_10(%arg0: i32, %arg1: i32) -> (i32, i32, i32) {
    %c0_i32 = arith.constant 0 : i32
    %c0_i32_0 = arith.constant 0 : i32
    %c0_i32_1 = arith.constant 0 : i32
    return %arg1, %c0_i32, %c0_i32_0 : i32, i32, i32
  }
  func.func @transform_11(%arg0: i32, %arg1: i32) -> (i32, i32, i32) {
    %c0_i32 = arith.constant 0 : i32
    %c0_i32_0 = arith.constant 0 : i32
    %c0_i32_1 = arith.constant 0 : i32
    return %arg1, %c0_i32, %c0_i32_0 : i32, i32, i32
  }
  func.func @transform_12(%arg0: i32, %arg1: i32) -> (i32, i32, i32) {
    %c0_i32 = arith.constant 0 : i32
    %c0_i32_0 = arith.constant 0 : i32
    %c0_i32_1 = arith.constant 0 : i32
    return %arg1, %c0_i32, %c0_i32_0 : i32, i32, i32
  }
  func.func @transform_13(%arg0: i32, %arg1: i32) -> (i32, i32, i32) {
    %c0_i32 = arith.constant 0 : i32
    %c0_i32_0 = arith.constant 0 : i32
    %c0_i32_1 = arith.constant 0 : i32
    return %arg0, %c0_i32, %c0_i32_0 : i32, i32, i32
  }
}

</mosaic_0001>

<bundles_post_ra>
// kernel: tpu_custom_call.1
= control target key start
LH: loop header
LB: loop body
LE: loop exit
PB: predicated region body
PF: predicated region fallthrough
CT: control target
= control target key end

     0   :  { %s7519_s0 = inlined_call_operand.hbm [shape: f32[2,16,256], index: 0, kind: input, shape index: {}]   ;;  %s7520_s1 = inlined_call_operand.hbm [shape: f32[16,128], index: 1, kind: input, shape index: {}]   ;;  %s7521_s2 = inlined_call_operand.hbm [shape: f32[16,128], index: 2, kind: input, shape index: {}]   ;;  %s7522_s3 = inlined_call_operand.vmem [shape: f32[2,1,256], index: 3, kind: input, shape index: {}]   ;;  %s7523_s4 = inlined_call_operand.vmem [shape: f32[2,1,256], index: 4, kind: input, shape index: {}]   ;;  %s7524_s5 = inlined_call_operand.hbm [shape: bf16[2,2,256,384], index: 5, kind: input, shape index: {}]   ;;  %s7525_s6 = inlined_call_operand.hbm [shape: bf16[2,2,128,256], index: 6, kind: input, shape index: {}]   ;;  %s7526_s7 = inlined_call_operand.vmem [shape: f32[2,1,256], index: 7, kind: input, shape index: {}]   ;;  %s7527_s8 = inlined_call_operand.hbm [shape: f32[2,1,256], index: 8, kind: input, shape index: {}]   ;;  %s7528_s9 = inlined_call_operand.hbm [shape: bf16[2,256,1024], index: 9, kind: input, shape index: {}]   ;;  %s7529_s10 = inlined_call_operand.vmem [shape: f32[2,1,1024], index: 10, kind: input, shape index: {}]   ;;  %s7530_s11 = inlined_call_operand.hbm [shape: bf16[2,1024,256], index: 11, kind: input, shape index: {}]   ;;  %s7531_s12 = inlined_call_operand.vmem [shape: f32[2,1,256], index: 12, kind: input, shape index: {}]   ;;  %s7532_s13 = inlined_call_operand.hbm [shape: f32[2,16,256], index: 13, kind: output, shape index: {}]  }
   0x1   :  { %7577 = sst [smem:[#allocation44_spill]] %s7519_s0 }
   0x2   :  { %7578 = sst [smem:[#allocation45_spill]] %s7520_s1 }
   0x3   :  { %7579 = sst [smem:[#allocation46_spill]] %s7521_s2 }
   0x4   :  { %7580 = sst [smem:[#allocation47_spill]] %s7522_s3 }
   0x5   :  { %7581 = sst [smem:[#allocation48_spill]] %s7523_s4 }
   0x6   :  { %7582 = sst [smem:[#allocation49_spill]] %s7524_s5 }
   0x7   :  { %7583 = sst [smem:[#allocation50_spill]] %s7525_s6 }
   0x8   :  { %7584 = sst [smem:[#allocation51_spill]] %s7526_s7 }
   0x9   :  { %7585 = sst [smem:[#allocation52_spill]] %s7527_s8 }
   0xa   :  { %7586 = sst [smem:[#allocation53_spill]] %s7528_s9 }
   0xb   :  { %7587 = sst [smem:[#allocation54_spill]] %s7529_s10 }
   0xc   :  { %7588 = sst [smem:[#allocation55_spill]] %s7530_s11 }
   0xd   :  { %7589 = sst [smem:[#allocation56_spill]] %s7531_s12 }
   0xe   :  { %7590 = sst [smem:[#allocation57_spill]] %s7532_s13 }
   0xf   :  { %18 = vsyncpa [#allocation4], 0 }
  0x10   :  { %20 = vsyncpa [#allocation4 + $0x1], 0 }
  0x11   :  { %21 = vsyncpa [#allocation7], 0 }
  0x12   :  { %22 = vsyncpa [#allocation10], 0 }
  0x13   :  { %24 = vsyncpa [#allocation10 + $0x1], 0 }
  0x14   :  { %25 = vsyncpa [#allocation13], 0 }
  0x15   :  { %27 = vsyncpa [#allocation13 + $0x1], 0 }
  0x16   :  { %28 = vsyncpa [#allocation16], 0 }
  0x17   :  { %30 = vsyncpa [#allocation16 + $0x1], 0 }
  0x18   :  { %31 = vsyncpa [#allocation5], 0 }
  0x19   :  { %33 = vsyncpa [#allocation5 + $0x1], 0  ;;  %s6287_s25 = smov 0   ;;  %s6289_s26 = smov 0  }
  0x1a   :  { %s6291_s27 = smov 0   ;;  %s6293_s28 = smov 0  }
  0x1b   :  { %s6295_s29 = smov 0   ;;  %s6297_s30 = smov 0  }
  0x1c   :  { %s6299_s14 = smov 0   ;;  %s6301_s15 = smov 0  }
  0x1d   :  { %s6303_s16 = smov 0   ;;  %s6305_s17 = smov 0  }
  0x1e   :  { %s6307_s18 = smov 0  }
  0x1f LB: > { %7591 = sst [smem:[#allocation24_spill]] %s6156_s26  ;;  %s6341_s19 = sadd.s32 4294967295, %s6192_s18   ;;  %s6192_s18 = sphi %s6307_s18, %s39_s18   ;;  %s6188_s17 = sphi %s6305_s17, %s7682_s17   ;;  %s6184_s16 = sphi %s6303_s16, %s7681_s16   ;;  %s6180_s15 = sphi %s6301_s15, %s7680_s15   ;;  %s6176_s14 = sphi %s6299_s14, %s7679_s14   ;;  %s6172_s30 = sphi %s6297_s30, %s7678_s30   ;;  %s6168_s29 = sphi %s6295_s29, %s7677_s29   ;;  %s6164_s28 = sphi %s6293_s28, %s7676_s28   ;;  %s6160_s27 = sphi %s6291_s27, %s7675_s27   ;;  %s6156_s26 = sphi %s6289_s26, %s7674_s26   ;;  %s6152_s25 = sphi %s6287_s25, %s7673_s25  }
  0x20   : > { %7592 = sst [smem:[#allocation25_spill]] %s6160_s27  ;;  %s4695_s20 = sadd.s32 4294967294, %s6192_s18  }
  0x21   : > { %7593 = sst [smem:[#allocation26_spill]] %s6164_s28  ;;  %p71_p0 = scmp.ne.s32.totalorder %s6168_s29, %s6164_s28 }
  0x22   : > { %7594 = sst [smem:[#allocation27_spill]] %s6168_s29  ;;  %p7536_p1 = scmp.eq.s32.totalorder %s6341_s19, 0 }
  0x23   : > { %7595 = sst [smem:[#allocation28_spill]] %s6172_s30  ;;  %p191_p2 = scmp.ne.s32.totalorder %s6156_s26, %s6152_s25 }
  0x24   : > { %7596 = sst [smem:[#allocation29_spill]] %s6176_s14  ;;  %p6351_p4 = por %p7536_p1, %p71_p0 }
  0x25   : > { %7597 = sst [smem:[#allocation30_spill]] %s6180_s15  ;;  %p403_p5 = scmp.eq.s32.totalorder %s4695_s20, 3 }
  0x26   : > { %7598 = sst [smem:[#allocation31_spill]] %s6184_s16  ;;  %p6357_p6 = por %p191_p2, %p7536_p1 }
  0x27   : > { %7599 = sst [smem:[#allocation32_spill]] %s6188_s17  ;;  %p4696_p7 = scmp.ge.s32.totalorder %s6192_s18, 1 }
  0x28   : > { %7600 = sst [smem:[#allocation33_spill]] %s6192_s18  ;;  %p6362_p8 = por %p403_p5, %p71_p0 }
  0x29   : > { %7601 = sst [smem:[#allocation34_spill]] %s6341_s19  ;;  %p410_p9 = scmp.lt.s32.totalorder %s6192_s18, 5 }
  0x2a   : > { %s7602_s21 = scalar_select %p6351_p4, 1, 0 }
  0x2b   : > { %s7604_s22 = scalar_select %p6357_p6, 1, 0 }
  0x2c   : > { %7603 = sst [smem:[#allocation35_spill]] %s7602_s21  ;;  %p6367_p10 = pnand %p4696_p7, %p410_p9 }
  0x2d   : > { %7605 = sst [smem:[#allocation36_spill]] %s7604_s22  ;;  %s6194_s25 = smov [#allocation6]  }
  0x2e   : > { %s7606_s23 = scalar_select %p6362_p8, 1, 0 }
  0x2f   : > { %s7608_s24 = scalar_select %p6367_p10, 1, 0 }
  0x30   : > { %7607 = sst [smem:[#allocation37_spill]] %s7606_s23  ;;  %s422_s28 = sshll.u32 %s6194_s25, 4  ;;  %s423_s28 = int_to_ptr.vmem [resolvable:$true] %s422_s28 }
  0x31   : > { %7609 = sst [smem:[#allocation38_spill]] %s7608_s24  ;;  %p5250_p11 = pneg %p6367_p10 }
  0x32   : > { %s7611_s1 = sld [smem:[#allocation45_spill]] }
  0x33   : > { %p6375_p12 = pnand %p5250_p11, %p7536_p1 }
  0x35   : > { %s7610_s20 = scalar_select %p6375_p12, 1, 0 }
  0x36   : > { %p7551_p2 = pneg %p6375_p12 }
  0x38   : > { %s5818_s15 = scalar_lea.hbm %s7611_s1, 256 }
  0x39   : > { %p5819_p0 = scmp.ne.s32.totalorder %s7611_s1, %s5818_s15  ;;  %p5825_p9 = scmp.lt.u32.totalorder %s5818_s15, %s7611_s1 }
  0x3b   : > { %p5821_p5 = pnand %p7551_p2, %p5819_p0 }
  0x3d   : > { %p5822_p7 = pneg %p5821_p5 }
  0x3f   : > { %p5827_p11 = pnand %p5825_p9, %p5822_p7 }
  0x41   : > { %5830 = shalt.err (!%p5827_p11)
}
  0x42   : > { %s5831_s4 = scalar_lea.vmem %s423_s28, 256  ;;  %p5839_p8 = scmp.lt.s32.totalorder %s423_s28, %s423_s28 }
  0x43   : > { %p5832_p1 = scmp.ne.s32.totalorder %s423_s28, %s5831_s4  ;;  %p5840_p6 = scmp.lt.s32.totalorder %s5831_s4, %s5831_s4 }
  0x45   : > { %p5834_p3 = pnand %p5832_p1, %p7551_p2  ;;  %p5841_p4 = por %p5840_p6, %p5839_p8 }
  0x47   : > { %p5835_p13 = pneg %p5834_p3 }
  0x49   : > { %p5842_p10 = pnand %p5841_p4, %p5835_p13 }
  0x4b   : > { %5845 = shalt.err (!%p5842_p10)
}
  0x4c   : > { %s7545_s10 = smov 128   ;;  %s7547_s7 = smov 8  }
  0x4d   : > { %5253 = dma.hbm_to_vmem [thread:$0]  (!%p6375_p12), %s7611_s1, 256, %s423_s28, [#allocation7], %s7545_s10, %s7545_s10, %s7547_s7  }
  0x4e   : > { %p185_p1 = scmp.ne.s32.totalorder %s6160_s27, %s6156_s26  ;;  %p7550_p3 = scmp.lt.s32.totalorder %s6192_s18, 4 }
  0x4f   : > { %s7549_s15 = sand.u32 1, %s6192_s18   ;;  %p7612_p4 = scmp.eq.s32.totalorder %s6192_s18, 0 }
  0x50   : > { %s6413_s23 = sand.u32 1, %s6160_s27   ;;  %s5226_s25 = smul.u32 12288, %s6184_s16 }
  0x51   : > { %p187_p6 = por %p185_p1, %p7612_p4  ;;  %s5225_s3 = smul.u32 768, %s6413_s23 }
  0x52   : > { %s7614_s5 = sld [smem:[#allocation49_spill]]  ;;  %s6432_s13 = scalar_lea.sflag [#allocation10], %s7549_s15 }
  0x53   : > { %p6419_p8 = pnand %p7550_p3, %p187_p6  ;;  %s488_s4 = scalar_lea.vmem [#allocation9], %s5225_s3 }
  0x54   : > { %s495_s12 = sshll.u32 %s488_s4, 4  ;;  %s6428_s12 = int_to_ptr.vmem [resolvable:$true] %s495_s12 }
  0x55   : > { %s7613_s14 = scalar_select %p6419_p8, 1, 0 }
  0x56   : > { %p6438_p13 = pneg %p6419_p8 }
  0x58   : > { %s6426_s28 = scalar_lea.hbm %s7614_s5, %s5226_s25  ;;  %s5851_s3 = scalar_lea.hbm %s7614_s5, 24576 }
  0x59   : > { %s5846_s10 = scalar_lea.hbm %s6426_s28, 12288  ;;  %p5852_p7 = scmp.lt.u32.totalorder %s6426_s28, %s7614_s5 }
  0x5a   : > { %p5847_p10 = scmp.ne.s32.totalorder %s6426_s28, %s5846_s10  ;;  %p5853_p9 = scmp.lt.u32.totalorder %s5851_s3, %s5846_s10 }
  0x5b   : > { %s7615_s7 = scalar_select %p6438_p13, 1, 0 }
  0x5c   : > { %p5849_p0 = pnand %p6438_p13, %p5847_p10  ;;  %p5854_p11 = por %p5853_p9, %p5852_p7 }
  0x5d   : > { %p5855_p1 = scmp.lt.u32.totalorder %s5846_s10, %s6426_s28 }
  0x5e   : > { %p5850_p5 = pneg %p5849_p0 }
  0x5f   : > { %p5856_p4 = por %p5855_p1, %p5854_p11 }
  0x61   : > { %p5857_p6 = pnand %p5856_p4, %p5850_p5 }
  0x63   : > { %5860 = shalt.err (!%p5857_p6)
}
  0x64   : > { %s5861_s15 = scalar_lea.vmem %s6428_s12, 12288  ;;  %s6197_s21 = smov [#allocation9]  }
  0x65   : > { %p5862_p10 = scmp.ne.s32.totalorder %s6428_s12, %s5861_s15  ;;  %s5866_s22 = sshll.u32 %s6197_s21, 4  ;;  %s5867_s22 = int_to_ptr.vmem [resolvable:$false] %s5866_s22 }
  0x66   : > { %s5868_s25 = scalar_lea.vmem %s5867_s22, 24576  ;;  %p5869_p2 = scmp.lt.s32.totalorder %s6428_s12, %s5867_s22 }
  0x67   : > { %p5864_p0 = pnand %p5862_p10, %p6438_p13  ;;  %p5870_p12 = scmp.lt.s32.totalorder %s5868_s25, %s5861_s15 }
  0x69   : > { %p5865_p3 = pneg %p5864_p0  ;;  %p5871_p7 = por %p5870_p12, %p5869_p2 }
  0x6b   : > { %p5872_p9 = pnand %p5871_p7, %p5865_p3 }
  0x6d   : > { %5875 = shalt.err (!%p5872_p9)
}
  0x6e   : > { %s6198_s10 = smov 192   ;;  %s6199_s3 = smov 12  }
  0x6f   : > { %5263 = dma.hbm_to_vmem [thread:$0]  (!%p6419_p8), %s6426_s28, 12288, %s6428_s12, %s6432_s13, %s6198_s10, %s6198_s10, %s6199_s3  }
  0x70   : > { %s4707_s4 = sshll.u32 %s6413_s23, 1  ;;  %s5125_s21 = sshll.u32 %s6184_s16, 5 }
  0x71   : > { %s7616_s8 = sld [smem:[#allocation52_spill]]  ;;  %s537_s25 = scalar_lea.vmem [#allocation12], %s4707_s4 }
  0x72   : > { %s545_s5 = sshll.u32 %s537_s25, 4  ;;  %s6200_s26 = smov [#allocation8]   ;;  %s6469_s5 = int_to_ptr.vmem [resolvable:$true] %s545_s5 }
  0x73   : > { %s6471_s24 = sshll.u32 %s6200_s26, 4  ;;  %s7617_s11 = sand.u32 1, %s6192_s18   ;;  %s436_s24 = int_to_ptr.vmem [resolvable:$true] %s6471_s24 }
  0x74   : > { %s6475_s28 = scalar_lea.sflag [#allocation13], %s7617_s11 }
  0x77   : > { %s6467_s15 = scalar_lea.hbm %s7616_s8, %s5125_s21  ;;  %s5881_s3 = scalar_lea.hbm %s7616_s8, 64 }
  0x78   : > { %s5876_s12 = scalar_lea.hbm %s6467_s15, 32  ;;  %p5882_p5 = scmp.lt.u32.totalorder %s6467_s15, %s7616_s8 }
  0x79   : > { %p5877_p12 = scmp.ne.s32.totalorder %s6467_s15, %s5876_s12  ;;  %p5883_p11 = scmp.lt.u32.totalorder %s5881_s3, %s5876_s12 }
  0x7a   : > { %p5885_p4 = scmp.lt.u32.totalorder %s5876_s12, %s6467_s15 }
  0x7b   : > { %p5879_p2 = pnand %p5877_p12, %p6438_p13  ;;  %p5884_p1 = por %p5883_p11, %p5882_p5 }
  0x7d   : > { %p5880_p3 = pneg %p5879_p2  ;;  %p5886_p6 = por %p5885_p4, %p5884_p1 }
  0x7f   : > { %p5887_p10 = pnand %p5886_p6, %p5880_p3 }
  0x81   : > { %5890 = shalt.err (!%p5887_p10)
}
  0x82   : > { %s5891_s11 = scalar_lea.vmem %s6469_s5, 32  ;;  %s6201_s26 = smov [#allocation12]  }
  0x83   : > { %p5892_p0 = scmp.ne.s32.totalorder %s6469_s5, %s5891_s11  ;;  %s5896_s22 = sshll.u32 %s6201_s26, 4  ;;  %s5897_s22 = int_to_ptr.vmem [resolvable:$false] %s5896_s22 }
  0x84   : > { %s5898_s25 = scalar_lea.vmem %s5897_s22, 64  ;;  %p5899_p12 = scmp.lt.s32.totalorder %s6469_s5, %s5897_s22 }
  0x85   : > { %p5894_p7 = pnand %p5892_p0, %p6438_p13  ;;  %p5900_p2 = scmp.lt.s32.totalorder %s5898_s25, %s5891_s11 }
  0x87   : > { %p5895_p9 = pneg %p5894_p7  ;;  %p5901_p5 = por %p5900_p2, %p5899_p12 }
  0x89   : > { %p5902_p11 = pnand %p5901_p5, %p5895_p9 }
  0x8b   : > { %5905 = shalt.err (!%p5902_p11)
}
  0x8c   : > { %5269 = dma.hbm_to_vmem [thread:$0]  (!%p6419_p8), %s6467_s15, 32, %s6469_s5, %s6475_s28  }
  0x8d   : > { %s7618_s2 = sld [smem:[#allocation46_spill]]  ;;  %p7619_p1 = scmp.ne.s32.totalorder %s7610_s20, 0 }
  0x8f   : > { %p7620_p4 = pneg %p7619_p1 }
  0x93   : > { %s5906_s10 = scalar_lea.hbm %s7618_s2, 256 }
  0x94   : > { %p5907_p3 = scmp.ne.s32.totalorder %s7618_s2, %s5906_s10  ;;  %p5913_p0 = scmp.lt.u32.totalorder %s5906_s10, %s7618_s2 }
  0x96   : > { %p5909_p6 = pnand %p5907_p3, %p7620_p4 }
  0x98   : > { %p5910_p10 = pneg %p5909_p6 }
  0x9a   : > { %p5915_p7 = pnand %p5913_p0, %p5910_p10 }
  0x9c   : > { %5918 = shalt.err (!%p5915_p7)
}
  0x9d   : > { %s5919_s5 = scalar_lea.vmem %s436_s24, 256  ;;  %p7621_p12 = pmov %p7620_p4 }
  0x9e   : > { %p5920_p9 = scmp.ne.s32.totalorder %s436_s24, %s5919_s5  ;;  %p5927_p11 = scmp.lt.s32.totalorder %s436_s24, %s436_s24 }
  0x9f   : > { %p5928_p8 = scmp.lt.s32.totalorder %s5919_s5, %s5919_s5 }
  0xa0   : > { %p5922_p2 = pnand %p5920_p9, %p7621_p12 }
  0xa1   : > { %p5929_p13 = por %p5928_p8, %p5927_p11 }
  0xa2   : > { %p5923_p5 = pneg %p5922_p2 }
  0xa4   : > { %p5930_p3 = pnand %p5929_p13, %p5923_p5 }
  0xa6   : > { %5933 = shalt.err (!%p5930_p3)
}
  0xa7   : > { %s7622_s15 = smov 8   ;;  %s7623_s26 = smov 128  }
  0xa8   : > { %5256 = dma.hbm_to_vmem [thread:$0]  (!%p7619_p1), %s7618_s2, 256, %s436_s24, [#allocation7], %s7623_s26, %s7623_s26, %s7622_s15  }
  0xa9   : > { %s48_s20 = sadd.s32 1, %s6184_s16  ;;  %s51_s12 = sadd.s32 1, %s6188_s17 }
  0xaa   : > { %p49_p8 = scmp.ge.s32.totalorder %s48_s20, 2  ;;  %s58_s1 = sadd.s32 1, %s6172_s30 }
  0xab   : > { %p65_p13 = scmp.ne.s32.totalorder %s6172_s30, %s6168_s29  ;;  %p7625_p4 = scmp.eq.s32.totalorder %s6192_s18, 0 }
  0xac   : > { %s7684_s20 = smov (%p49_p8, %s48_s20), 0  ;;  %s7686_s12 = smov (!%p49_p8, %s51_s12), %s6188_s17 }
  0xad   : > { %7624 = sst [smem:[#allocation39_spill]] %s7684_s20  ;;  %p6533_p6 = por %p7625_p4, %p65_p13 }
  0xae   : > { %s175_s3 = ssub.s32 %s6184_s16, %s7684_s20  ;;  %p53_p1 = scmp.ge.s32.totalorder %s7686_s12, 2 }
  0xaf   : > { %p176_p10 = scmp.eq.s32.totalorder %s175_s3, 0  ;;  %p7627_p0 = scmp.eq.s32.totalorder %s6341_s19, 3 }
  0xb0   : > { %s449_s21 = sand.u32 1, %s6172_s30   ;;  %s7688_s12 = smov (%p53_p1, %s7686_s12), 0 }
  0xb1   : > { %p6541_p7 = por %p7627_p0, %p65_p13  ;;  %7630 = sst [smem:[#allocation41_spill]] %s7688_s12 }
  0xb2   : > { %s7631_s4 = sadd.s32 1, %s6160_s27  ;;  %s55_s5 = ssub.s32 %s6188_s17, %s7688_s12 }
  0xb3   : > { %s7628_s24 = scalar_select %p6541_p7, 1, 0 }
  0xb4   : > { %s6551_s11 = scalar_select %p176_p10, %s6160_s27, %s7631_s4  }
  0xb5   : > { %7629 = sst [smem:[#allocation40_spill]] %s7628_s24  ;;  %p56_p9 = scmp.eq.s32.totalorder %s55_s5, 0 }
  0xb6   : > { %7632 = sst [smem:[#allocation42_spill]] %s6551_s11  ;;  %s4700_s22 = sshll.u32 %s449_s21, 5 }
  0xb7   : > { %s5123_s25 = sshll.u32 %s6188_s17, 9  ;;  %s7634_s0 = sld [smem:[#allocation44_spill]] }
  0xb8   : > { %s6557_s2 = scalar_select %p56_p9, %s6172_s30, %s58_s1  }
  0xb9   : > { %s453_s24 = scalar_lea.vmem [#allocation3], %s4700_s22  ;;  %p7635_p12 = scmp.lt.s32.totalorder %s6192_s18, 4 }
  0xba   : > { %7633 = sst [smem:[#allocation43_spill]] %s6557_s2  ;;  %s460_s19 = sshll.u32 %s453_s24, 4  ;;  %s6564_s19 = int_to_ptr.vmem [resolvable:$true] %s460_s19 }
  0xbb   : > { %p6570_p2 = pnand %p7635_p12, %p6533_p6  ;;  %s6575_s8 = scalar_lea.sflag [#allocation4], %s449_s21 }
  0xbd   : > { %s6562_s20 = scalar_lea.hbm %s7634_s0, %s5123_s25  ;;  %p5936_p11 = pneg %p6570_p2 }
  0xbe   : > { %s5934_s5 = scalar_lea.hbm %s6562_s20, 512  ;;  %s5939_s22 = scalar_lea.hbm %s7634_s0, 1024 }
  0xbf   : > { %p5935_p5 = scmp.ne.s32.totalorder %s6562_s20, %s5934_s5  ;;  %p5940_p13 = scmp.lt.u32.totalorder %s6562_s20, %s7634_s0 }
  0xc0   : > { %p5941_p4 = scmp.lt.u32.totalorder %s5939_s22, %s5934_s5  ;;  %p5943_p1 = scmp.lt.u32.totalorder %s5934_s5, %s6562_s20 }
  0xc1   : > { %p5937_p3 = pnand %p5936_p11, %p5935_p5 }
  0xc2   : > { %p5942_p6 = por %p5941_p4, %p5940_p13 }
  0xc3   : > { %p5938_p8 = pneg %p5937_p3 }
  0xc4   : > { %p5944_p10 = por %p5943_p1, %p5942_p6 }
  0xc6   : > { %p5945_p0 = pnand %p5944_p10, %p5938_p8 }
  0xc8   : > { %5948 = shalt.err (!%p5945_p0)
}
  0xc9   : > { %s5949_s21 = scalar_lea.vmem %s6564_s19, 512  ;;  %s6202_s24 = smov [#allocation3]  }
  0xca   : > { %p5950_p9 = scmp.ne.s32.totalorder %s6564_s19, %s5949_s21  ;;  %s5954_s10 = sshll.u32 %s6202_s24, 4  ;;  %s5955_s10 = int_to_ptr.vmem [resolvable:$false] %s5954_s10 }
  0xcb   : > { %s5956_s25 = scalar_lea.vmem %s5955_s10, 1024  ;;  %p5957_p3 = scmp.lt.s32.totalorder %s6564_s19, %s5955_s10 }
  0xcc   : > { %p5952_p12 = pnand %p5950_p9, %p5936_p11  ;;  %p5958_p13 = scmp.lt.s32.totalorder %s5956_s25, %s5949_s21 }
  0xce   : > { %p5953_p5 = pneg %p5952_p12  ;;  %p5959_p4 = por %p5958_p13, %p5957_p3 }
  0xd0   : > { %p5960_p6 = pnand %p5959_p4, %p5953_p5 }
  0xd2   : > { %5963 = shalt.err (!%p5960_p6)
}
  0xd3   : > { %s6203_s5 = smov 256   ;;  %s6204_s22 = smov 16  }
  0xd4   : > { %5260 = dma.hbm_to_vmem [thread:$0]  (!%p6570_p2), %s6562_s20, 512, %s6564_s19, %s6575_s8, %s6203_s5, %s6203_s5, %s6204_s22  }
  0xd5   : > { %s5124_s3 = sshll.u32 %s6184_s16, 12  ;;  %s7637_s6 = sld [smem:[#allocation50_spill]] }
  0xd6   : > { %s7638_s10 = sshll.u32 %s6413_s23, 8  ;;  %s4710_s12 = sshll.u32 %s6413_s23, 10 }
  0xd7   : > { %s509_s25 = scalar_lea.vmem [#allocation11], %s7638_s10  ;;  %p7639_p8 = scmp.ne.s32.totalorder %s7615_s7, 0 }
  0xd8   : > { %s516_s0 = sshll.u32 %s509_s25, 4  ;;  %s6611_s0 = int_to_ptr.vmem [resolvable:$true] %s516_s0 }
  0xdb   : > { %s6607_s21 = scalar_lea.hbm %s7637_s6, %s5124_s3  ;;  %s5969_s4 = scalar_lea.hbm %s7637_s6, 8192 }
  0xdc   : > { %s5964_s17 = scalar_lea.hbm %s6607_s21, 4096  ;;  %p5970_p10 = scmp.lt.u32.totalorder %s6607_s21, %s7637_s6 }
  0xdd   : > { %p5965_p11 = scmp.ne.s32.totalorder %s6607_s21, %s5964_s17  ;;  %p5971_p0 = scmp.lt.u32.totalorder %s5969_s4, %s5964_s17 }
  0xde   : > { %p5973_p12 = scmp.lt.u32.totalorder %s5964_s17, %s6607_s21 }
  0xdf   : > { %p5967_p2 = pnand %p5965_p11, %p7639_p8  ;;  %p5972_p9 = por %p5971_p0, %p5970_p10 }
  0xe1   : > { %p5968_p1 = pneg %p5967_p2  ;;  %p5974_p5 = por %p5973_p12, %p5972_p9 }
  0xe3   : > { %p5975_p3 = pnand %p5974_p5, %p5968_p1 }
  0xe5   : > { %5978 = shalt.err (!%p5975_p3)
}
  0xe6   : > { %s5979_s5 = scalar_lea.vmem %s6611_s0, 4096  ;;  %s6205_s22 = smov [#allocation11]  }
  0xe7   : > { %p5980_p13 = scmp.ne.s32.totalorder %s6611_s0, %s5979_s5  ;;  %s5984_s3 = sshll.u32 %s6205_s22, 4  ;;  %s5985_s3 = int_to_ptr.vmem [resolvable:$false] %s5984_s3 }
  0xe8   : > { %s5986_s24 = scalar_lea.vmem %s5985_s3, 8192  ;;  %p5987_p11 = scmp.lt.s32.totalorder %s6611_s0, %s5985_s3 }
  0xe9   : > { %p5982_p4 = pnand %p5980_p13, %p7639_p8  ;;  %p5988_p2 = scmp.lt.s32.totalorder %s5986_s24, %s5979_s5 }
  0xeb   : > { %p5983_p6 = pneg %p5982_p4  ;;  %p5989_p10 = por %p5988_p2, %p5987_p11 }
  0xed   : > { %p5990_p0 = pnand %p5989_p10, %p5983_p6 }
  0xef   : > { %5993 = shalt.err (!%p5990_p0)
}
  0xf0   : > { %p7640_p1 = scmp.ne.s32.totalorder %s7613_s14, 0  ;;  %s5126_s17 = sshll.u32 %s6184_s16, 14 }
  0xf1   : > { %s7641_s9 = sld [smem:[#allocation53_spill]]  ;;  %s556_s20 = scalar_lea.vmem [#allocation14], %s4710_s12 }
  0xf2   : > { %5266 = dma.hbm_to_vmem [thread:$0]  (!%p7640_p1), %s6607_s21, 4096, %s6611_s0, %s6432_s13, %s7623_s26, %s7623_s26, %s7622_s15  }
  0xf3   : > { %s563_s4 = sshll.u32 %s556_s20, 4  ;;  %s6649_s4 = int_to_ptr.vmem [resolvable:$true] %s563_s4 }
  0xf7   : > { %s6645_s19 = scalar_lea.hbm %s7641_s9, %s5126_s17  ;;  %s5999_s21 = scalar_lea.hbm %s7641_s9, 32768 }
  0xf8   : > { %s5994_s1 = scalar_lea.hbm %s6645_s19, 16384  ;;  %p6000_p3 = scmp.lt.u32.totalorder %s6645_s19, %s7641_s9 }
  0xf9   : > { %p5995_p9 = scmp.ne.s32.totalorder %s6645_s19, %s5994_s1  ;;  %p6001_p13 = scmp.lt.u32.totalorder %s5999_s21, %s5994_s1 }
  0xfa   : > { %p6003_p6 = scmp.lt.u32.totalorder %s5994_s1, %s6645_s19 }
  0xfb   : > { %p5997_p12 = pnand %p5995_p9, %p7639_p8  ;;  %p6002_p4 = por %p6001_p13, %p6000_p3 }
  0xfd   : > { %p5998_p5 = pneg %p5997_p12  ;;  %p6004_p11 = por %p6003_p6, %p6002_p4 }
  0xff   : > { %p6005_p2 = pnand %p6004_p11, %p5998_p5 }
 0x101   : > { %6008 = shalt.err (!%p6005_p2)
}
 0x102   : > { %s6009_s22 = scalar_lea.vmem %s6649_s4, 16384  ;;  %s6206_s3 = smov [#allocation14]  }
 0x103   : > { %p6010_p10 = scmp.ne.s32.totalorder %s6649_s4, %s6009_s22  ;;  %s6014_s24 = sshll.u32 %s6206_s3, 4  ;;  %s6015_s24 = int_to_ptr.vmem [resolvable:$false] %s6014_s24 }
 0x104   : > { %s6016_s10 = scalar_lea.vmem %s6015_s24, 32768  ;;  %p6017_p12 = scmp.lt.s32.totalorder %s6649_s4, %s6015_s24 }
 0x105   : > { %p6012_p0 = pnand %p6010_p10, %p7639_p8  ;;  %p6018_p7 = scmp.lt.s32.totalorder %s6016_s10, %s6009_s22 }
 0x107   : > { %p6013_p9 = pneg %p6012_p0  ;;  %p6019_p3 = por %p6018_p7, %p6017_p12 }
 0x109   : > { %p6020_p13 = pnand %p6019_p3, %p6013_p9 }
 0x10b   : > { %6023 = shalt.err (!%p6020_p13)
}
 0x10c   : > { %s6207_s25 = smov 512   ;;  %s6208_s20 = smov 32  }
 0x10d   : > { %5272 = dma.hbm_to_vmem [thread:$0]  (!%p7640_p1), %s6645_s19, 16384, %s6649_s4, %s6475_s28, %s6207_s25, %s6207_s25, %s6208_s20  }
 0x10e   : > { %s7642_s13 = sld [smem:[#allocation55_spill]]  ;;  %s584_s8 = scalar_lea.vmem [#allocation15], %s4710_s12 }
 0x10f   : > { %s591_s5 = sshll.u32 %s584_s8, 4  ;;  %s581_s22 = scalar_lea.sflag [#allocation16], %s6413_s23  ;;  %s6682_s5 = int_to_ptr.vmem [resolvable:$true] %s591_s5 }
 0x114   : > { %s6678_s21 = scalar_lea.hbm %s7642_s13, %s5126_s17  ;;  %s6029_s17 = scalar_lea.hbm %s7642_s13, 32768 }
 0x115   : > { %s6024_s3 = scalar_lea.hbm %s6678_s21, 16384  ;;  %p6030_p6 = scmp.lt.u32.totalorder %s6678_s21, %s7642_s13 }
 0x116   : > { %p6025_p7 = scmp.ne.s32.totalorder %s6678_s21, %s6024_s3  ;;  %p6031_p11 = scmp.lt.u32.totalorder %s6029_s17, %s6024_s3 }
 0x117   : > { %p6033_p10 = scmp.lt.u32.totalorder %s6024_s3, %s6678_s21 }
 0x118   : > { %p6027_p5 = pnand %p6025_p7, %p7639_p8  ;;  %p6032_p2 = por %p6031_p11, %p6030_p6 }
 0x11a   : > { %p6028_p4 = pneg %p6027_p5  ;;  %p6034_p0 = por %p6033_p10, %p6032_p2 }
 0x11c   : > { %p6035_p9 = pnand %p6034_p0, %p6028_p4 }
 0x11e   : > { %6038 = shalt.err (!%p6035_p9)
}
 0x11f   : > { %s6039_s12 = scalar_lea.vmem %s6682_s5, 16384  ;;  %s6209_s10 = smov [#allocation15]  }
 0x120   : > { %p6040_p12 = scmp.ne.s32.totalorder %s6682_s5, %s6039_s12  ;;  %s6044_s25 = sshll.u32 %s6209_s10, 4  ;;  %s6045_s25 = int_to_ptr.vmem [resolvable:$false] %s6044_s25 }
 0x121   : > { %s6046_s20 = scalar_lea.vmem %s6045_s25, 32768  ;;  %p6047_p7 = scmp.lt.s32.totalorder %s6682_s5, %s6045_s25 }
 0x122   : > { %p6042_p3 = pnand %p6040_p12, %p7639_p8  ;;  %p6048_p5 = scmp.lt.s32.totalorder %s6046_s20, %s6039_s12 }
 0x124   : > { %p6043_p13 = pneg %p6042_p3  ;;  %p6049_p6 = por %p6048_p5, %p6047_p7 }
 0x126   : > { %p6050_p11 = pnand %p6049_p6, %p6043_p13 }
 0x128   : > { %6053 = shalt.err (!%p6050_p11)
}
 0x129   : > { %5275 = dma.hbm_to_vmem [thread:$0]  (!%p7640_p1), %s6678_s21, 16384, %s6682_s5, %s581_s22, %s7623_s26, %s7623_s26, %s7622_s15  }
 0x12a   : > { %s7643_s7 = sld [smem:[#allocation38_spill]] }
 0x130   : > { %p7644_p8 = scmp.ne.s32.totalorder %s7643_s7, 0 }
 0x131   : > { %s7645_s1 = sld [smem:[#allocation35_spill]] (!%p7644_p8)  ;;  %s6714_s0 = sand.u32 (!%p7644_p8), 1, %s6168_s29  }
 0x132   : > { %610 = sbr.rel (%p7644_p8) target bundleno = 3093 (0xc15), region = 72  ;;  %s7569_s8 = sshll.u32 (!%p7644_p8), %s6714_s0, 5 }
 0x133   : > { %s613_s14 = scalar_lea.sflag (!%p7644_p8), [#allocation4], %s6714_s0  ;;  %s6720_s3 = scalar_lea.vmem (!%p7644_p8), [#allocation3], %s7569_s8 }
 0x137   : > { %p7646_p4 = scmp.ne.s32.totalorder (!%p7644_p8), %s7645_s1, 0 }
 0x139   : > { %6127 = dma.done.wait (%p7646_p4), %s613_s14, 512  }
 0x13a   : > { %6129 = vsyncadd (%p7646_p4), %s613_s14, 4294966784  ;;  %s7647_s23 = sld [smem:[#allocation34_spill]] }
 0x140   : > { %p7648_p1 = scmp.eq.s32.totalorder %s7647_s23, 0 }
 0x142   : > { %6131 = dma.done.wait (%p7648_p1), [#allocation7], 512   ;;  %p7649_p2 = pmov %p7648_p1 }
 0x143   : > { %s7650_s15 = sld [smem:[#allocation24_spill]]  ;;  %s629_s21 = sand.u32 1, %s7647_s23  }
 0x144   : > { %6133 = vsyncadd (%p7649_p2), [#allocation7], 4294966784  ;;  %s7651_s26 = sld [smem:[#allocation36_spill]]  ;;  %s630_s28 = scalar_lea.sflag [#allocation10], %s629_s21 }
 0x149   : > { %s631_s5 = sand.u32 1, %s7650_s15  }
 0x14a   : > { %s5227_s22 = smul.u32 768, %s631_s5  ;;  %p7652_p10 = scmp.ne.s32.totalorder %s7651_s26, 0 }
 0x14c   : > { %s6732_s19 = scalar_lea.vmem [#allocation9], %s5227_s22 }
 0x14d   : > { %6135 = dma.done.wait (%p7652_p10), %s630_s28, 16384  }
 0x14e   : > { %6137 = vsyncadd (%p7652_p10), %s630_s28, 4294950912  ;;  %s4720_s17 = sshll.u32 %s631_s5, 8  ;;  %s4721_s4 = sshll.u32 %s631_s5, 1 }
 0x14f   : > { %s6738_s24 = scalar_lea.vmem [#allocation11], %s4720_s17  ;;  %s648_s12 = scalar_lea.sflag [#allocation13], %s629_s21 }
 0x150   : > { %s6740_s10 = scalar_lea.vmem [#allocation12], %s4721_s4 }
 0x151   : > { %6139 = dma.done.wait (%p7652_p10), %s648_s12, 16416  }
 0x152   : > { %6141 = vsyncadd (%p7652_p10), %s648_s12, 4294950880  ;;  %s4722_s25 = sshll.u32 %s631_s5, 10  ;;  %s666_s7 = scalar_lea.sflag [#allocation16], %s631_s5 }
 0x153   : > { %s6746_s20 = scalar_lea.vmem [#allocation14], %s4722_s25  ;;  %s6748_s1 = scalar_lea.vmem [#allocation15], %s4722_s25 }
 0x154   : > { %6143 = dma.done.wait (%p7652_p10), %s666_s7, 16384  }
 0x155   : > { %6145 = vsyncadd (%p7652_p10), %s666_s7, 4294950912  ;;  %s7653_s14 = sld [smem:[#allocation29_spill]]  ;;  %s7654_s28 = sld [smem:[#allocation47_spill]] }
 0x156   : > { %s7655_s26 = sld [smem:[#allocation48_spill]]  ;;  %s7656_s6 = sld [smem:[#allocation51_spill]] }
 0x157   : > { %s7657_s2 = sld [smem:[#allocation54_spill]]  ;;  %s7659_s18 = sshll.u32 %s6714_s0, 5 }
 0x158   : > { %s6781_s5 = scalar_lea.vmem [#allocation17], %s7659_s18 }
 0x15b   : > { %p757_p0 = scmp.lt.s32.totalorder %s7653_s14, 1  ;;  %p4730_p9 = scmp.ne.s32.totalorder %s7653_s14, 0 }
 0x15c   : > { %v782_v0 = vld [vmem:[%s6720_s3] sm:$0xff] (!%p4730_p9)  ;;  %v783_v1 = vld [vmem:[%s6720_s3 + $0x8] sm:$0xff] (!%p4730_p9)  ;;  %v784_v2 = vld [vmem:[%s6720_s3 + $0x10] sm:$0xff] (!%p4730_p9) }
 0x15d   : > { %s758_s23 = scalar_select %p757_p0, %s7653_s14, 1 }
 0x15e   : > { %786 = vst [vmem:[#allocation2] sm:$0xff] (!%p4730_p9), %v782_v0  ;;  %787 = vst [vmem:[#allocation2 + $0x8] sm:$0xff] (!%p4730_p9), %v783_v1  ;;  %v785_v3 = vld [vmem:[%s6720_s3 + $0x18] sm:$0xff] (!%p4730_p9) }
 0x15f   : > { %s6756_s15 = sshll.u32 %s758_s23, 1  ;;  %s4728_s21 = sshll.u32 %s758_s23, 3  ;;  %788 = vst [vmem:[#allocation2 + $0x10] sm:$0xff] (!%p4730_p9), %v784_v2  ;;  %789 = vst [vmem:[#allocation2 + $0x18] sm:$0xff] (!%p4730_p9), %v785_v3 }
 0x160   : > { %s760_s17 = scalar_lea.vmem %s7654_s28, %s6756_s15  ;;  %s764_s25 = scalar_lea.vmem %s7655_s26, %s6756_s15 }
 0x161   : > { %s768_s9 = scalar_lea.vmem %s7656_s6, %s6756_s15  ;;  %s6773_s30 = scalar_lea.vmem %s7657_s2, %s4728_s21 }
 0x162   : > { %s7658_s23 = sld [smem:[#allocation56_spill]]  ;;  %781 = sbr.rel (%p4730_p9) target bundleno = 361 (0x169), region = 108 }
 0x168   : > { %s776_s27 = scalar_lea.vmem %s7658_s23, %s6756_s15 }
 0x169 PF: > { %v790_v4 = vld [vmem:[#allocation2] sm:$0xff]  ;;  %v791_v5 = vld [vmem:[#allocation2 + $0x8] sm:$0xff]  ;;  %v792_v6 = vld [vmem:[#allocation2 + $0x10] sm:$0xff]  ;;  %v830_v61 = vlaneseq  ;;  %s6211_s13 = smov 64   ;;  %vm6212_vm0 = vmmov 0   ;;  %vm1815_vm1 = vcmask 130048  }
 0x16a   : > { %v796_v7 = vadd.f32 %v791_v5, %v790_v4  ;;  %v793_v8 = vld [vmem:[#allocation2 + $0x18] sm:$0xff]  ;;  %v5390_v10 = vld [vmem:[%s6732_s19 + $0x4] ss:$12 sps:$4 sm:$0xff]   ;;  %v5392_v11 = vld [vmem:[%s6732_s19] ss:$12 sps:$4 sm:$0xff]  }
 0x16b   : > { %v799_v9 = vadd.f32 %v793_v8, %v792_v6  ;;  %v5393_v12 = vld [vmem:[%s6732_s19 + $0x1c] ss:$12 sps:$4 sm:$0xff]   ;;  %1245 = vmatprep.subr.bf16.mxu0 %v5390_v10  ;;  %v5395_v13 = vld [vmem:[%s6732_s19 + $0x18] ss:$12 sps:$4 sm:$0xff]   ;;  %v5396_v14 = vld [vmem:[%s6732_s19 + $0x34] ss:$12 sps:$4 sm:$0xff]  }
 0x16c   : > { %797 = vadd.xlane.f32.xlu0 %v796_v7  ;;  %1246 = vmatpush1.bf16.msra.mxu0 %v5392_v11  ;;  %v5398_v15 = vld [vmem:[%s6732_s19 + $0x30] ss:$12 sps:$4 sm:$0xff]   ;;  %v5399_v16 = vld [vmem:[%s6732_s19 + $0x4c] ss:$12 sps:$4 sm:$0xff]   ;;  %v5401_v17 = vld [vmem:[%s6732_s19 + $0x48] ss:$12 sps:$4 sm:$0xff]  }
 0x16d   : > { %1247 = vmatprep.subr.bf16.mxu0 %v5393_v12  ;;  %v5402_v18 = vld [vmem:[%s6732_s19 + $0x64] ss:$12 sps:$4 sm:$0xff]   ;;  %v5404_v19 = vld [vmem:[%s6732_s19 + $0x60] ss:$12 sps:$4 sm:$0xff]   ;;  %v5405_v20 = vld [vmem:[%s6732_s19 + $0x7c] ss:$12 sps:$4 sm:$0xff]  }
 0x16e   : > { %v5407_v21 = vld [vmem:[%s6732_s19 + $0x78] ss:$12 sps:$4 sm:$0xff]   ;;  %v5408_v22 = vld [vmem:[%s6732_s19 + $0x94] ss:$12 sps:$4 sm:$0xff]   ;;  %v5410_v23 = vld [vmem:[%s6732_s19 + $0x90] ss:$12 sps:$4 sm:$0xff]  }
 0x16f   : > { %v5411_v24 = vld [vmem:[%s6732_s19 + $0xac] ss:$12 sps:$4 sm:$0xff]   ;;  %v5413_v25 = vld [vmem:[%s6732_s19 + $0xa8] ss:$12 sps:$4 sm:$0xff]   ;;  %v5414_v26 = vld [vmem:[%s6732_s19 + $0xc4] ss:$12 sps:$4 sm:$0xff]  }
 0x170   : > { %800 = vadd.xlane.f32.xlu0 %v799_v9  ;;  %1248 = vmatpush1.bf16.msra.mxu0 %v5395_v13  ;;  %v5416_v27 = vld [vmem:[%s6732_s19 + $0xc0] ss:$12 sps:$4 sm:$0xff]   ;;  %v5417_v28 = vld [vmem:[%s6732_s19 + $0xdc] ss:$12 sps:$4 sm:$0xff]   ;;  %v5419_v43 = vld [vmem:[%s6732_s19 + $0xd8] ss:$12 sps:$4 sm:$0xff]  }
 0x171   : > { %1249 = vmatprep.subr.bf16.mxu0 %v5396_v14  ;;  %v5420_v44 = vld [vmem:[%s6732_s19 + $0xf4] ss:$12 sps:$4 sm:$0xff]   ;;  %v5422_v45 = vld [vmem:[%s6732_s19 + $0xf0] ss:$12 sps:$4 sm:$0xff]   ;;  %v5423_v46 = vld [vmem:[%s6732_s19 + $0x10c] ss:$12 sps:$4 sm:$0xff]  }
 0x172   : > { %v5425_v47 = vld [vmem:[%s6732_s19 + $0x108] ss:$12 sps:$4 sm:$0xff]   ;;  %v5426_v48 = vld [vmem:[%s6732_s19 + $0x124] ss:$12 sps:$4 sm:$0xff]   ;;  %v5428_v49 = vld [vmem:[%s6732_s19 + $0x120] ss:$12 sps:$4 sm:$0xff]  }
 0x173   : > { %v5429_v50 = vld [vmem:[%s6732_s19 + $0x13c] ss:$12 sps:$4 sm:$0xff]   ;;  %v5431_v51 = vld [vmem:[%s6732_s19 + $0x138] ss:$12 sps:$4 sm:$0xff]   ;;  %v5432_v52 = vld [vmem:[%s6732_s19 + $0x154] ss:$12 sps:$4 sm:$0xff]  }
 0x174   : > { %1250 = vmatpush1.bf16.msra.mxu0 %v5398_v15  ;;  %v5434_v53 = vld [vmem:[%s6732_s19 + $0x150] ss:$12 sps:$4 sm:$0xff]   ;;  %v5435_v54 = vld [vmem:[%s6732_s19 + $0x16c] ss:$12 sps:$4 sm:$0xff]   ;;  %v5437_v55 = vld [vmem:[%s6732_s19 + $0x168] ss:$12 sps:$4 sm:$0xff]  }
 0x175   : > { %1251 = vmatprep.subr.bf16.mxu0 %v5399_v16  ;;  %v5438_v56 = vld [vmem:[%s6732_s19 + $0xc8] ss:$12 sps:$4 sm:$0xff]   ;;  %v6821_v0 = vshrl.u32 %v830_v61, 7  ;;  %v794_v3 = vld [vmem:[%s760_s17] sm:$0x3] }
 0x176   : > { %v795_v7 = vld [vmem:[%s764_s25] sm:$0x3]  ;;  %v5484_v61 = vld [vmem:[%s6732_s19 + $0x270] ss:$12 sps:$4 sm:$0xff]  }
 0x177   : > { %v6824_v1 = vsub.s32 1, %v6821_v0  ;;  %v6827_v2 = vsub.s32 0, %v6821_v0 }
 0x178   : > { %1252 = vmatpush1.bf16.msra.mxu0 %v5401_v17 }
 0x179   : > { %1253 = vmatprep.subr.bf16.mxu0 %v5402_v18  ;;  %v833_v9 = vrot.slane %v794_v3, %v6827_v2  ;;  %v852_v11 = vrot.slane %v795_v7, %v6824_v1  ;;  %v848_v12 = vrot.slane %v795_v7, %v6827_v2  ;;  %v5498_v7 = vld [vmem:[%s6732_s19 + $0x2d4] ss:$12 sps:$4 sm:$0xff]  }
 0x17c   : > { %1254 = vmatpush1.bf16.msra.mxu0 %v5404_v19 }
 0x17d   : > { %1255 = vmatprep.subr.bf16.mxu0 %v5405_v20 }
 0x180   : > { %1256 = vmatpush1.bf16.msra.mxu0 %v5407_v21 }
 0x181   : > { %1257 = vmatprep.subr.bf16.mxu0 %v5408_v22 }
 0x184   : > { %1258 = vmatpush1.bf16.msra.mxu0 %v5410_v23 }
 0x185   : > { %1259 = vmatprep.subr.bf16.mxu0 %v5411_v24 }
 0x188   : > { %1260 = vmatpush1.bf16.msra.mxu0 %v5413_v25  ;;  %v5439_v25 = vld [vmem:[%s6732_s19 + $0x8] ss:$12 sps:$4 sm:$0xff]  }
 0x189   : > { %1261 = vmatprep.subr.bf16.mxu0 %v5414_v26  ;;  %v5440_v26 = vld [vmem:[%s6732_s19 + $0xe0] ss:$12 sps:$4 sm:$0xff]  }
 0x18c   : > { %1262 = vmatpush1.bf16.msra.mxu0 %v5416_v27  ;;  %v5441_v27 = vld [vmem:[%s6732_s19 + $0x20] ss:$12 sps:$4 sm:$0xff]  }
 0x18d   : > { %1263 = vmatprep.subr.bf16.mxu0 %v5417_v28  ;;  %v5442_v28 = vld [vmem:[%s6732_s19 + $0xf8] ss:$12 sps:$4 sm:$0xff]  }
 0x190   : > { %1264 = vmatpush1.bf16.msra.mxu0 %v5419_v43  ;;  %v5457_v43 = vld [vmem:[%s6732_s19 + $0x198] ss:$12 sps:$4 sm:$0xff]  }
 0x191   : > { %1265 = vmatprep.subr.bf16.mxu0 %v5420_v44  ;;  %v5462_v44 = vld [vmem:[%s6732_s19 + $0x1b4] ss:$12 sps:$4 sm:$0xff]  }
 0x194   : > { %1266 = vmatpush1.bf16.msra.mxu0 %v5422_v45  ;;  %v5460_v45 = vld [vmem:[%s6732_s19 + $0x1b0] ss:$12 sps:$4 sm:$0xff]  }
 0x195   : > { %1267 = vmatprep.subr.bf16.mxu0 %v5423_v46  ;;  %v5465_v46 = vld [vmem:[%s6732_s19 + $0x1cc] ss:$12 sps:$4 sm:$0xff]  }
 0x198   : > { %1268 = vmatpush1.bf16.msra.mxu0 %v5425_v47  ;;  %v5463_v47 = vld [vmem:[%s6732_s19 + $0x1c8] ss:$12 sps:$4 sm:$0xff]  }
 0x199   : > { %1269 = vmatprep.subr.bf16.mxu0 %v5426_v48  ;;  %v5468_v48 = vld [vmem:[%s6732_s19 + $0x1e4] ss:$12 sps:$4 sm:$0xff]  }
 0x19c   : > { %1270 = vmatpush1.bf16.msra.mxu0 %v5428_v49  ;;  %v5466_v49 = vld [vmem:[%s6732_s19 + $0x1e0] ss:$12 sps:$4 sm:$0xff]  }
 0x19d   : > { %1271 = vmatprep.subr.bf16.mxu0 %v5429_v50  ;;  %v5471_v50 = vld [vmem:[%s6732_s19 + $0x1fc] ss:$12 sps:$4 sm:$0xff]  }
 0x1a0   : > { %1272 = vmatpush1.bf16.msra.mxu0 %v5431_v51  ;;  %v5469_v51 = vld [vmem:[%s6732_s19 + $0x1f8] ss:$12 sps:$4 sm:$0xff]  }
 0x1a1   : > { %1273 = vmatprep.subr.bf16.mxu0 %v5432_v52  ;;  %v5474_v52 = vld [vmem:[%s6732_s19 + $0x214] ss:$12 sps:$4 sm:$0xff]  }
 0x1a4   : > { %1274 = vmatpush1.bf16.msra.mxu0 %v5434_v53  ;;  %v5472_v53 = vld [vmem:[%s6732_s19 + $0x210] ss:$12 sps:$4 sm:$0xff]  }
 0x1a5   : > { %1275 = vmatprep.subr.bf16.mxu0 %v5435_v54  ;;  %v5477_v54 = vld [vmem:[%s6732_s19 + $0x22c] ss:$12 sps:$4 sm:$0xff]  }
 0x1a8   : > { %1276 = vmatpush1.bf16.msra.mxu0 %v5437_v55  ;;  %v5475_v55 = vld [vmem:[%s6732_s19 + $0x228] ss:$12 sps:$4 sm:$0xff]  }
 0x1a9   : > { %5129 = vmatprep.subr.bf16.mxu0 %v5438_v56  ;;  %v5480_v56 = vld [vmem:[%s6732_s19 + $0x244] ss:$12 sps:$4 sm:$0xff]  }
 0x1f9   : > { %v798_v29 = vpop.xlane.xlu0 %797 }
 0x1fa   : > { %v803_v30 = vmul.f32 0.00390625, %v798_v29  ;;  %v5443_v29 = vld [vmem:[%s6732_s19 + $0x38] ss:$12 sps:$4 sm:$0xff]  }
 0x1fc   : > { %v805_v31 = vsub.f32 %v790_v4, %v803_v30  ;;  %v806_v32 = vsub.f32 %v791_v5, %v803_v30  ;;  %v5444_v30 = vld [vmem:[%s6732_s19 + $0x110] ss:$12 sps:$4 sm:$0xff]  }
 0x1fd   : > { %v801_v33 = vpop.xlane.xlu0 %800 }
 0x1fe   : > { %v804_v34 = vmul.f32 0.00390625, %v801_v33  ;;  %v809_v35 = vmul.f32 %v805_v31, %v805_v31  ;;  %v810_v36 = vmul.f32 %v806_v32, %v806_v32  ;;  %v5447_v33 = vld [vmem:[%s6732_s19 + $0x68] ss:$12 sps:$4 sm:$0xff]  }
 0x200   : > { %v807_v37 = vsub.f32 %v792_v6, %v804_v34  ;;  %v808_v38 = vsub.f32 %v793_v8, %v804_v34  ;;  %v813_v39 = vadd.f32 %v810_v36, %v809_v35  ;;  %v837_v8 = vrot.slane %v794_v3, %v6824_v1  ;;  %v5448_v34 = vld [vmem:[%s6732_s19 + $0x140] ss:$12 sps:$4 sm:$0xff]   ;;  %v5450_v36 = vld [vmem:[%s6732_s19 + $0x158] ss:$12 sps:$4 sm:$0xff]  }
 0x201   : > { %v5449_v35 = vld [vmem:[%s6732_s19 + $0x80] ss:$12 sps:$4 sm:$0xff]   ;;  %v5492_v3 = vld [vmem:[%s6732_s19 + $0x2a4] ss:$12 sps:$4 sm:$0xff]  }
 0x202   : > { %814 = vadd.xlane.f32.xlu1 %v813_v39  ;;  %v811_v40 = vmul.f32 %v807_v37, %v807_v37  ;;  %v812_v41 = vmul.f32 %v808_v38, %v808_v38  ;;  %v5453_v39 = vld [vmem:[%s6732_s19 + $0xb0] ss:$12 sps:$4 sm:$0xff]  }
 0x204   : > { %v816_v42 = vadd.f32 %v812_v41, %v811_v40  ;;  %v5456_v40 = vld [vmem:[%s6732_s19 + $0x184] ss:$12 sps:$4 sm:$0xff]   ;;  %v5454_v41 = vld [vmem:[%s6732_s19 + $0x180] ss:$12 sps:$4 sm:$0xff]  }
 0x206   : > { %817 = vadd.xlane.f32.xlu1 %v816_v42  ;;  %v5459_v42 = vld [vmem:[%s6732_s19 + $0x19c] ss:$12 sps:$4 sm:$0xff]  }
 0x28f   : > { %v815_v57 = vpop.xlane.xlu1 %814 }
 0x290   : > { %v819_v58 = vmul.f32 0.00390625, %v815_v57  ;;  %v5478_v57 = vld [vmem:[%s6732_s19 + $0x240] ss:$12 sps:$4 sm:$0xff]  }
 0x292   : > { %v821_v59 = vadd.f32 1e-05, %v819_v58  ;;  %v5483_v58 = vld [vmem:[%s6732_s19 + $0x25c] ss:$12 sps:$4 sm:$0xff]  }
 0x293   : > { %v818_v60 = vpop.xlane.xlu1 %817 }
 0x294   : > { %5758 = vrsqrt.f32 %v821_v59  ;;  %v820_v62 = vmul.f32 0.00390625, %v818_v60  ;;  %v5481_v59 = vld [vmem:[%s6732_s19 + $0x258] ss:$12 sps:$4 sm:$0xff]   ;;  %v5486_v60 = vld [vmem:[%s6732_s19 + $0x274] ss:$12 sps:$4 sm:$0xff]  }
 0x296   : > { %v822_v63 = vadd.f32 1e-05, %v820_v62  ;;  %v5489_v62 = vld [vmem:[%s6732_s19 + $0x28c] ss:$12 sps:$4 sm:$0xff]  }
 0x298   : > { %5760 = vrsqrt.f32 %v822_v63  ;;  %v5487_v63 = vld [vmem:[%s6732_s19 + $0x288] ss:$12 sps:$4 sm:$0xff]  }
 0x29e   : > { %v5759_v4 = vpop.eup %5758 }
 0x29f   : > { %v825_v5 = vmul.f32 %v5759_v4, %v805_v31  ;;  %v826_v6 = vmul.f32 %v5759_v4, %v806_v32  ;;  %v5445_v31 = vld [vmem:[%s6732_s19 + $0x50] ss:$12 sps:$4 sm:$0xff]   ;;  %v5446_v32 = vld [vmem:[%s6732_s19 + $0x128] ss:$12 sps:$4 sm:$0xff]   ;;  %v5490_v4 = vld [vmem:[%s6732_s19 + $0x2a0] ss:$12 sps:$4 sm:$0xff]  }
 0x2a1   : > { %v841_v15 = vmul.f32 %v837_v8, %v826_v6  ;;  %v840_v16 = vmul.f32 %v833_v9, %v825_v5  ;;  %v5495_v5 = vld [vmem:[%s6732_s19 + $0x2bc] ss:$12 sps:$4 sm:$0xff]   ;;  %v5493_v6 = vld [vmem:[%s6732_s19 + $0x2b8] ss:$12 sps:$4 sm:$0xff]  }
 0x2a2   : > { %v5761_v10 = vpop.eup %5760 }
 0x2a3   : > { %v827_v13 = vmul.f32 %v5761_v10, %v807_v37  ;;  %v828_v14 = vmul.f32 %v5761_v10, %v808_v38  ;;  %v856_v19 = vadd.f32 %v852_v11, %v841_v15  ;;  %v855_v21 = vadd.f32 %v848_v12, %v840_v16  ;;  %v5451_v37 = vld [vmem:[%s6732_s19 + $0x98] ss:$12 sps:$4 sm:$0xff]   ;;  %v5452_v38 = vld [vmem:[%s6732_s19 + $0x170] ss:$12 sps:$4 sm:$0xff]   ;;  %v5499_v10 = vld [vmem:[%s6732_s19 + $0x2e8] ss:$12 sps:$4 sm:$0xff]  }
 0x2a4   : > { %v5506_v15 = vld [vmem:[%s6732_s19 + $0x278] ss:$12 sps:$4 sm:$0xff]  }
 0x2a5   : > { %v843_v17 = vmul.f32 %v837_v8, %v828_v14  ;;  %v842_v18 = vmul.f32 %v833_v9, %v827_v13  ;;  %v5496_v8 = vld [vmem:[%s6732_s19 + $0x2d0] ss:$12 sps:$4 sm:$0xff]   ;;  %v5501_v9 = vld [vmem:[%s6732_s19 + $0x2ec] ss:$12 sps:$4 sm:$0xff]  }
 0x2a6   : > { %v5504_v13 = vld [vmem:[%s6732_s19 + $0x260] ss:$12 sps:$4 sm:$0xff]   ;;  %v5507_v16 = vld [vmem:[%s6732_s19 + $0x1b8] ss:$12 sps:$4 sm:$0xff]  }
 0x2a7   : > { %v858_v20 = vadd.f32 %v852_v11, %v843_v17  ;;  %v857_v22 = vadd.f32 %v848_v12, %v842_v18  ;;  %v5502_v11 = vld [vmem:[%s6732_s19 + $0x248] ss:$12 sps:$4 sm:$0xff]   ;;  %v5505_v14 = vld [vmem:[%s6732_s19 + $0x1a0] ss:$12 sps:$4 sm:$0xff]   ;;  %v5508_v17 = vld [vmem:[%s6732_s19 + $0x290] ss:$12 sps:$4 sm:$0xff]  }
 0x2a8   : > { %v5503_v12 = vld [vmem:[%s6732_s19 + $0x188] ss:$12 sps:$4 sm:$0xff]   ;;  %v5509_v18 = vld [vmem:[%s6732_s19 + $0x1d0] ss:$12 sps:$4 sm:$0xff]  }
 0x2a9   : > { %v6843_v23 = vpack.c.bf16 %v858_v20, %v856_v19  ;;  %v6845_v24 = vpack.c.bf16 %v857_v22, %v855_v21  ;;  %v5510_v19 = vld [vmem:[%s6732_s19 + $0x2a8] ss:$12 sps:$4 sm:$0xff]   ;;  %v5512_v21 = vld [vmem:[%s6732_s19 + $0x2c0] ss:$12 sps:$4 sm:$0xff]  }
 0x2aa   : > { %v5511_v20 = vld [vmem:[%s6732_s19 + $0x1e8] ss:$12 sps:$4 sm:$0xff]   ;;  %v5513_v22 = vld [vmem:[%s6732_s19 + $0x200] ss:$12 sps:$4 sm:$0xff]  }
 0x2ab   : > { %1277 = vmatprep.mubr.bf16.mxu0 %v6843_v23 }
 0x2ac   : > { %1278 = vmatmul.mubr.bf16.vlgmr.msra.gmra.mrb[0].mxu0 %v6845_v24 }
 0x2ad   : > { %5130 = vmatpush3.bf16.msra.mxu0 %v5439_v25  ;;  %1320 = vmatprep.mubr.bf16.mxu0 %v6843_v23  ;;  %v5515_v25 = vld [vmem:[%s6732_s19 + $0x218] ss:$12 sps:$4 sm:$0xff]  }
 0x2ae   : > { %5131 = vmatprep.subr.bf16.mxu0 %v5440_v26  ;;  %v5516_v26 = vld [vmem:[%s6732_s19 + $0x2f0] ss:$12 sps:$4 sm:$0xff]  }
 0x2b1   : > { %5132 = vmatpush3.bf16.msra.mxu0 %v5441_v27  ;;  %v5517_v27 = vld [vmem:[%s6732_s19 + $0x230] ss:$12 sps:$4 sm:$0xff]  }
 0x2b2   : > { %5133 = vmatprep.subr.bf16.mxu0 %v5442_v28  ;;  %v6210_v28 = vmov 0.0  }
 0x2b3   : > { %5187 = vmatprep.subr.bf16.mxu1 %v6210_v28  ;;  %5189 = vmatprep.mubr.msk.bf16.mxu1 %vm6212_vm0, %v6210_v28 }
 0x2b5   : > { %5134 = vmatpush3.bf16.msra.mxu0 %v5443_v29 }
 0x2b6   : > { %5135 = vmatprep.subr.bf16.mxu0 %v5444_v30 }
 0x2b9   : > { %5136 = vmatpush3.bf16.msra.mxu0 %v5445_v31 }
 0x2ba   : > { %5137 = vmatprep.subr.bf16.mxu0 %v5446_v32 }
 0x2bd   : > { %5138 = vmatpush3.bf16.msra.mxu0 %v5447_v33 }
 0x2be   : > { %5139 = vmatprep.subr.bf16.mxu0 %v5448_v34 }
 0x2c1   : > { %5140 = vmatpush3.bf16.msra.mxu0 %v5449_v35 }
 0x2c2   : > { %5141 = vmatprep.subr.bf16.mxu0 %v5450_v36 }
 0x2c5   : > { %5142 = vmatpush3.bf16.msra.mxu0 %v5451_v37 }
 0x2c6   : > { %5143 = vmatprep.subr.bf16.mxu0 %v5452_v38 }
 0x2c9   : > { %5144 = vmatpush3.bf16.msra.mxu0 %v5453_v39 }
 0x2ca   : > { %1585 = vmatprep.subr.bf16.mxu0 %v5456_v40 }
 0x2cc   : > { %1321 = vmatmul.mubr.bf16.vlgmr.msra.gmra.mrb[4].mxu0 %v6845_v24 }
 0x2cd   : > { %1586 = vmatpush1.bf16.msra.mxu0 %v5454_v41  ;;  %1617 = vmatprep.mubr.bf16.mxu0 %v6843_v23 }
 0x2ce   : > { %1587 = vmatprep.subr.bf16.mxu0 %v5459_v42 }
 0x2d1   : > { %1588 = vmatpush1.bf16.msra.mxu0 %v5457_v43  ;;  %v1671_v43 = vld [vmem:[#allocation8] sm:$0xff] }
 0x2d2   : > { %1589 = vmatprep.subr.bf16.mxu0 %v5462_v44  ;;  %v1669_v44 = vld [vmem:[#allocation6] sm:$0xff] }
 0x2d5   : > { %1590 = vmatpush1.bf16.msra.mxu0 %v5460_v45  ;;  %v1670_v45 = vld [vmem:[#allocation6 + $0x8] sm:$0xff] }
 0x2d6   : > { %1591 = vmatprep.subr.bf16.mxu0 %v5465_v46 }
 0x2d9   : > { %1592 = vmatpush1.bf16.msra.mxu0 %v5463_v47  ;;  %v1672_v47 = vld [vmem:[#allocation8 + $0x8] sm:$0xff] }
 0x2da   : > { %1593 = vmatprep.subr.bf16.mxu0 %v5468_v48 }
 0x2dd   : > { %1594 = vmatpush1.bf16.msra.mxu0 %v5466_v49 }
 0x2de   : > { %1595 = vmatprep.subr.bf16.mxu0 %v5471_v50 }
 0x2e1   : > { %1596 = vmatpush1.bf16.msra.mxu0 %v5469_v51 }
 0x2e2   : > { %1597 = vmatprep.subr.bf16.mxu0 %v5474_v52 }
 0x2e5   : > { %1598 = vmatpush1.bf16.msra.mxu0 %v5472_v53 }
 0x2e6   : > { %1599 = vmatprep.subr.bf16.mxu0 %v5477_v54 }
 0x2e9   : > { %1600 = vmatpush1.bf16.msra.mxu0 %v5475_v55 }
 0x2ea   : > { %1601 = vmatprep.subr.bf16.mxu0 %v5480_v56 }
 0x2ed   : > { %1602 = vmatpush1.bf16.msra.mxu0 %v5478_v57 }
 0x2ee   : > { %1603 = vmatprep.subr.bf16.mxu0 %v5483_v58 }
 0x2f1   : > { %1604 = vmatpush1.bf16.msra.mxu0 %v5481_v59 }
 0x2f2   : > { %1605 = vmatprep.subr.bf16.mxu0 %v5486_v60 }
 0x2f5   : > { %1606 = vmatpush1.bf16.msra.mxu0 %v5484_v61 }
 0x2f6   : > { %1607 = vmatprep.subr.bf16.mxu0 %v5489_v62 }
 0x2f9   : > { %1608 = vmatpush1.bf16.msra.mxu0 %v5487_v63 }
 0x2fa   : > { %1609 = vmatprep.subr.bf16.mxu0 %v5492_v3 }
 0x2fd   : > { %1610 = vmatpush1.bf16.msra.mxu0 %v5490_v4 }
 0x2fe   : > { %1611 = vmatprep.subr.bf16.mxu0 %v5495_v5 }
 0x301   : > { %1612 = vmatpush1.bf16.msra.mxu0 %v5493_v6 }
 0x302   : > { %1613 = vmatprep.subr.bf16.mxu0 %v5498_v7 }
 0x305   : > { %1614 = vmatpush1.bf16.msra.mxu0 %v5496_v8 }
 0x306   : > { %1615 = vmatprep.subr.bf16.mxu0 %v5501_v9 }
 0x309   : > { %1616 = vmatpush1.bf16.msra.mxu0 %v5499_v10 }
 0x30a   : > { %5151 = vmatprep.subr.bf16.mxu0 %v5502_v11 }
 0x30c   : > { %1618 = vmatmul.mubr.bf16.vlgmr.msra.gmra.mrb[8].mxu0 %v6845_v24 }
 0x30d   : > { %5152 = vmatpush3.bf16.msra.mxu0 %v5503_v12  ;;  %1660 = vmatprep.mubr.bf16.mxu0 %v6843_v23  ;;  %v5514_v23 = vld [vmem:[%s6732_s19 + $0x2d8] ss:$12 sps:$4 sm:$0xff]  }
 0x30e   : > { %5153 = vmatprep.subr.bf16.mxu0 %v5504_v13 }
 0x311   : > { %5154 = vmatpush3.bf16.msra.mxu0 %v5505_v14 }
 0x312   : > { %5155 = vmatprep.subr.bf16.mxu0 %v5506_v15 }
 0x315   : > { %5156 = vmatpush3.bf16.msra.mxu0 %v5507_v16 }
 0x316   : > { %5157 = vmatprep.subr.bf16.mxu0 %v5508_v17 }
 0x319   : > { %5158 = vmatpush3.bf16.msra.mxu0 %v5509_v18 }
 0x31a   : > { %5159 = vmatprep.subr.bf16.mxu0 %v5510_v19 }
 0x31d   : > { %5160 = vmatpush3.bf16.msra.mxu0 %v5511_v20 }
 0x31e   : > { %5161 = vmatprep.subr.bf16.mxu0 %v5512_v21 }
 0x321   : > { %5162 = vmatpush3.bf16.msra.mxu0 %v5513_v22 }
 0x322   : > { %5163 = vmatprep.subr.bf16.mxu0 %v5514_v23 }
 0x325   : > { %5164 = vmatpush3.bf16.msra.mxu0 %v5515_v25 }
 0x326   : > { %5165 = vmatprep.subr.bf16.mxu0 %v5516_v26 }
 0x329   : > { %5166 = vmatpush3.bf16.msra.mxu0 %v5517_v27 }
 0x32a   : > { %5181 = vmatprep.subr.bf16.mxu0 %v6210_v28 }
 0x32c   : > { %1661 = vmatmul.mubr.bf16.vlgmr.msra.gmra.mrb[12].mxu0 %v6845_v24 }
 0x32d   : > { %5183 = vmatprep.mubr.msk.bf16.mxu0 %vm6212_vm0, %v6210_v28 }
 0x37f   : > { %v1279_v29 = vpop.f32.mrb[0].mxu0 }
 0x380   : > { %v1281_v30 = vpop.f32.mrb[1].mxu0  ;;  %v1689_v59 = vmul.f32 %v1669_v44, %v1279_v29 }
 0x381   : > { %1705 = vrot.lane.b32.xlu0 %v1281_v30, %s6211_s13  ;;  %v1283_v31 = vpop.f32.mrb[2].mxu0  ;;  %v1717_v50 = vmul.f32 %v1669_v44, %v1281_v30 }
 0x382   : > { %v1285_v32 = vpop.f32.mrb[3].mxu0  ;;  %v1690_v60 = vmul.f32 %v1670_v45, %v1283_v31 }
 0x383   : > { %1707 = vrot.lane.b32.xlu1 %v1285_v32, %s6211_s13  ;;  %v1718_v51 = vmul.f32 %v1670_v45, %v1285_v32 }
 0x387   : > { %1677 = vrot.lane.b32.xlu1 %v1279_v29, %s6211_s13 }
 0x38b   : > { %1679 = vrot.lane.b32.xlu1 %v1283_v31, %s6211_s13 }
 0x39f   : > { %v5145_v24 = vpop.f32.mrb[4].mxu0 }
 0x3a0   : > { %v5146_v33 = vpop.f32.mrb[5].mxu0 }
 0x3a1   : > { %v5147_v34 = vadd.f32 %v5146_v33, %v5145_v24  ;;  %v5148_v35 = vpop.f32.mrb[6].mxu0 }
 0x3a2   : > { %v5149_v36 = vpop.f32.mrb[7].mxu0 }
 0x3a3   : > { %v5150_v37 = vadd.f32 %v5149_v36, %v5148_v35 }
 0x3a5   : > { %v1862_v38 = vpack.c.bf16 %v5150_v37, %v5147_v34 }
 0x3df   : > { %v1619_v39 = vpop.f32.mrb[8].mxu0 }
 0x3e0   : > { %v1621_v40 = vpop.f32.mrb[9].mxu0  ;;  %v1691_v22 = vmul.f32 %v1669_v44, %v1619_v39 }
 0x3e1   : > { %1709 = vrot.lane.b32.xlu0 %v1621_v40, %s6211_s13  ;;  %v1623_v41 = vpop.f32.mrb[10].mxu0  ;;  %v1719_v14 = vmul.f32 %v1669_v44, %v1621_v40 }
 0x3e2   : > { %v1625_v42 = vpop.f32.mrb[11].mxu0  ;;  %v1692_v23 = vmul.f32 %v1670_v45, %v1623_v41 }
 0x3e3   : > { %1711 = vrot.lane.b32.xlu1 %v1625_v42, %s6211_s13  ;;  %v1720_v15 = vmul.f32 %v1670_v45, %v1625_v42 }
 0x3e5   : > { %1681 = vrot.lane.b32.xlu0 %v1619_v39, %s6211_s13 }
 0x3e7   : > { %1683 = vrot.lane.b32.xlu1 %v1623_v41, %s6211_s13 }
 0x3f3   : > { %v1706_v46 = vpop.permute.xlu0 %1705 }
 0x3f4   : > { %v1721_v48 = vmul.f32 %v1706_v46, %v1671_v43 }
 0x3f5   : > { %v1708_v49 = vpop.permute.xlu1 %1707 }
 0x3f6   : > { %v1722_v52 = vmul.f32 %v1708_v49, %v1672_v47  ;;  %v1725_v53 = vadd.f32 %v1721_v48, %v1717_v50 }
 0x3f8   : > { %v1726_v54 = vadd.f32 %v1722_v52, %v1718_v51 }
 0x3f9   : > { %v1678_v55 = vpop.permute.xlu1 %1677 }
 0x3fa   : > { %v1731_v56 = vpack.c.bf16 %v1726_v54, %v1725_v53  ;;  %v1693_v57 = vmul.f32 %v1678_v55, %v1671_v43 }
 0x3fc   : > { %5182 = vmatpush3.bf16.xpose.msra.mxu0 %v1731_v56  ;;  %v1697_v63 = vadd.f32 %v1693_v57, %v1689_v59 }
 0x3fd   : > { %v1680_v58 = vpop.permute.xlu1 %1679  ;;  %5193 = vmatprep.subr.bf16.mxu0 %v6210_v28 }
 0x3fe   : > { %v1694_v61 = vmul.f32 %v1680_v58, %v1672_v47 }
 0x3ff   : > { %v5167_v62 = vpop.f32.mrb[12].mxu0 }
 0x400   : > { %v1698_v3 = vadd.f32 %v1694_v61, %v1690_v60  ;;  %v5168_v4 = vpop.f32.mrb[13].mxu0  ;;  %v5520_v61 = vld [vmem:[%s6738_s24 + $0x4] ss:$8 sps:$4 sm:$0xff]  }
 0x401   : > { %v5169_v5 = vadd.f32 %v5168_v4, %v5167_v62  ;;  %v5170_v6 = vpop.f32.mrb[14].mxu0 }
 0x402   : > { %v1729_v7 = vpack.c.bf16 %v1698_v3, %v1697_v63  ;;  %v5171_v8 = vpop.f32.mrb[15].mxu0 }
 0x403   : > { %v5172_v9 = vadd.f32 %v5171_v8, %v5170_v6 }
 0x404   : > { %5184 = vmatmul.mubr.bf16.vlgmr.msra.gmra.mrb[16].mxu0 %v1729_v7  ;;  %v5518_v7 = vld [vmem:[%s6738_s24] ss:$8 sps:$4 sm:$0xff]  }
 0x405   : > { %v1863_v10 = vpack.c.bf16 %v5172_v9, %v5169_v5  ;;  %5194 = vmatpush3.bf16.msra.mxu0 %v1862_v38  ;;  %5195 = vmatprep.mubr.msk.bf16.mxu0 %vm6212_vm0, %v6210_v28  ;;  %v5523_v9 = vld [vmem:[%s6738_s24 + $0x14] ss:$8 sps:$4 sm:$0xff]  }
 0x406   : > { %2066 = vmatprep.subr.bf16.mxu0 %v5520_v61  ;;  %v5815_v61 = vld [vmem:[#allocation2 + $0x8] sm:$0xff] }
 0x453   : > { %v1710_v11 = vpop.permute.xlu0 %1709 }
 0x454   : > { %v1723_v12 = vmul.f32 %v1710_v11, %v1671_v43  ;;  %v5526_v11 = vld [vmem:[%s6738_s24 + $0x24] ss:$8 sps:$4 sm:$0xff]  }
 0x455   : > { %v1712_v13 = vpop.permute.xlu1 %1711 }
 0x456   : > { %v1724_v16 = vmul.f32 %v1712_v13, %v1672_v47  ;;  %v1727_v18 = vadd.f32 %v1723_v12, %v1719_v14  ;;  %v5524_v12 = vld [vmem:[%s6738_s24 + $0x20] ss:$8 sps:$4 sm:$0xff]   ;;  %v5529_v13 = vld [vmem:[%s6738_s24 + $0x34] ss:$8 sps:$4 sm:$0xff]   ;;  %v5527_v14 = vld [vmem:[%s6738_s24 + $0x30] ss:$8 sps:$4 sm:$0xff]  }
 0x457   : > { %v1682_v17 = vpop.permute.xlu0 %1681 }
 0x458   : > { %v1728_v19 = vadd.f32 %v1724_v16, %v1720_v15  ;;  %v1695_v20 = vmul.f32 %v1682_v17, %v1671_v43  ;;  %v5532_v15 = vld [vmem:[%s6738_s24 + $0x44] ss:$8 sps:$4 sm:$0xff]   ;;  %v5530_v16 = vld [vmem:[%s6738_s24 + $0x40] ss:$8 sps:$4 sm:$0xff]   ;;  %v5535_v17 = vld [vmem:[%s6738_s24 + $0x54] ss:$8 sps:$4 sm:$0xff]  }
 0x459   : > { %v1684_v21 = vpop.permute.xlu1 %1683 }
 0x45a   : > { %v1696_v25 = vmul.f32 %v1684_v21, %v1672_v47  ;;  %v1732_v26 = vpack.c.bf16 %v1728_v19, %v1727_v18  ;;  %v1699_v27 = vadd.f32 %v1695_v20, %v1691_v22  ;;  %v5533_v18 = vld [vmem:[%s6738_s24 + $0x50] ss:$8 sps:$4 sm:$0xff]   ;;  %v5538_v19 = vld [vmem:[%s6738_s24 + $0x64] ss:$8 sps:$4 sm:$0xff]   ;;  %v5536_v20 = vld [vmem:[%s6738_s24 + $0x60] ss:$8 sps:$4 sm:$0xff]  }
 0x45c   : > { %v1700_v29 = vadd.f32 %v1696_v25, %v1692_v23  ;;  %5188 = vmatpush3.bf16.xpose.msra.mxu1 %v1732_v26  ;;  %v5541_v23 = vld [vmem:[%s6738_s24 + $0x74] ss:$8 sps:$4 sm:$0xff]   ;;  %v5539_v25 = vld [vmem:[%s6738_s24 + $0x70] ss:$8 sps:$4 sm:$0xff]   ;;  %v6213_v26 = vmov 0  }
 0x45d   : > { %5199 = vmatprep.subr.bf16.mxu1 %v6210_v28 }
 0x45e   : > { %v1730_v30 = vpack.c.bf16 %v1700_v29, %v1699_v27  ;;  %v5544_v27 = vld [vmem:[%s6738_s24 + $0x84] ss:$8 sps:$4 sm:$0xff]  }
 0x463   : > { %5190 = vmatmul.mubr.bf16.vlgmr.msra.gmra.mrb[0].mxu1 %v1730_v30 }
 0x464   : > { %5200 = vmatpush3.bf16.msra.mxu1 %v1863_v10  ;;  %5201 = vmatprep.mubr.msk.bf16.mxu1 %vm6212_vm0, %v6210_v28  ;;  %v5521_v10 = vld [vmem:[%s6738_s24 + $0x10] ss:$8 sps:$4 sm:$0xff]  }
 0x4d7   : > { %v1767_v31 = vpop.f32.mrb[16].mxu0 }
 0x4d8   : > { %v5185_v32 = vpop.f32.mrb[17].mxu0  ;;  %v1816_v24 = vsel %vm1815_vm1, %v1767_v31, -inf }
 0x4d9   : > { %1817 = vmax.xlane.f32.xlu0 %v1816_v24  ;;  %v1770_v33 = vpop.f32.mrb[18].mxu0 }
 0x4da   : > { %v5186_v34 = vpop.f32.mrb[19].mxu0  ;;  %v1819_v35 = vsel %vm1815_vm1, %v1770_v33, -inf }
 0x4db   : > { %1820 = vmax.xlane.f32.xlu1 %v1819_v35 }
 0x536   : > { %v1808_v36 = vpop.f32.mrb[0].mxu1 }
 0x537   : > { %v5191_v37 = vpop.f32.mrb[1].mxu1  ;;  %v1822_v38 = vsel %vm1815_vm1, %v1808_v36, -inf }
 0x538   : > { %v1811_v39 = vpop.f32.mrb[2].mxu1  ;;  %1823 = vmax.xlane.f32.xlu0 %v1822_v38 }
 0x539   : > { %v5192_v40 = vpop.f32.mrb[3].mxu1  ;;  %v1825_v28 = vsel %vm1815_vm1, %v1811_v39, -inf }
 0x53a   : > { %v5545_v40 = vld [vmem:[%s6738_s24 + $0x90] ss:$8 sps:$4 sm:$0xff]  }
 0x53c   : > { %1826 = vmax.xlane.f32.xlu0 %v1825_v28  ;;  %v5550_v28 = vld [vmem:[%s6738_s24 + $0xa4] ss:$8 sps:$4 sm:$0xff]  }
 0x566   : > { %v1818_v41 = vpop.xlane.xlu0 %1817 }
 0x567   : > { %v1828_v42 = vsub.f32 %v1767_v31, %v1818_v41  ;;  %v5548_v41 = vld [vmem:[%s6738_s24 + $0xa0] ss:$8 sps:$4 sm:$0xff]  }
 0x568   : > { %v1821_v43 = vpop.xlane.xlu1 %1820 }
 0x569   : > { %v1832_v44 = vmul.f32 1.442695, %v1828_v42  ;;  %v1829_v45 = vsub.f32 %v1770_v33, %v1821_v43  ;;  %v5553_v42 = vld [vmem:[%s6738_s24 + $0xb4] ss:$8 sps:$4 sm:$0xff]   ;;  %v5551_v43 = vld [vmem:[%s6738_s24 + $0xb0] ss:$8 sps:$4 sm:$0xff]  }
 0x56b   : > { %5762 = vpow2.f32 %v1832_v44  ;;  %v1834_v46 = vmul.f32 1.442695, %v1829_v45  ;;  %v5556_v44 = vld [vmem:[%s6738_s24 + $0xc4] ss:$8 sps:$4 sm:$0xff]   ;;  %v5554_v45 = vld [vmem:[%s6738_s24 + $0xc0] ss:$8 sps:$4 sm:$0xff]  }
 0x56d   : > { %5764 = vpow2.f32 %v1834_v46  ;;  %v5559_v46 = vld [vmem:[%s6738_s24 + $0xd4] ss:$8 sps:$4 sm:$0xff]  }
 0x575   : > { %v5763_v47 = vpop.eup %5762 }
 0x576   : > { %v1840_v48 = vsel %vm1815_vm1, %v5763_v47, 0.0 }
 0x577   : > { %v5765_v49 = vpop.eup %5764  ;;  %1841 = vadd.xlane.f32.xlu0 %v1840_v48  ;;  %v5562_v48 = vld [vmem:[%s6738_s24 + $0xe4] ss:$8 sps:$4 sm:$0xff]  }
 0x578   : > { %v1843_v50 = vsel %vm1815_vm1, %v5765_v49, 0.0 }
 0x579   : > { %1844 = vadd.xlane.f32.xlu1 %v1843_v50  ;;  %v5565_v50 = vld [vmem:[%s6738_s24 + $0xf4] ss:$8 sps:$4 sm:$0xff]  }
 0x5c5   : > { %v1824_v51 = vpop.xlane.xlu0 %1823 }
 0x5c6   : > { %v1830_v52 = vsub.f32 %v1808_v36, %v1824_v51  ;;  %v5542_v36 = vld [vmem:[%s6738_s24 + $0x80] ss:$8 sps:$4 sm:$0xff]   ;;  %v5563_v51 = vld [vmem:[%s6738_s24 + $0xf0] ss:$8 sps:$4 sm:$0xff]  }
 0x5c8   : > { %v1836_v53 = vmul.f32 1.442695, %v1830_v52 }
 0x5c9   : > { %v1827_v54 = vpop.xlane.xlu0 %1826 }
 0x5ca   : > { %5766 = vpow2.f32 %v1836_v53  ;;  %v1831_v55 = vsub.f32 %v1811_v39, %v1827_v54  ;;  %v5547_v39 = vld [vmem:[%s6738_s24 + $0x94] ss:$8 sps:$4 sm:$0xff]  }
 0x5cc   : > { %v1838_v56 = vmul.f32 1.442695, %v1831_v55 }
 0x5ce   : > { %5768 = vpow2.f32 %v1838_v56 }
 0x5d4   : > { %v5767_v57 = vpop.eup %5766 }
 0x5d5   : > { %v1846_v58 = vsel %vm1815_vm1, %v5767_v57, 0.0 }
 0x5d6   : > { %1847 = vadd.xlane.f32.xlu0 %v1846_v58  ;;  %v5814_v58 = vld [vmem:[#allocation2] sm:$0xff] }
 0x5d8   : > { %v5769_v59 = vpop.eup %5768 }
 0x5d9   : > { %v1849_v60 = vsel %vm1815_vm1, %v5769_v59, 0.0 }
 0x5da   : > { %1850 = vadd.xlane.f32.xlu1 %v1849_v60 }
 0x604   : > { %v1842_v62 = vpop.xlane.xlu0 %1841 }
 0x605   : > { %5770 = vrcp.f32 %v1842_v62 }
 0x606   : > { %v1845_v63 = vpop.xlane.xlu1 %1844 }
 0x607   : > { %5772 = vrcp.f32 %v1845_v63 }
 0x60f   : > { %v5771_v3 = vpop.eup %5770 }
 0x610   : > { %v1856_v5 = vmul.f32 %v5771_v3, %v5763_v47  ;;  %v5557_v47 = vld [vmem:[%s6738_s24 + $0xd0] ss:$8 sps:$4 sm:$0xff]  }
 0x611   : > { %v5773_v4 = vpop.eup %5772  ;;  %v5816_v3 = vld [vmem:[#allocation2 + $0x10] sm:$0xff] }
 0x612   : > { %v1857_v6 = vmul.f32 %v5773_v4, %v5765_v49  ;;  %v5560_v49 = vld [vmem:[%s6738_s24 + $0xe0] ss:$8 sps:$4 sm:$0xff]  }
 0x614   : > { %v1860_v8 = vpack.c.bf16 %v1857_v6, %v1856_v5  ;;  %v5817_v6 = vld [vmem:[#allocation2 + $0x18] sm:$0xff] }
 0x616   : > { %5196 = vmatmul.mubr.msk.bf16.vlgmr.msra.gmra.mrb[20].mxu0 %vm1815_vm1, %v1860_v8 }
 0x617   : > { %2067 = vmatpush1.bf16.msra.mxu0 %v5518_v7  ;;  %2098 = vmatprep.mubr.bf16.mxu0 %v6213_v26 }
 0x618   : > { %2068 = vmatprep.subr.bf16.mxu0 %v5523_v9 }
 0x61b   : > { %2069 = vmatpush1.bf16.msra.mxu0 %v5521_v10  ;;  %v2306_v10 = vld [vmem:[%s6746_s20] sm:$0xff] }
 0x61c   : > { %2070 = vmatprep.subr.bf16.mxu0 %v5526_v11  ;;  %v2310_v11 = vld [vmem:[%s6746_s20 + $0x20] sm:$0xff] }
 0x61f   : > { %2071 = vmatpush1.bf16.msra.mxu0 %v5524_v12  ;;  %v2307_v12 = vld [vmem:[%s6746_s20 + $0x8] sm:$0xff] }
 0x620   : > { %2072 = vmatprep.subr.bf16.mxu0 %v5529_v13  ;;  %v4861_v13 = vcombine.low %v2306_v10, %v2310_v11 }
 0x623   : > { %2073 = vmatpush1.bf16.msra.mxu0 %v5527_v14  ;;  %v4862_v14 = vcombine.high %v2306_v10, %v2310_v11  ;;  %v2367_v10 = vld [vmem:[%s6746_s20 + $0x1e8] sm:$0xff] }
 0x624   : > { %2074 = vmatprep.subr.bf16.mxu0 %v5532_v15  ;;  %v2311_v15 = vld [vmem:[%s6746_s20 + $0x28] sm:$0xff] }
 0x625   : > { %3116 = vmatprep.subr.bf16.mxu1 %v4862_v14 }
 0x627   : > { %2075 = vmatpush1.bf16.msra.mxu0 %v5530_v16  ;;  %v2314_v16 = vld [vmem:[%s6746_s20 + $0x40] sm:$0xff] }
 0x628   : > { %2076 = vmatprep.subr.bf16.mxu0 %v5535_v17  ;;  %v2318_v17 = vld [vmem:[%s6746_s20 + $0x60] sm:$0xff] }
 0x62b   : > { %2077 = vmatpush1.bf16.msra.mxu0 %v5533_v18  ;;  %v4863_v18 = vcombine.low %v2307_v12, %v2311_v15 }
 0x62c   : > { %2078 = vmatprep.subr.bf16.mxu0 %v5538_v19  ;;  %v4864_v19 = vcombine.high %v2307_v12, %v2311_v15  ;;  %v2370_v15 = vld [vmem:[%s6746_s20 + $0x200] sm:$0xff] }
 0x62f   : > { %2079 = vmatpush1.bf16.msra.mxu0 %v5536_v20  ;;  %v4870_v20 = vcombine.high %v2314_v16, %v2318_v17 }
 0x630   : > { %2080 = vmatprep.subr.bf16.mxu0 %v5541_v23  ;;  %v2322_v23 = vld [vmem:[%s6746_s20 + $0x80] sm:$0xff] }
 0x633   : > { %2081 = vmatpush1.bf16.msra.mxu0 %v5539_v25 }
 0x634   : > { %2189 = vmatprep.subr.bf16.mxu0 %v5544_v27  ;;  %v2323_v27 = vld [vmem:[%s6746_s20 + $0x88] sm:$0xff] }
 0x663   : > { %v1848_v21 = vpop.xlane.xlu0 %1847 }
 0x664   : > { %5774 = vrcp.f32 %v1848_v21  ;;  %v2315_v21 = vld [vmem:[%s6746_s20 + $0x48] sm:$0xff] }
 0x667   : > { %v1851_v22 = vpop.xlane.xlu1 %1850 }
 0x668   : > { %5776 = vrcp.f32 %v1851_v22  ;;  %v2319_v22 = vld [vmem:[%s6746_s20 + $0x68] sm:$0xff] }
 0x669   : > { %v4872_v25 = vcombine.high %v2315_v21, %v2319_v22 }
 0x66e   : > { %v5775_v29 = vpop.eup %5774 }
 0x66f   : > { %v1858_v31 = vmul.f32 %v5775_v29, %v5767_v57  ;;  %v2327_v29 = vld [vmem:[%s6746_s20 + $0xa8] sm:$0xff] }
 0x672   : > { %v5777_v30 = vpop.eup %5776 }
 0x673   : > { %v1859_v32 = vmul.f32 %v5777_v30, %v5769_v59  ;;  %v4869_v30 = vcombine.low %v2314_v16, %v2318_v17  ;;  %v2374_v16 = vld [vmem:[%s6746_s20 + $0x220] sm:$0xff]  ;;  %v2371_v17 = vld [vmem:[%s6746_s20 + $0x208] sm:$0xff] }
 0x675   : > { %v1861_v24 = vpack.c.bf16 %v1859_v32, %v1858_v31  ;;  %v4871_v31 = vcombine.low %v2315_v21, %v2319_v22  ;;  %v4926_v21 = vcombine.high %v2370_v15, %v2374_v16 }
 0x677   : > { %5202 = vmatmul.mubr.msk.bf16.vlgmr.msra.gmra.mrb[4].mxu1 %vm1815_vm1, %v1861_v24  ;;  %v4880_v24 = vcombine.high %v2323_v27, %v2327_v29 }
 0x678   : > { %3117 = vmatpush1.bf16.msra.mxu1 %v4861_v13 }
 0x679   : > { %3118 = vmatprep.subr.bf16.mxu1 %v4870_v20 }
 0x67c   : > { %3119 = vmatpush1.bf16.msra.mxu1 %v4869_v30 }
 0x6e9   : > { %v1901_v33 = vpop.f32.mrb[20].mxu0 }
 0x6ea   : > { %v5197_v34 = vpop.f32.mrb[21].mxu0 }
 0x6eb   : > { %v1904_v35 = vpop.f32.mrb[22].mxu0  ;;  %v2334_v34 = vld [vmem:[%s6746_s20 + $0xe0] sm:$0xff] }
 0x6ec   : > { %v1952_v37 = vpack.c.bf16 %v1904_v35, %v1901_v33  ;;  %v5198_v38 = vpop.f32.mrb[23].mxu0  ;;  %v2330_v33 = vld [vmem:[%s6746_s20 + $0xc0] sm:$0xff]  ;;  %v2331_v35 = vld [vmem:[%s6746_s20 + $0xc8] sm:$0xff] }
 0x6ed   : > { %v4879_v38 = vcombine.low %v2323_v27, %v2327_v29  ;;  %v2383_v27 = vld [vmem:[%s6746_s20 + $0x268] sm:$0xff]  ;;  %v4925_v29 = vcombine.low %v2370_v15, %v2374_v16  ;;  %v2414_v15 = vld [vmem:[%s6746_s20 + $0x360] sm:$0xff] }
 0x6ee   : > { %2099 = vmatmul.mubr.bf16.vlgmr.msra.gmra.mrb[24].mxu0 %v1952_v37  ;;  %v2411_v16 = vld [vmem:[%s6746_s20 + $0x348] sm:$0xff] }
 0x6ef   : > { %2190 = vmatpush1.bf16.msra.mxu0 %v5542_v36  ;;  %2221 = vmatprep.mubr.bf16.mxu0 %v6213_v26  ;;  %v2326_v26 = vld [vmem:[%s6746_s20 + $0xa0] sm:$0xff]  ;;  %v2335_v36 = vld [vmem:[%s6746_s20 + $0xe8] sm:$0xff] }
 0x6f0   : > { %2191 = vmatprep.subr.bf16.mxu0 %v5547_v39  ;;  %v4878_v32 = vcombine.high %v2322_v23, %v2326_v26  ;;  %v4877_v37 = vcombine.low %v2322_v23, %v2326_v26  ;;  %v4886_v39 = vcombine.high %v2330_v33, %v2334_v34  ;;  %v2378_v23 = vld [vmem:[%s6746_s20 + $0x240] sm:$0xff]  ;;  %v2379_v26 = vld [vmem:[%s6746_s20 + $0x248] sm:$0xff] }
 0x6f2   : > { %3120 = vmatprep.subr.bf16.mxu1 %v4878_v32  ;;  %v4936_v32 = vcombine.high %v2379_v26, %v2383_v27 }
 0x6f3   : > { %2192 = vmatpush1.bf16.msra.mxu0 %v5545_v40  ;;  %v4888_v40 = vcombine.high %v2331_v35, %v2335_v36  ;;  %3121 = vmatpush1.bf16.msra.mxu1 %v4877_v37 }
 0x6f4   : > { %2193 = vmatprep.subr.bf16.mxu0 %v5550_v28  ;;  %v2338_v28 = vld [vmem:[%s6746_s20 + $0x100] sm:$0xff]  ;;  %3122 = vmatprep.subr.bf16.mxu1 %v4886_v39 }
 0x6f7   : > { %2194 = vmatpush1.bf16.msra.mxu0 %v5548_v41  ;;  %v2342_v41 = vld [vmem:[%s6746_s20 + $0x120] sm:$0xff] }
 0x6f8   : > { %2195 = vmatprep.subr.bf16.mxu0 %v5553_v42  ;;  %v2339_v42 = vld [vmem:[%s6746_s20 + $0x108] sm:$0xff] }
 0x6fb   : > { %2196 = vmatpush1.bf16.msra.mxu0 %v5551_v43  ;;  %v2343_v43 = vld [vmem:[%s6746_s20 + $0x128] sm:$0xff] }
 0x6fc   : > { %2197 = vmatprep.subr.bf16.mxu0 %v5556_v44  ;;  %v4885_v44 = vcombine.low %v2330_v33, %v2334_v34  ;;  %v4935_v33 = vcombine.low %v2379_v26, %v2383_v27  ;;  %v2423_v27 = vld [vmem:[%s6746_s20 + $0x3a8] sm:$0xff] }
 0x6fe   : > { %3123 = vmatpush1.bf16.msra.mxu1 %v4885_v44 }
 0x6ff   : > { %2198 = vmatpush1.bf16.msra.mxu0 %v5554_v45  ;;  %v4887_v45 = vcombine.low %v2331_v35, %v2335_v36 }
 0x700   : > { %2199 = vmatprep.subr.bf16.mxu0 %v5559_v46  ;;  %v4894_v46 = vcombine.high %v2338_v28, %v2342_v41 }
 0x702   : > { %3124 = vmatprep.subr.bf16.mxu1 %v4894_v46 }
 0x703   : > { %2200 = vmatpush1.bf16.msra.mxu0 %v5557_v47  ;;  %v4896_v47 = vcombine.high %v2339_v42, %v2343_v43 }
 0x704   : > { %2201 = vmatprep.subr.bf16.mxu0 %v5562_v48  ;;  %v2346_v48 = vld [vmem:[%s6746_s20 + $0x140] sm:$0xff] }
 0x707   : > { %2202 = vmatpush1.bf16.msra.mxu0 %v5560_v49  ;;  %v2350_v49 = vld [vmem:[%s6746_s20 + $0x160] sm:$0xff] }
 0x708   : > { %2203 = vmatprep.subr.bf16.mxu0 %v5565_v50  ;;  %v2347_v50 = vld [vmem:[%s6746_s20 + $0x148] sm:$0xff] }
 0x70b   : > { %2204 = vmatpush1.bf16.msra.mxu0 %v5563_v51  ;;  %v2351_v51 = vld [vmem:[%s6746_s20 + $0x168] sm:$0xff] }
 0x70c   : > { %3159 = vmatprep.subr.bf16.mxu0 %v4864_v19 }
 0x74a   : > { %v1945_v52 = vpop.f32.mrb[4].mxu1 }
 0x74b   : > { %v5203_v53 = vpop.f32.mrb[5].mxu1 }
 0x74c   : > { %v1948_v54 = vpop.f32.mrb[6].mxu1  ;;  %v4895_v53 = vcombine.low %v2339_v42, %v2343_v43 }
 0x74d   : > { %v1953_v55 = vpack.c.bf16 %v1948_v54, %v1945_v52  ;;  %v5204_v56 = vpop.f32.mrb[7].mxu1  ;;  %v4893_v52 = vcombine.low %v2338_v28, %v2342_v41  ;;  %v4902_v54 = vcombine.high %v2346_v48, %v2350_v49 }
 0x74e   : > { %v2354_v56 = vld [vmem:[%s6746_s20 + $0x180] sm:$0xff] }
 0x74f   : > { %2222 = vmatmul.mubr.bf16.vlgmr.msra.gmra.mrb[24].mxu0 %v1953_v55  ;;  %v4904_v55 = vcombine.high %v2347_v50, %v2351_v51  ;;  %3125 = vmatpush1.bf16.msra.mxu1 %v4893_v52 }
 0x750   : > { %3160 = vmatpush1.bf16.msra.mxu0 %v4863_v18  ;;  %3126 = vmatprep.subr.bf16.mxu1 %v4902_v54  ;;  %v2375_v18 = vld [vmem:[%s6746_s20 + $0x228] sm:$0xff] }
 0x751   : > { %3161 = vmatprep.subr.bf16.mxu0 %v4872_v25  ;;  %v4928_v22 = vcombine.high %v2371_v17, %v2375_v18  ;;  %v2382_v25 = vld [vmem:[%s6746_s20 + $0x260] sm:$0xff]  ;;  %v4927_v30 = vcombine.low %v2371_v17, %v2375_v18  ;;  %v2415_v18 = vld [vmem:[%s6746_s20 + $0x368] sm:$0xff] }
 0x754   : > { %3162 = vmatpush1.bf16.msra.mxu0 %v4871_v31  ;;  %v4934_v31 = vcombine.high %v2378_v23, %v2382_v25 }
 0x755   : > { %3163 = vmatprep.subr.bf16.mxu0 %v4880_v24  ;;  %v4933_v24 = vcombine.low %v2378_v23, %v2382_v25  ;;  %v2422_v23 = vld [vmem:[%s6746_s20 + $0x3a0] sm:$0xff]  ;;  %v2419_v25 = vld [vmem:[%s6746_s20 + $0x388] sm:$0xff] }
 0x758   : > { %3164 = vmatpush1.bf16.msra.mxu0 %v4879_v38 }
 0x759   : > { %3165 = vmatprep.subr.bf16.mxu0 %v4888_v40 }
 0x75c   : > { %3166 = vmatpush1.bf16.msra.mxu0 %v4887_v45 }
 0x75d   : > { %3167 = vmatprep.subr.bf16.mxu0 %v4896_v47  ;;  %v2386_v47 = vld [vmem:[%s6746_s20 + $0x280] sm:$0xff] }
 0x760   : > { %3168 = vmatpush1.bf16.msra.mxu0 %v4895_v53 }
 0x761   : > { %3169 = vmatprep.subr.bf16.mxu0 %v4904_v55  ;;  %v2394_v55 = vld [vmem:[%s6746_s20 + $0x2c0] sm:$0xff] }
 0x822   : > { %v2223_v57 = vpop.f32.mrb[24].mxu0 }
 0x823   : > { %v6972_v59 = vadd.f32 %v5814_v58, %v2223_v57  ;;  %v2225_v60 = vpop.f32.mrb[25].mxu0  ;;  %v2358_v57 = vld [vmem:[%s6746_s20 + $0x1a0] sm:$0xff]  ;;  %v2355_v58 = vld [vmem:[%s6746_s20 + $0x188] sm:$0xff] }
 0x824   : > { %v6974_v62 = vadd.f32 %v5815_v61, %v2225_v60  ;;  %v2227_v63 = vpop.f32.mrb[26].mxu0  ;;  %v2359_v60 = vld [vmem:[%s6746_s20 + $0x1a8] sm:$0xff]  ;;  %v4901_v61 = vcombine.low %v2346_v48, %v2350_v49  ;;  %v4909_v11 = vcombine.low %v2354_v56, %v2358_v57  ;;  %v2390_v48 = vld [vmem:[%s6746_s20 + $0x2a0] sm:$0xff] }
 0x825   : > { %v6976_v4 = vadd.f32 %v5816_v3, %v2227_v63  ;;  %v2229_v5 = vpop.f32.mrb[27].mxu0  ;;  %v4903_v63 = vcombine.low %v2347_v50, %v2351_v51  ;;  %v4910_v3 = vcombine.high %v2354_v56, %v2358_v57  ;;  %v4911_v12 = vcombine.low %v2355_v58, %v2359_v60  ;;  %v2387_v49 = vld [vmem:[%s6746_s20 + $0x288] sm:$0xff]  ;;  %v2398_v56 = vld [vmem:[%s6746_s20 + $0x2e0] sm:$0xff] }
 0x826   : > { %v6978_v7 = vadd.f32 %v5817_v6, %v2229_v5  ;;  %v2242_v8 = vadd.f32 %v6974_v62, %v6972_v59  ;;  %v4912_v5 = vcombine.high %v2355_v58, %v2359_v60  ;;  %v2362_v6 = vld [vmem:[%s6746_s20 + $0x1c0] sm:$0xff]  ;;  %3127 = vmatpush1.bf16.msra.mxu1 %v4901_v61  ;;  %v4942_v50 = vcombine.high %v2386_v47, %v2390_v48  ;;  %v2391_v51 = vld [vmem:[%s6746_s20 + $0x2a8] sm:$0xff] }
 0x827   : > { %3170 = vmatpush1.bf16.msra.mxu0 %v4903_v63  ;;  %3128 = vmatprep.subr.bf16.mxu1 %v4910_v3  ;;  %v4941_v52 = vcombine.low %v2386_v47, %v2390_v48  ;;  %v4943_v53 = vcombine.low %v2387_v49, %v2391_v51  ;;  %v4944_v54 = vcombine.high %v2387_v49, %v2391_v51  ;;  %v2395_v57 = vld [vmem:[%s6746_s20 + $0x2c8] sm:$0xff] }
 0x828   : > { %2243 = vadd.xlane.f32.xlu0 %v2242_v8  ;;  %v2245_v9 = vadd.f32 %v6978_v7, %v6976_v4  ;;  %v2366_v8 = vld [vmem:[%s6746_s20 + $0x1e0] sm:$0xff]  ;;  %3171 = vmatprep.subr.bf16.mxu0 %v4912_v5  ;;  %v4950_v58 = vcombine.high %v2394_v55, %v2398_v56  ;;  %v2399_v60 = vld [vmem:[%s6746_s20 + $0x2e8] sm:$0xff]  ;;  %v4949_v61 = vcombine.low %v2394_v55, %v2398_v56  ;;  %v2240_v56 = vld [vmem:[%s768_s9] sm:$0x3] }
 0x829   : > { %v4918_v13 = vcombine.high %v2362_v6, %v2366_v8  ;;  %v4917_v19 = vcombine.low %v2362_v6, %v2366_v8  ;;  %v4951_v63 = vcombine.low %v2395_v57, %v2399_v60  ;;  %v4952_v3 = vcombine.high %v2395_v57, %v2399_v60  ;;  %v2402_v5 = vld [vmem:[%s6746_s20 + $0x300] sm:$0xff]  ;;  %v2403_v8 = vld [vmem:[%s6746_s20 + $0x308] sm:$0xff]  ;;  %v2241_v57 = vld [vmem:[%s6740_s10] sm:$0x3] }
 0x82a   : > { %2246 = vadd.xlane.f32.xlu1 %v2245_v9  ;;  %v2363_v9 = vld [vmem:[%s6746_s20 + $0x1c8] sm:$0xff]  ;;  %3129 = vmatpush1.bf16.msra.mxu1 %v4909_v11  ;;  %v2406_v6 = vld [vmem:[%s6746_s20 + $0x320] sm:$0xff]  ;;  %v2278_v60 = vrot.slane %v2240_v56, %v6827_v2 }
 0x82b   : > { %v4920_v14 = vcombine.high %v2363_v9, %v2367_v10  ;;  %3172 = vmatpush1.bf16.msra.mxu0 %v4911_v12  ;;  %3130 = vmatprep.subr.bf16.mxu1 %v4918_v13  ;;  %v4919_v20 = vcombine.low %v2363_v9, %v2367_v10  ;;  %v4958_v9 = vcombine.high %v2402_v5, %v2406_v6  ;;  %v2407_v10 = vld [vmem:[%s6746_s20 + $0x328] sm:$0xff] }
 0x82c   : > { %v4957_v11 = vcombine.low %v2402_v5, %v2406_v6  ;;  %v4959_v12 = vcombine.low %v2403_v8, %v2407_v10  ;;  %v4960_v13 = vcombine.high %v2403_v8, %v2407_v10  ;;  %v2297_v6 = vrot.slane %v2241_v57, %v6824_v1 }
 0x82d   : > { %3173 = vmatprep.subr.bf16.mxu0 %v4920_v14  ;;  %v2410_v14 = vld [vmem:[%s6746_s20 + $0x340] sm:$0xff]  ;;  %v2293_v8 = vrot.slane %v2241_v57, %v6827_v2 }
 0x82e   : > { %3131 = vmatpush1.bf16.msra.mxu1 %v4917_v19  ;;  %v4966_v17 = vcombine.high %v2410_v14, %v2414_v15  ;;  %v4965_v19 = vcombine.low %v2410_v14, %v2414_v15 }
 0x82f   : > { %3174 = vmatpush1.bf16.msra.mxu0 %v4919_v20  ;;  %3132 = vmatprep.subr.bf16.mxu1 %v4926_v21  ;;  %v4967_v20 = vcombine.low %v2411_v16, %v2415_v18  ;;  %v4968_v21 = vcombine.high %v2411_v16, %v2415_v18  ;;  %v2320_v18 = vld [vmem:[%s6746_s20 + $0x70] sm:$0xff] }
 0x830   : > { %3175 = vmatprep.subr.bf16.mxu0 %v4928_v22  ;;  %v2418_v22 = vld [vmem:[%s6746_s20 + $0x380] sm:$0xff] }
 0x831   : > { %v4974_v26 = vcombine.high %v2418_v22, %v2422_v23 }
 0x832   : > { %3133 = vmatpush1.bf16.msra.mxu1 %v4925_v29  ;;  %v4973_v29 = vcombine.low %v2418_v22, %v2422_v23  ;;  %v2324_v22 = vld [vmem:[%s6746_s20 + $0x90] sm:$0xff] }
 0x833   : > { %3176 = vmatpush1.bf16.msra.mxu0 %v4927_v30  ;;  %3134 = vmatprep.subr.bf16.mxu1 %v4934_v31  ;;  %v4975_v30 = vcombine.low %v2419_v25, %v2423_v27  ;;  %v4976_v31 = vcombine.high %v2419_v25, %v2423_v27  ;;  %v2328_v25 = vld [vmem:[%s6746_s20 + $0xb0] sm:$0xff]  ;;  %v2329_v27 = vld [vmem:[%s6746_s20 + $0xb8] sm:$0xff] }
 0x834   : > { %3177 = vmatprep.subr.bf16.mxu0 %v4936_v32  ;;  %v2426_v32 = vld [vmem:[%s6746_s20 + $0x3c0] sm:$0xff] }
 0x836   : > { %3135 = vmatpush1.bf16.msra.mxu1 %v4933_v24  ;;  %v2430_v24 = vld [vmem:[%s6746_s20 + $0x3e0] sm:$0xff] }
 0x837   : > { %3178 = vmatpush1.bf16.msra.mxu0 %v4935_v33  ;;  %3136 = vmatprep.subr.bf16.mxu1 %v4942_v50  ;;  %v2427_v33 = vld [vmem:[%s6746_s20 + $0x3c8] sm:$0xff] }
 0x838   : > { %3179 = vmatprep.subr.bf16.mxu0 %v4944_v54 }
 0x83a   : > { %3137 = vmatpush1.bf16.msra.mxu1 %v4941_v52 }
 0x83b   : > { %3180 = vmatpush1.bf16.msra.mxu0 %v4943_v53  ;;  %3138 = vmatprep.subr.bf16.mxu1 %v4950_v58  ;;  %v2282_v58 = vrot.slane %v2240_v56, %v6824_v1 }
 0x83c   : > { %3181 = vmatprep.subr.bf16.mxu0 %v4952_v3 }
 0x83e   : > { %3139 = vmatpush1.bf16.msra.mxu1 %v4949_v61 }
 0x83f   : > { %3182 = vmatpush1.bf16.msra.mxu0 %v4951_v63  ;;  %3140 = vmatprep.subr.bf16.mxu1 %v4958_v9 }
 0x840   : > { %3183 = vmatprep.subr.bf16.mxu0 %v4960_v13 }
 0x842   : > { %3141 = vmatpush1.bf16.msra.mxu1 %v4957_v11 }
 0x843   : > { %3184 = vmatpush1.bf16.msra.mxu0 %v4959_v12  ;;  %3142 = vmatprep.subr.bf16.mxu1 %v4966_v17  ;;  %v2316_v17 = vld [vmem:[%s6746_s20 + $0x50] sm:$0xff] }
 0x844   : > { %3185 = vmatprep.subr.bf16.mxu0 %v4968_v21 }
 0x846   : > { %3143 = vmatpush1.bf16.msra.mxu1 %v4965_v19  ;;  %v2317_v19 = vld [vmem:[%s6746_s20 + $0x58] sm:$0xff] }
 0x847   : > { %3186 = vmatpush1.bf16.msra.mxu0 %v4967_v20  ;;  %3144 = vmatprep.subr.bf16.mxu1 %v4974_v26  ;;  %v2321_v20 = vld [vmem:[%s6746_s20 + $0x78] sm:$0xff] }
 0x848   : > { %3187 = vmatprep.subr.bf16.mxu0 %v4976_v31  ;;  %v4876_v23 = vcombine.high %v2317_v19, %v2321_v20  ;;  %v2325_v26 = vld [vmem:[%s6746_s20 + $0x98] sm:$0xff]  ;;  %v4882_v31 = vcombine.high %v2324_v22, %v2328_v25 }
 0x84a   : > { %3145 = vmatpush1.bf16.msra.mxu1 %v4973_v29  ;;  %v4873_v29 = vcombine.low %v2316_v17, %v2320_v18 }
 0x84b   : > { %3188 = vmatpush1.bf16.msra.mxu0 %v4975_v30  ;;  %v4875_v30 = vcombine.low %v2317_v19, %v2321_v20  ;;  %v2377_v19 = vld [vmem:[%s6746_s20 + $0x238] sm:$0xff] }
 0x8b5   : > { %v2244_v34 = vpop.xlane.xlu0 %2243 }
 0x8b6   : > { %v2248_v35 = vmul.f32 0.00390625, %v2244_v34  ;;  %v4981_v34 = vcombine.low %v2426_v32, %v2430_v24 }
 0x8b7   : > { %v2247_v36 = vpop.xlane.xlu1 %2246 }
 0x8b8   : > { %v7025_v37 = vsub.f32 %v6972_v59, %v2248_v35  ;;  %v7028_v38 = vsub.f32 %v6974_v62, %v2248_v35  ;;  %v2249_v39 = vmul.f32 0.00390625, %v2247_v36  ;;  %v4982_v35 = vcombine.high %v2426_v32, %v2430_v24  ;;  %v2431_v36 = vld [vmem:[%s6746_s20 + $0x3e8] sm:$0xff]  ;;  %v2332_v24 = vld [vmem:[%s6746_s20 + $0xd0] sm:$0xff] }
 0x8b9   : > { %v4884_v32 = vcombine.high %v2325_v26, %v2329_v27 }
 0x8ba   : > { %v7031_v40 = vsub.f32 %v6976_v4, %v2249_v39  ;;  %v7034_v28 = vsub.f32 %v6978_v7, %v2249_v39  ;;  %v2254_v41 = vmul.f32 %v7025_v37, %v7025_v37  ;;  %v2255_v42 = vmul.f32 %v7028_v38, %v7028_v38  ;;  %3146 = vmatprep.subr.bf16.mxu1 %v4982_v35  ;;  %v2337_v35 = vld [vmem:[%s6746_s20 + $0xf8] sm:$0xff] }
 0x8bb   : > { %v4983_v39 = vcombine.low %v2427_v33, %v2431_v36  ;;  %3147 = vmatpush1.bf16.msra.mxu1 %v4981_v34  ;;  %v2333_v34 = vld [vmem:[%s6746_s20 + $0xd8] sm:$0xff] }
 0x8bc   : > { %v2258_v43 = vadd.f32 %v2255_v42, %v2254_v41  ;;  %v2256_v44 = vmul.f32 %v7031_v40, %v7031_v40  ;;  %v2257_v45 = vmul.f32 %v7034_v28, %v7034_v28  ;;  %v4984_v41 = vcombine.high %v2427_v33, %v2431_v36  ;;  %v2308_v42 = vld [vmem:[%s6746_s20 + $0x10] sm:$0xff] }
 0x8bd   : > { %v2336_v33 = vld [vmem:[%s6746_s20 + $0xf0] sm:$0xff]  ;;  %v4881_v36 = vcombine.low %v2324_v22, %v2328_v25 }
 0x8be   : > { %2259 = vadd.xlane.f32.xlu0 %v2258_v43  ;;  %v2261_v46 = vadd.f32 %v2257_v45, %v2256_v44  ;;  %3189 = vmatprep.subr.bf16.mxu0 %v4984_v41  ;;  %v2312_v43 = vld [vmem:[%s6746_s20 + $0x30] sm:$0xff]  ;;  %v2309_v44 = vld [vmem:[%s6746_s20 + $0x18] sm:$0xff]  ;;  %v4890_v41 = vcombine.high %v2332_v24, %v2336_v33 }
 0x8bf   : > { %3190 = vmatpush1.bf16.msra.mxu0 %v4983_v39  ;;  %v4866_v45 = vcombine.high %v2308_v42, %v2312_v43  ;;  %v4865_v47 = vcombine.low %v2308_v42, %v2312_v43  ;;  %v4883_v39 = vcombine.low %v2325_v26, %v2329_v27  ;;  %v4892_v42 = vcombine.high %v2333_v34, %v2337_v35  ;;  %v2340_v43 = vld [vmem:[%s6746_s20 + $0x110] sm:$0xff]  ;;  %v2381_v26 = vld [vmem:[%s6746_s20 + $0x258] sm:$0xff] }
 0x8c0   : > { %2262 = vadd.xlane.f32.xlu1 %v2261_v46  ;;  %v2313_v46 = vld [vmem:[%s6746_s20 + $0x38] sm:$0xff]  ;;  %v2384_v25 = vld [vmem:[%s6746_s20 + $0x270] sm:$0xff] }
 0x8c1   : > { %v4867_v48 = vcombine.low %v2309_v44, %v2313_v46  ;;  %v4868_v49 = vcombine.high %v2309_v44, %v2313_v46  ;;  %3202 = vmatprep.subr.bf16.mxu1 %v4866_v45  ;;  %v2344_v44 = vld [vmem:[%s6746_s20 + $0x130] sm:$0xff]  ;;  %v2341_v45 = vld [vmem:[%s6746_s20 + $0x118] sm:$0xff] }
 0x8c2   : > { %v2345_v46 = vld [vmem:[%s6746_s20 + $0x138] sm:$0xff] }
 0x8c3   : > { %3245 = vmatprep.subr.bf16.mxu0 %v4868_v49  ;;  %v4898_v49 = vcombine.high %v2340_v43, %v2344_v44  ;;  %v4899_v56 = vcombine.low %v2341_v45, %v2345_v46  ;;  %v2385_v27 = vld [vmem:[%s6746_s20 + $0x278] sm:$0xff] }
 0x94b   : > { %v2260_v50 = vpop.xlane.xlu0 %2259 }
 0x94c   : > { %v2264_v51 = vmul.f32 0.00390625, %v2260_v50  ;;  %v4900_v50 = vcombine.high %v2341_v45, %v2345_v46  ;;  %v2397_v45 = vld [vmem:[%s6746_s20 + $0x2d8] sm:$0xff] }
 0x94d   : > { %v2263_v52 = vpop.xlane.xlu1 %2262  ;;  %v2401_v46 = vld [vmem:[%s6746_s20 + $0x2f8] sm:$0xff] }
 0x94e   : > { %v2266_v53 = vadd.f32 1e-05, %v2264_v51  ;;  %v2265_v54 = vmul.f32 0.00390625, %v2263_v52  ;;  %v2348_v51 = vld [vmem:[%s6746_s20 + $0x150] sm:$0xff] }
 0x94f   : > { %v2352_v52 = vld [vmem:[%s6746_s20 + $0x170] sm:$0xff] }
 0x950   : > { %5778 = vrsqrt.f32 %v2266_v53  ;;  %v2267_v55 = vadd.f32 1e-05, %v2265_v54  ;;  %v2349_v53 = vld [vmem:[%s6746_s20 + $0x158] sm:$0xff]  ;;  %v4906_v57 = vcombine.high %v2348_v51, %v2352_v52 }
 0x951   : > { %v2353_v54 = vld [vmem:[%s6746_s20 + $0x178] sm:$0xff] }
 0x952   : > { %5780 = vrsqrt.f32 %v2267_v55  ;;  %v4897_v55 = vcombine.low %v2340_v43, %v2344_v44  ;;  %v2396_v43 = vld [vmem:[%s6746_s20 + $0x2d0] sm:$0xff] }
 0x953   : > { %v2400_v44 = vld [vmem:[%s6746_s20 + $0x2f0] sm:$0xff] }
 0x95a   : > { %v5779_v61 = vpop.eup %5778 }
 0x95b   : > { %v2270_v63 = vmul.f32 %v5779_v61, %v7025_v37  ;;  %v2271_v3 = vmul.f32 %v5779_v61, %v7028_v38  ;;  %v2360_v61 = vld [vmem:[%s6746_s20 + $0x1b0] sm:$0xff] }
 0x95c   : > { %v5781_v5 = vpop.eup %5780 }
 0x95d   : > { %v2272_v9 = vmul.f32 %v5781_v5, %v7031_v40  ;;  %v2273_v10 = vmul.f32 %v5781_v5, %v7034_v28  ;;  %v2286_v11 = vmul.f32 %v2282_v58, %v2271_v3  ;;  %v2285_v12 = vmul.f32 %v2278_v60, %v2270_v63  ;;  %v2357_v63 = vld [vmem:[%s6746_s20 + $0x198] sm:$0xff] }
 0x95e   : > { %v4874_v28 = vcombine.high %v2316_v17, %v2320_v18  ;;  %v2361_v3 = vld [vmem:[%s6746_s20 + $0x1b8] sm:$0xff]  ;;  %v4905_v5 = vcombine.low %v2348_v51, %v2352_v52  ;;  %v2376_v17 = vld [vmem:[%s6746_s20 + $0x230] sm:$0xff] }
 0x95f   : > { %v2288_v13 = vmul.f32 %v2282_v58, %v2273_v10  ;;  %v2287_v14 = vmul.f32 %v2278_v60, %v2272_v9  ;;  %v2301_v37 = vadd.f32 %v2297_v6, %v2286_v11  ;;  %v2300_v15 = vadd.f32 %v2293_v8, %v2285_v12  ;;  %v2356_v60 = vld [vmem:[%s6746_s20 + $0x190] sm:$0xff]  ;;  %v2365_v12 = vld [vmem:[%s6746_s20 + $0x1d8] sm:$0xff] }
 0x960   : > { %v4908_v58 = vcombine.high %v2349_v53, %v2353_v54  ;;  %v4916_v9 = vcombine.high %v2357_v63, %v2361_v3  ;;  %v2364_v10 = vld [vmem:[%s6746_s20 + $0x1d0] sm:$0xff]  ;;  %v2373_v18 = vld [vmem:[%s6746_s20 + $0x218] sm:$0xff] }
 0x961   : > { %v2303_v38 = vadd.f32 %v2297_v6, %v2288_v13  ;;  %v2302_v16 = vadd.f32 %v2293_v8, %v2287_v14  ;;  %v4907_v6 = vcombine.low %v2349_v53, %v2353_v54  ;;  %v4914_v8 = vcombine.high %v2356_v60, %v2360_v61  ;;  %v2368_v11 = vld [vmem:[%s6746_s20 + $0x1f0] sm:$0xff]  ;;  %v2369_v13 = vld [vmem:[%s6746_s20 + $0x1f8] sm:$0xff] }
 0x962   : > { %v4913_v14 = vcombine.low %v2356_v60, %v2360_v61  ;;  %v4921_v20 = vcombine.low %v2364_v10, %v2368_v11  ;;  %v2404_v51 = vld [vmem:[%s6746_s20 + $0x310] sm:$0xff]  ;;  %v2405_v53 = vld [vmem:[%s6746_s20 + $0x318] sm:$0xff] }
 0x963   : > { %v2305_v21 = vpack.c.bf16 %v2303_v38, %v2301_v37  ;;  %v7090_v40 = vpack.c.bf16 %v2302_v16, %v2300_v15  ;;  %v4915_v37 = vcombine.low %v2357_v63, %v2361_v3  ;;  %v4922_v38 = vcombine.high %v2364_v10, %v2368_v11  ;;  %v2372_v16 = vld [vmem:[%s6746_s20 + $0x210] sm:$0xff]  ;;  %v2409_v54 = vld [vmem:[%s6746_s20 + $0x338] sm:$0xff] }
 0x964   : > { %v4924_v15 = vcombine.high %v2365_v12, %v2369_v13  ;;  %v4930_v22 = vcombine.high %v2372_v16, %v2376_v17  ;;  %v2408_v52 = vld [vmem:[%s6746_s20 + $0x330] sm:$0xff]  ;;  %v2413_v63 = vld [vmem:[%s6746_s20 + $0x358] sm:$0xff] }
 0x965   : > { %3148 = vmatprep.mubr.bf16.mxu1 %v2305_v21  ;;  %3191 = vmatprep.mubr.bf16.mxu0 %v2305_v21  ;;  %v2412_v60 = vld [vmem:[%s6746_s20 + $0x350] sm:$0xff]  ;;  %v2417_v3 = vld [vmem:[%s6746_s20 + $0x378] sm:$0xff] }
 0x966   : > { %3149 = vmatmul.mubr.bf16.vlgmr.msra.gmra.mrb[8].mxu1 %v7090_v40  ;;  %3192 = vmatmul.mubr.bf16.vlgmr.msra.gmra.mrb[28].mxu0 %v7090_v40  ;;  %v2416_v61 = vld [vmem:[%s6746_s20 + $0x370] sm:$0xff] }
 0x967   : > { %3203 = vmatpush1.bf16.msra.mxu1 %v4865_v47  ;;  %3246 = vmatpush1.bf16.msra.mxu0 %v4867_v48  ;;  %v4889_v47 = vcombine.low %v2332_v24, %v2336_v33  ;;  %v4891_v48 = vcombine.low %v2333_v34, %v2337_v35  ;;  %v2388_v24 = vld [vmem:[%s6746_s20 + $0x290] sm:$0xff]  ;;  %v2389_v34 = vld [vmem:[%s6746_s20 + $0x298] sm:$0xff] }
 0x968   : > { %3234 = vmatprep.mubr.bf16.mxu1 %v2305_v21  ;;  %3277 = vmatprep.mubr.bf16.mxu0 %v2305_v21  ;;  %v4923_v21 = vcombine.low %v2365_v12, %v2369_v13  ;;  %v2392_v33 = vld [vmem:[%s6746_s20 + $0x2b0] sm:$0xff]  ;;  %v2393_v35 = vld [vmem:[%s6746_s20 + $0x2b8] sm:$0xff] }
 0x969   : > { %3204 = vmatprep.subr.bf16.mxu1 %v4874_v28  ;;  %3247 = vmatprep.subr.bf16.mxu0 %v4876_v23  ;;  %v4932_v28 = vcombine.high %v2373_v18, %v2377_v19  ;;  %v2380_v23 = vld [vmem:[%s6746_s20 + $0x250] sm:$0xff]  ;;  %v2421_v12 = vld [vmem:[%s6746_s20 + $0x398] sm:$0xff] }
 0x96a   : > { %v2420_v10 = vld [vmem:[%s6746_s20 + $0x390] sm:$0xff]  ;;  %v2425_v13 = vld [vmem:[%s6746_s20 + $0x3b8] sm:$0xff] }
 0x96b   : > { %3205 = vmatpush1.bf16.msra.mxu1 %v4873_v29  ;;  %3248 = vmatpush1.bf16.msra.mxu0 %v4875_v30  ;;  %v4929_v29 = vcombine.low %v2372_v16, %v2376_v17  ;;  %v4931_v30 = vcombine.low %v2373_v18, %v2377_v19  ;;  %v2424_v11 = vld [vmem:[%s6746_s20 + $0x3b0] sm:$0xff]  ;;  %v2429_v18 = vld [vmem:[%s6746_s20 + $0x3d8] sm:$0xff] }
 0x96c   : > { %3206 = vmatprep.subr.bf16.mxu1 %v4882_v31  ;;  %3249 = vmatprep.subr.bf16.mxu0 %v4884_v32  ;;  %v4938_v31 = vcombine.high %v2380_v23, %v2384_v25  ;;  %v4940_v32 = vcombine.high %v2381_v26, %v2385_v27  ;;  %v2428_v16 = vld [vmem:[%s6746_s20 + $0x3d0] sm:$0xff]  ;;  %v2433_v19 = vld [vmem:[%s6746_s20 + $0x3f8] sm:$0xff] }
 0x96d   : > { %v2432_v17 = vld [vmem:[%s6746_s20 + $0x3f0] sm:$0xff] }
 0x96f   : > { %3207 = vmatpush1.bf16.msra.mxu1 %v4881_v36  ;;  %3250 = vmatpush1.bf16.msra.mxu0 %v4883_v39  ;;  %v4937_v36 = vcombine.low %v2380_v23, %v2384_v25  ;;  %v4939_v39 = vcombine.low %v2381_v26, %v2385_v27  ;;  %v4985_v23 = vcombine.low %v2428_v16, %v2432_v17  ;;  %v5568_v26 = vld [vmem:[%s6748_s1 + $0x4] ss:$8 sps:$4 sm:$0xff]   ;;  %v5566_v27 = vld [vmem:[%s6748_s1] ss:$8 sps:$4 sm:$0xff]  }
 0x970   : > { %3208 = vmatprep.subr.bf16.mxu1 %v4890_v41  ;;  %3251 = vmatprep.subr.bf16.mxu0 %v4892_v42  ;;  %v4946_v41 = vcombine.high %v2388_v24, %v2392_v33  ;;  %v4948_v42 = vcombine.high %v2389_v34, %v2393_v35  ;;  %v4987_v25 = vcombine.low %v2429_v18, %v2433_v19 }
 0x973   : > { %3209 = vmatpush1.bf16.msra.mxu1 %v4889_v47  ;;  %3252 = vmatpush1.bf16.msra.mxu0 %v4891_v48  ;;  %v4945_v47 = vcombine.low %v2388_v24, %v2392_v33  ;;  %v4947_v48 = vcombine.low %v2389_v34, %v2393_v35  ;;  %v5577_v24 = vld [vmem:[%s6748_s1 + $0x34] ss:$8 sps:$4 sm:$0xff]   ;;  %v5575_v33 = vld [vmem:[%s6748_s1 + $0x30] ss:$8 sps:$4 sm:$0xff]   ;;  %v5580_v34 = vld [vmem:[%s6748_s1 + $0x44] ss:$8 sps:$4 sm:$0xff]  }
 0x974   : > { %3210 = vmatprep.subr.bf16.mxu1 %v4898_v49  ;;  %3253 = vmatprep.subr.bf16.mxu0 %v4900_v50  ;;  %v4954_v49 = vcombine.high %v2396_v43, %v2400_v44  ;;  %v4956_v50 = vcombine.high %v2397_v45, %v2401_v46  ;;  %v5583_v35 = vld [vmem:[%s6748_s1 + $0x54] ss:$8 sps:$4 sm:$0xff]  }
 0x977   : > { %3211 = vmatpush1.bf16.msra.mxu1 %v4897_v55  ;;  %3254 = vmatpush1.bf16.msra.mxu0 %v4899_v56  ;;  %v4953_v55 = vcombine.low %v2396_v43, %v2400_v44  ;;  %v4955_v56 = vcombine.low %v2397_v45, %v2401_v46  ;;  %v5587_v43 = vld [vmem:[%s6748_s1 + $0x70] ss:$8 sps:$4 sm:$0xff]   ;;  %v5592_v44 = vld [vmem:[%s6748_s1 + $0x84] ss:$8 sps:$4 sm:$0xff]   ;;  %v5590_v45 = vld [vmem:[%s6748_s1 + $0x80] ss:$8 sps:$4 sm:$0xff]  }
 0x978   : > { %3212 = vmatprep.subr.bf16.mxu1 %v4906_v57  ;;  %3255 = vmatprep.subr.bf16.mxu0 %v4908_v58  ;;  %v4962_v57 = vcombine.high %v2404_v51, %v2408_v52  ;;  %v4964_v58 = vcombine.high %v2405_v53, %v2409_v54  ;;  %v5595_v46 = vld [vmem:[%s6748_s1 + $0x94] ss:$8 sps:$4 sm:$0xff]  }
 0x97b   : > { %3213 = vmatpush1.bf16.msra.mxu1 %v4905_v5  ;;  %3256 = vmatpush1.bf16.msra.mxu0 %v4907_v6  ;;  %v4961_v5 = vcombine.low %v2404_v51, %v2408_v52  ;;  %v4963_v6 = vcombine.low %v2405_v53, %v2409_v54  ;;  %v5599_v51 = vld [vmem:[%s6748_s1 + $0xb0] ss:$8 sps:$4 sm:$0xff]   ;;  %v5604_v52 = vld [vmem:[%s6748_s1 + $0xc4] ss:$8 sps:$4 sm:$0xff]   ;;  %v5602_v53 = vld [vmem:[%s6748_s1 + $0xc0] ss:$8 sps:$4 sm:$0xff]  }
 0x97c   : > { %3214 = vmatprep.subr.bf16.mxu1 %v4914_v8  ;;  %3257 = vmatprep.subr.bf16.mxu0 %v4916_v9  ;;  %v4970_v8 = vcombine.high %v2412_v60, %v2416_v61  ;;  %v4972_v9 = vcombine.high %v2413_v63, %v2417_v3  ;;  %v5607_v54 = vld [vmem:[%s6748_s1 + $0xd4] ss:$8 sps:$4 sm:$0xff]  }
 0x97f   : > { %3215 = vmatpush1.bf16.msra.mxu1 %v4913_v14  ;;  %3258 = vmatpush1.bf16.msra.mxu0 %v4915_v37  ;;  %v4969_v14 = vcombine.low %v2412_v60, %v2416_v61  ;;  %v4971_v37 = vcombine.low %v2413_v63, %v2417_v3  ;;  %v5611_v60 = vld [vmem:[%s6748_s1 + $0xf0] ss:$8 sps:$4 sm:$0xff]   ;;  %v5616_v61 = vld [vmem:[%s6748_s1 + $0x104] ss:$8 sps:$4 sm:$0xff]   ;;  %v2446_v63 = vsub.s32 2, %v6821_v0  ;;  %v7187_v3 = vld [vmem:[%s6773_s30] sm:$0xff] }
 0x980   : > { %3216 = vmatprep.subr.bf16.mxu1 %v4922_v38  ;;  %3259 = vmatprep.subr.bf16.mxu0 %v4924_v15  ;;  %v4978_v38 = vcombine.high %v2420_v10, %v2424_v11  ;;  %v4980_v15 = vcombine.high %v2421_v12, %v2425_v13 }
 0x983   : > { %3217 = vmatpush1.bf16.msra.mxu1 %v4921_v20  ;;  %3260 = vmatpush1.bf16.msra.mxu0 %v4923_v21  ;;  %v4977_v20 = vcombine.low %v2420_v10, %v2424_v11  ;;  %v4979_v21 = vcombine.low %v2421_v12, %v2425_v13 }
 0x984   : > { %3218 = vmatprep.subr.bf16.mxu1 %v4930_v22  ;;  %3261 = vmatprep.subr.bf16.mxu0 %v4932_v28  ;;  %v4986_v22 = vcombine.high %v2428_v16, %v2432_v17  ;;  %v4988_v28 = vcombine.high %v2429_v18, %v2433_v19 }
 0x987   : > { %3219 = vmatpush1.bf16.msra.mxu1 %v4929_v29  ;;  %3262 = vmatpush1.bf16.msra.mxu0 %v4931_v30  ;;  %v5571_v29 = vld [vmem:[%s6748_s1 + $0x14] ss:$8 sps:$4 sm:$0xff]   ;;  %v5569_v30 = vld [vmem:[%s6748_s1 + $0x10] ss:$8 sps:$4 sm:$0xff]  }
 0x988   : > { %3220 = vmatprep.subr.bf16.mxu1 %v4938_v31  ;;  %3263 = vmatprep.subr.bf16.mxu0 %v4940_v32  ;;  %v5574_v31 = vld [vmem:[%s6748_s1 + $0x24] ss:$8 sps:$4 sm:$0xff]   ;;  %v5572_v32 = vld [vmem:[%s6748_s1 + $0x20] ss:$8 sps:$4 sm:$0xff]  }
 0x98b   : > { %3221 = vmatpush1.bf16.msra.mxu1 %v4937_v36  ;;  %3264 = vmatpush1.bf16.msra.mxu0 %v4939_v39  ;;  %v5581_v36 = vld [vmem:[%s6748_s1 + $0x50] ss:$8 sps:$4 sm:$0xff]   ;;  %v5586_v39 = vld [vmem:[%s6748_s1 + $0x64] ss:$8 sps:$4 sm:$0xff]  }
 0x98c   : > { %3222 = vmatprep.subr.bf16.mxu1 %v4946_v41  ;;  %3265 = vmatprep.subr.bf16.mxu0 %v4948_v42  ;;  %v5584_v41 = vld [vmem:[%s6748_s1 + $0x60] ss:$8 sps:$4 sm:$0xff]   ;;  %v5589_v42 = vld [vmem:[%s6748_s1 + $0x74] ss:$8 sps:$4 sm:$0xff]  }
 0x98f   : > { %3223 = vmatpush1.bf16.msra.mxu1 %v4945_v47  ;;  %3266 = vmatpush1.bf16.msra.mxu0 %v4947_v48  ;;  %v5593_v47 = vld [vmem:[%s6748_s1 + $0x90] ss:$8 sps:$4 sm:$0xff]   ;;  %v5598_v48 = vld [vmem:[%s6748_s1 + $0xa4] ss:$8 sps:$4 sm:$0xff]  }
 0x990   : > { %3224 = vmatprep.subr.bf16.mxu1 %v4954_v49  ;;  %3267 = vmatprep.subr.bf16.mxu0 %v4956_v50  ;;  %v5596_v49 = vld [vmem:[%s6748_s1 + $0xa0] ss:$8 sps:$4 sm:$0xff]   ;;  %v5601_v50 = vld [vmem:[%s6748_s1 + $0xb4] ss:$8 sps:$4 sm:$0xff]  }
 0x993   : > { %3225 = vmatpush1.bf16.msra.mxu1 %v4953_v55  ;;  %3268 = vmatpush1.bf16.msra.mxu0 %v4955_v56  ;;  %v5605_v55 = vld [vmem:[%s6748_s1 + $0xd0] ss:$8 sps:$4 sm:$0xff]   ;;  %v5610_v56 = vld [vmem:[%s6748_s1 + $0xe4] ss:$8 sps:$4 sm:$0xff]  }
 0x994   : > { %3226 = vmatprep.subr.bf16.mxu1 %v4962_v57  ;;  %3269 = vmatprep.subr.bf16.mxu0 %v4964_v58  ;;  %v5608_v57 = vld [vmem:[%s6748_s1 + $0xe0] ss:$8 sps:$4 sm:$0xff]   ;;  %v5613_v58 = vld [vmem:[%s6748_s1 + $0xf4] ss:$8 sps:$4 sm:$0xff]  }
 0x997   : > { %3227 = vmatpush1.bf16.msra.mxu1 %v4961_v5  ;;  %3270 = vmatpush1.bf16.msra.mxu0 %v4963_v6  ;;  %v2450_v5 = vsub.s32 3, %v6821_v0  ;;  %v2439_v6 = vrot.slane %v7187_v3, %v6827_v2 }
 0x998   : > { %3228 = vmatprep.subr.bf16.mxu1 %v4970_v8  ;;  %3271 = vmatprep.subr.bf16.mxu0 %v4972_v9  ;;  %v2447_v8 = vrot.slane %v7187_v3, %v2446_v63  ;;  %v2443_v9 = vrot.slane %v7187_v3, %v6824_v1 }
 0x999   : > { %v2451_v10 = vrot.slane %v7187_v3, %v2450_v5 }
 0x99b   : > { %3229 = vmatpush1.bf16.msra.mxu1 %v4969_v14  ;;  %3272 = vmatpush1.bf16.msra.mxu0 %v4971_v37 }
 0x99c   : > { %3230 = vmatprep.subr.bf16.mxu1 %v4978_v38  ;;  %3273 = vmatprep.subr.bf16.mxu0 %v4980_v15 }
 0x99f   : > { %3231 = vmatpush1.bf16.msra.mxu1 %v4977_v20  ;;  %3274 = vmatpush1.bf16.msra.mxu0 %v4979_v21 }
 0x9a0   : > { %3232 = vmatprep.subr.bf16.mxu1 %v4986_v22  ;;  %3275 = vmatprep.subr.bf16.mxu0 %v4988_v28 }
 0x9a3   : > { %3233 = vmatpush1.bf16.msra.mxu1 %v4985_v23  ;;  %3276 = vmatpush1.bf16.msra.mxu0 %v4987_v25 }
 0x9a4   : > { %4220 = vmatprep.subr.bf16.mxu1 %v5568_v26 }
 0x9a6   : > { %3235 = vmatmul.mubr.bf16.vlgmr.msra.gmra.mrb[12].mxu1 %v7090_v40  ;;  %3278 = vmatmul.mubr.bf16.vlgmr.msra.gmra.mrb[32].mxu0 %v7090_v40  ;;  %v5578_v40 = vld [vmem:[%s6748_s1 + $0x40] ss:$8 sps:$4 sm:$0xff]  }
 0x9a7   : > { %4221 = vmatpush1.bf16.msra.mxu1 %v5566_v27 }
 0x9a8   : > { %4222 = vmatprep.subr.bf16.mxu1 %v5571_v29 }
 0x9ab   : > { %4223 = vmatpush1.bf16.msra.mxu1 %v5569_v30 }
 0x9ac   : > { %4224 = vmatprep.subr.bf16.mxu1 %v5574_v31 }
 0x9af   : > { %4225 = vmatpush1.bf16.msra.mxu1 %v5572_v32 }
 0x9b0   : > { %4226 = vmatprep.subr.bf16.mxu1 %v5577_v24 }
 0x9b3   : > { %4227 = vmatpush1.bf16.msra.mxu1 %v5575_v33 }
 0x9b4   : > { %4228 = vmatprep.subr.bf16.mxu1 %v5580_v34 }
 0x9b7   : > { %4229 = vmatpush1.bf16.msra.mxu1 %v5578_v40 }
 0x9b8   : > { %4230 = vmatprep.subr.bf16.mxu1 %v5583_v35 }
 0x9bb   : > { %4231 = vmatpush1.bf16.msra.mxu1 %v5581_v36 }
 0x9bc   : > { %4232 = vmatprep.subr.bf16.mxu1 %v5586_v39 }
 0x9bf   : > { %4233 = vmatpush1.bf16.msra.mxu1 %v5584_v41 }
 0x9c0   : > { %4234 = vmatprep.subr.bf16.mxu1 %v5589_v42 }
 0x9c3   : > { %4235 = vmatpush1.bf16.msra.mxu1 %v5587_v43 }
 0x9c4   : > { %4236 = vmatprep.subr.bf16.mxu1 %v5592_v44 }
 0x9c7   : > { %4237 = vmatpush1.bf16.msra.mxu1 %v5590_v45 }
 0x9c8   : > { %4238 = vmatprep.subr.bf16.mxu1 %v5595_v46 }
 0x9cb   : > { %4239 = vmatpush1.bf16.msra.mxu1 %v5593_v47 }
 0x9cc   : > { %4240 = vmatprep.subr.bf16.mxu1 %v5598_v48 }
 0x9cf   : > { %4241 = vmatpush1.bf16.msra.mxu1 %v5596_v49 }
 0x9d0   : > { %4242 = vmatprep.subr.bf16.mxu1 %v5601_v50 }
 0x9d3   : > { %4243 = vmatpush1.bf16.msra.mxu1 %v5599_v51 }
 0x9d4   : > { %4244 = vmatprep.subr.bf16.mxu1 %v5604_v52 }
 0x9d7   : > { %4245 = vmatpush1.bf16.msra.mxu1 %v5602_v53 }
 0x9d8   : > { %4246 = vmatprep.subr.bf16.mxu1 %v5607_v54 }
 0x9db   : > { %4247 = vmatpush1.bf16.msra.mxu1 %v5605_v55 }
 0x9dc   : > { %4248 = vmatprep.subr.bf16.mxu1 %v5610_v56 }
 0x9df   : > { %4249 = vmatpush1.bf16.msra.mxu1 %v5608_v57 }
 0x9e0   : > { %4250 = vmatprep.subr.bf16.mxu1 %v5613_v58 }
 0x9e3   : > { %4251 = vmatpush1.bf16.msra.mxu1 %v5611_v60 }
 0x9e4   : > { %4263 = vmatprep.subr.bf16.mxu1 %v5616_v61 }
 0xa39   : > { %v3150_v11 = vpop.f32.mrb[8].mxu1  ;;  %v3193_v12 = vpop.f32.mrb[28].mxu0 }
 0xa3a   : > { %v7196_v13 = vadd.f32 %v3150_v11, %v2439_v6  ;;  %v7198_v14 = vadd.f32 %v3193_v12, %v2447_v8  ;;  %v3152_v37 = vpop.f32.mrb[9].mxu1  ;;  %v3195_v38 = vpop.f32.mrb[29].mxu0 }
 0xa3b   : > { %v7200_v15 = vadd.f32 %v3152_v37, %v2443_v9  ;;  %v7202_v16 = vadd.f32 %v3195_v38, %v2451_v10  ;;  %v3154_v17 = vpop.f32.mrb[10].mxu1  ;;  %v3197_v18 = vpop.f32.mrb[30].mxu0 }
 0xa3c   : > { %v3304_v19 = vmul.f32 0.044715, %v7196_v13  ;;  %v3306_v20 = vmul.f32 0.044715, %v7198_v14  ;;  %v3155_v21 = vadd.f32 %v3154_v17, %v2439_v6  ;;  %v3198_v22 = vadd.f32 %v3197_v18, %v2447_v8  ;;  %v3156_v28 = vpop.f32.mrb[11].mxu1  ;;  %v3199_v23 = vpop.f32.mrb[31].mxu0 }
 0xa3d   : > { %v3305_v25 = vmul.f32 0.044715, %v7200_v15  ;;  %v3307_v26 = vmul.f32 0.044715, %v7202_v16  ;;  %v7208_v27 = vadd.f32 %v3156_v28, %v2443_v9  ;;  %v7210_v29 = vadd.f32 %v3199_v23, %v2451_v10 }
 0xa3e   : > { %v3320_v30 = vmul.f32 %v3304_v19, %v7196_v13  ;;  %v3322_v31 = vmul.f32 %v3306_v20, %v7198_v14  ;;  %v3312_v32 = vmul.f32 0.044715, %v3155_v21  ;;  %v3314_v24 = vmul.f32 0.044715, %v3198_v22 }
 0xa3f   : > { %v3321_v33 = vmul.f32 %v3305_v25, %v7200_v15  ;;  %v3323_v34 = vmul.f32 %v3307_v26, %v7202_v16  ;;  %v3313_v40 = vmul.f32 0.044715, %v7208_v27  ;;  %v3315_v35 = vmul.f32 0.044715, %v7210_v29 }
 0xa40   : > { %v3336_v36 = vmul.f32 %v3320_v30, %v7196_v13  ;;  %v3338_v39 = vmul.f32 %v3322_v31, %v7198_v14  ;;  %v3328_v41 = vmul.f32 %v3312_v32, %v3155_v21  ;;  %v3330_v42 = vmul.f32 %v3314_v24, %v3198_v22 }
 0xa41   : > { %v3337_v43 = vmul.f32 %v3321_v33, %v7200_v15  ;;  %v3329_v44 = vmul.f32 %v3313_v40, %v7208_v27  ;;  %v3331_v45 = vmul.f32 %v3315_v35, %v7210_v29  ;;  %v3339_v50 = vmul.f32 %v3323_v34, %v7202_v16 }
 0xa42   : > { %v3352_v46 = vadd.f32 %v3336_v36, %v7196_v13  ;;  %v3354_v47 = vadd.f32 %v3338_v39, %v7198_v14  ;;  %v3344_v48 = vmul.f32 %v3328_v41, %v3155_v21  ;;  %v3346_v49 = vmul.f32 %v3330_v42, %v3198_v22 }
 0xa43   : > { %v3345_v51 = vmul.f32 %v3329_v44, %v7208_v27  ;;  %v3347_v52 = vmul.f32 %v3331_v45, %v7210_v29  ;;  %v3353_v57 = vadd.f32 %v3337_v43, %v7200_v15  ;;  %v3355_v6 = vadd.f32 %v3339_v50, %v7202_v16  ;;  %v5622_v50 = vld [vmem:[%s6748_s1 + $0x124] ss:$8 sps:$4 sm:$0xff]  }
 0xa44   : > { %v3368_v53 = vmul.f32 0.7978846, %v3352_v46  ;;  %v3370_v54 = vmul.f32 0.7978846, %v3354_v47  ;;  %v3360_v55 = vadd.f32 %v3344_v48, %v3155_v21  ;;  %v3362_v56 = vadd.f32 %v3346_v49, %v3198_v22  ;;  %v5614_v46 = vld [vmem:[%s6748_s1 + $0x100] ss:$8 sps:$4 sm:$0xff]  }
 0xa45   : > { %v3361_v58 = vadd.f32 %v3345_v51, %v7208_v27  ;;  %v3369_v63 = vmul.f32 0.7978846, %v3353_v57  ;;  %v3363_v8 = vadd.f32 %v3347_v52, %v7210_v29  ;;  %v3371_v9 = vmul.f32 0.7978846, %v3355_v6  ;;  %v5619_v49 = vld [vmem:[%s6748_s1 + $0x114] ss:$8 sps:$4 sm:$0xff]  }
 0xa46   : > { %5782 = vtanh.f32 %v3368_v53  ;;  %v3376_v60 = vmul.f32 0.7978846, %v3360_v55  ;;  %v3378_v61 = vmul.f32 0.7978846, %v3362_v56  ;;  %v3288_v19 = vmul.f32 0.5, %v7196_v13 }
 0xa47   : > { %5784 = vtanh.f32 %v3370_v54  ;;  %v3377_v5 = vmul.f32 0.7978846, %v3361_v58  ;;  %v3379_v10 = vmul.f32 0.7978846, %v3363_v8  ;;  %v3296_v20 = vmul.f32 0.5, %v3155_v21 }
 0xa48   : > { %5786 = vtanh.f32 %v3376_v60  ;;  %v3290_v25 = vmul.f32 0.5, %v7198_v14  ;;  %v3298_v26 = vmul.f32 0.5, %v3198_v22  ;;  %v3289_v32 = vmul.f32 0.5, %v7200_v15  ;;  %v5620_v51 = vld [vmem:[%s6748_s1 + $0x120] ss:$8 sps:$4 sm:$0xff]  }
 0xa49   : > { %5788 = vtanh.f32 %v3378_v61  ;;  %v3297_v35 = vmul.f32 0.5, %v7208_v27  ;;  %v3291_v22 = vmul.f32 0.5, %v7202_v16  ;;  %v3299_v41 = vmul.f32 0.5, %v7210_v29  ;;  %v5617_v29 = vld [vmem:[%s6748_s1 + $0x110] ss:$8 sps:$4 sm:$0xff]  }
 0xa4a   : > { %5790 = vtanh.f32 %v3369_v63  ;;  %v5625_v52 = vld [vmem:[%s6748_s1 + $0x134] ss:$8 sps:$4 sm:$0xff]   ;;  %v5623_v53 = vld [vmem:[%s6748_s1 + $0x130] ss:$8 sps:$4 sm:$0xff]   ;;  %v5628_v54 = vld [vmem:[%s6748_s1 + $0x144] ss:$8 sps:$4 sm:$0xff]  }
 0xa4b   : > { %5792 = vtanh.f32 %v3377_v5  ;;  %v5626_v55 = vld [vmem:[%s6748_s1 + $0x140] ss:$8 sps:$4 sm:$0xff]   ;;  %v5631_v56 = vld [vmem:[%s6748_s1 + $0x154] ss:$8 sps:$4 sm:$0xff]   ;;  %v5629_v57 = vld [vmem:[%s6748_s1 + $0x150] ss:$8 sps:$4 sm:$0xff]  }
 0xa4c   : > { %5794 = vtanh.f32 %v3371_v9  ;;  %v5634_v58 = vld [vmem:[%s6748_s1 + $0x164] ss:$8 sps:$4 sm:$0xff]   ;;  %v5632_v60 = vld [vmem:[%s6748_s1 + $0x160] ss:$8 sps:$4 sm:$0xff]   ;;  %v2454_v61 = vsub.s32 4, %v6821_v0  ;;  %v2462_v63 = vsub.s32 6, %v6821_v0 }
 0xa4d   : > { %5796 = vtanh.f32 %v3379_v10  ;;  %v5637_v5 = vld [vmem:[%s6748_s1 + $0x174] ss:$8 sps:$4 sm:$0xff]   ;;  %v2458_v6 = vsub.s32 5, %v6821_v0  ;;  %v2466_v8 = vsub.s32 7, %v6821_v0  ;;  %v5635_v9 = vld [vmem:[%s6748_s1 + $0x170] ss:$8 sps:$4 sm:$0xff]  }
 0xa4e   : > { %v2455_v10 = vrot.slane %v7187_v3, %v2454_v61 }
 0xa50   : > { %v5783_v11 = vpop.eup %5782 }
 0xa51   : > { %v5785_v12 = vpop.eup %5784  ;;  %v3400_v37 = vadd.f32 1.0, %v5783_v11  ;;  %v2463_v11 = vrot.slane %v7187_v3, %v2462_v63 }
 0xa52   : > { %v5787_v38 = vpop.eup %5786  ;;  %v3402_v17 = vadd.f32 1.0, %v5785_v12  ;;  %v2459_v12 = vrot.slane %v7187_v3, %v2458_v6  ;;  %v5649_v6 = vld [vmem:[%s6748_s1 + $0x1b4] ss:$8 sps:$4 sm:$0xff]  }
 0xa53   : > { %v5789_v18 = vpop.eup %5788  ;;  %v3408_v28 = vadd.f32 1.0, %v5787_v38  ;;  %v3416_v33 = vmul.f32 %v3400_v37, %v3288_v19  ;;  %v2467_v37 = vrot.slane %v7187_v3, %v2466_v8  ;;  %v5640_v38 = vld [vmem:[%s6748_s1 + $0x184] ss:$8 sps:$4 sm:$0xff]  }
 0xa54   : > { %v5791_v23 = vpop.eup %5790  ;;  %v3410_v30 = vadd.f32 1.0, %v5789_v18  ;;  %v7236_v13 = vmul.f32 %v3402_v17, %v3290_v25 }
 0xa55   : > { %v5793_v31 = vpop.eup %5792  ;;  %v3401_v24 = vadd.f32 1.0, %v5791_v23  ;;  %v3424_v34 = vmul.f32 %v3408_v28, %v3296_v20  ;;  %v5638_v23 = vld [vmem:[%s6748_s1 + $0x180] ss:$8 sps:$4 sm:$0xff]  }
 0xa56   : > { %v5795_v40 = vpop.eup %5794  ;;  %v3409_v36 = vadd.f32 1.0, %v5793_v31  ;;  %v7238_v21 = vmul.f32 %v3410_v30, %v3298_v26 }
 0xa57   : > { %v5797_v39 = vpop.eup %5796  ;;  %v3432_v14 = vpack.c.bf16 %v3424_v34, %v3416_v33  ;;  %v3403_v15 = vadd.f32 1.0, %v5795_v40  ;;  %v3417_v42 = vmul.f32 %v3401_v24, %v3289_v32  ;;  %v5643_v32 = vld [vmem:[%s6748_s1 + $0x194] ss:$8 sps:$4 sm:$0xff]  }
 0xa58   : > { %v3425_v43 = vmul.f32 %v3409_v36, %v3297_v35  ;;  %v3411_v44 = vadd.f32 1.0, %v5797_v39  ;;  %v3434_v27 = vpack.c.bf16 %v7238_v21, %v7236_v13  ;;  %v5676_v13 = vld [vmem:[%s6748_s1 + $0x244] ss:$8 sps:$4 sm:$0xff]   ;;  %v5674_v21 = vld [vmem:[%s6748_s1 + $0x240] ss:$8 sps:$4 sm:$0xff]  }
 0xa59   : > { %v3419_v47 = vmul.f32 %v3403_v15, %v3291_v22 }
 0xa5a   : > { %v3433_v45 = vpack.c.bf16 %v3425_v43, %v3417_v42  ;;  %v3427_v48 = vmul.f32 %v3411_v44, %v3299_v41  ;;  %v5641_v44 = vld [vmem:[%s6748_s1 + $0x190] ss:$8 sps:$4 sm:$0xff]  }
 0xa5c   : > { %4252 = vmatprep.mubr.bf16.mxu1 %v3433_v45  ;;  %v3435_v16 = vpack.c.bf16 %v3427_v48, %v3419_v47 }
 0xa5d   : > { %4253 = vmatmul.mubr.bf16.vlgmr.msra.gmra.mrb[16].mxu1 %v3432_v14 }
 0xa5e   : > { %4264 = vmatpush1.bf16.msra.mxu1 %v5614_v46  ;;  %4295 = vmatprep.mubr.bf16.mxu1 %v3435_v16 }
 0xa5f   : > { %4265 = vmatprep.subr.bf16.mxu1 %v5619_v49  ;;  %v5646_v49 = vld [vmem:[%s6748_s1 + $0x1a4] ss:$8 sps:$4 sm:$0xff]  }
 0xa62   : > { %4266 = vmatpush1.bf16.msra.mxu1 %v5617_v29 }
 0xa63   : > { %4267 = vmatprep.subr.bf16.mxu1 %v5622_v50 }
 0xa66   : > { %4268 = vmatpush1.bf16.msra.mxu1 %v5620_v51 }
 0xa67   : > { %4269 = vmatprep.subr.bf16.mxu1 %v5625_v52 }
 0xa6a   : > { %4270 = vmatpush1.bf16.msra.mxu1 %v5623_v53 }
 0xa6b   : > { %4271 = vmatprep.subr.bf16.mxu1 %v5628_v54 }
 0xa6e   : > { %4272 = vmatpush1.bf16.msra.mxu1 %v5626_v55 }
 0xa6f   : > { %4273 = vmatprep.subr.bf16.mxu1 %v5631_v56 }
 0xa72   : > { %4274 = vmatpush1.bf16.msra.mxu1 %v5629_v57 }
 0xa73   : > { %4275 = vmatprep.subr.bf16.mxu1 %v5634_v58 }
 0xa76   : > { %4276 = vmatpush1.bf16.msra.mxu1 %v5632_v60  ;;  %v5644_v60 = vld [vmem:[%s6748_s1 + $0x1a0] ss:$8 sps:$4 sm:$0xff]  }
 0xa77   : > { %4277 = vmatprep.subr.bf16.mxu1 %v5637_v5 }
 0xa79   : > { %v3236_v17 = vpop.f32.mrb[12].mxu1  ;;  %v3279_v18 = vpop.f32.mrb[32].mxu0 }
 0xa7a   : > { %4278 = vmatpush1.bf16.msra.mxu1 %v5635_v9  ;;  %v7268_v19 = vadd.f32 %v3236_v17, %v2455_v10  ;;  %v7270_v0 = vadd.f32 %v3279_v18, %v2463_v11  ;;  %v3238_v20 = vpop.f32.mrb[13].mxu1  ;;  %v3281_v28 = vpop.f32.mrb[33].mxu0  ;;  %v5647_v18 = vld [vmem:[%s6748_s1 + $0x1b0] ss:$8 sps:$4 sm:$0xff]  }
 0xa7b   : > { %v7273_v25 = vadd.f32 %v3238_v20, %v2459_v12  ;;  %v7275_v26 = vadd.f32 %v3281_v28, %v2467_v37  ;;  %v3240_v30 = vpop.f32.mrb[14].mxu1  ;;  %v3283_v31 = vpop.f32.mrb[34].mxu0  ;;  %4279 = vmatprep.subr.bf16.mxu1 %v5640_v38  ;;  %v5652_v20 = vld [vmem:[%s6748_s1 + $0x1c4] ss:$8 sps:$4 sm:$0xff]  }
 0xa7c   : > { %v3308_v3 = vmul.f32 0.044715, %v7268_v19  ;;  %v3310_v24 = vmul.f32 0.044715, %v7270_v0  ;;  %v7280_v33 = vadd.f32 %v3240_v30, %v2455_v10  ;;  %v7282_v34 = vadd.f32 %v3283_v31, %v2463_v11  ;;  %v3242_v40 = vpop.f32.mrb[15].mxu1  ;;  %v3285_v35 = vpop.f32.mrb[35].mxu0 }
 0xa7d   : > { %v3309_v36 = vmul.f32 0.044715, %v7273_v25  ;;  %v3311_v39 = vmul.f32 0.044715, %v7275_v26  ;;  %v7286_v14 = vadd.f32 %v3242_v40, %v2459_v12  ;;  %v7288_v22 = vadd.f32 %v3285_v35, %v2467_v37  ;;  %v5655_v40 = vld [vmem:[%s6748_s1 + $0x1d4] ss:$8 sps:$4 sm:$0xff]  }
 0xa7e   : > { %v3324_v41 = vmul.f32 %v3308_v3, %v7268_v19  ;;  %v3326_v15 = vmul.f32 %v3310_v24, %v7270_v0  ;;  %v3316_v42 = vmul.f32 0.044715, %v7280_v33  ;;  %v3318_v43 = vmul.f32 0.044715, %v7282_v34  ;;  %4280 = vmatpush1.bf16.msra.mxu1 %v5638_v23  ;;  %v5653_v35 = vld [vmem:[%s6748_s1 + $0x1d0] ss:$8 sps:$4 sm:$0xff]  }
 0xa7f   : > { %v3325_v45 = vmul.f32 %v3309_v36, %v7273_v25  ;;  %v3327_v46 = vmul.f32 %v3311_v39, %v7275_v26  ;;  %v3317_v47 = vmul.f32 0.044715, %v7286_v14  ;;  %v3319_v48 = vmul.f32 0.044715, %v7288_v22  ;;  %4281 = vmatprep.subr.bf16.mxu1 %v5643_v32  ;;  %v5650_v32 = vld [vmem:[%s6748_s1 + $0x1c0] ss:$8 sps:$4 sm:$0xff]  }
 0xa80   : > { %v3340_v16 = vmul.f32 %v3324_v41, %v7268_v19  ;;  %v3342_v29 = vmul.f32 %v3326_v15, %v7270_v0  ;;  %v3332_v50 = vmul.f32 %v3316_v42, %v7280_v33  ;;  %v3334_v51 = vmul.f32 %v3318_v43, %v7282_v34  ;;  %v5658_v36 = vld [vmem:[%s6748_s1 + $0x1e4] ss:$8 sps:$4 sm:$0xff]   ;;  %v5656_v43 = vld [vmem:[%s6748_s1 + $0x1e0] ss:$8 sps:$4 sm:$0xff]  }
 0xa81   : > { %v3341_v52 = vmul.f32 %v3325_v45, %v7273_v25  ;;  %v3333_v53 = vmul.f32 %v3317_v47, %v7286_v14  ;;  %v3335_v54 = vmul.f32 %v3319_v48, %v7288_v22  ;;  %v3343_v61 = vmul.f32 %v3327_v46, %v7275_v26  ;;  %v5661_v46 = vld [vmem:[%s6748_s1 + $0x1f4] ss:$8 sps:$4 sm:$0xff]  }
 0xa82   : > { %v3356_v55 = vadd.f32 %v3340_v16, %v7268_v19  ;;  %v3358_v56 = vadd.f32 %v3342_v29, %v7270_v0  ;;  %v3348_v57 = vmul.f32 %v3332_v50, %v7280_v33  ;;  %v3350_v58 = vmul.f32 %v3334_v51, %v7282_v34  ;;  %4282 = vmatpush1.bf16.msra.mxu1 %v5641_v44 }
 0xa83   : > { %v3349_v63 = vmul.f32 %v3333_v53, %v7286_v14  ;;  %v3351_v5 = vmul.f32 %v3335_v54, %v7288_v22  ;;  %4283 = vmatprep.subr.bf16.mxu1 %v5646_v49  ;;  %v3357_v12 = vadd.f32 %v3341_v52, %v7273_v25  ;;  %v3359_v30 = vadd.f32 %v3343_v61, %v7275_v26 }
 0xa84   : > { %v3372_v8 = vmul.f32 0.7978846, %v3356_v55  ;;  %v3374_v9 = vmul.f32 0.7978846, %v3358_v56  ;;  %v3364_v10 = vadd.f32 %v3348_v57, %v7280_v33  ;;  %v3366_v11 = vadd.f32 %v3350_v58, %v7282_v34 }
 0xa85   : > { %v3365_v37 = vadd.f32 %v3349_v63, %v7286_v14  ;;  %v3373_v28 = vmul.f32 0.7978846, %v3357_v12  ;;  %v3367_v31 = vadd.f32 %v3351_v5, %v7288_v22  ;;  %v3375_v3 = vmul.f32 0.7978846, %v3359_v30  ;;  %v5677_v30 = vld [vmem:[%s6748_s1 + $0x250] ss:$8 sps:$4 sm:$0xff]  }
 0xa86   : > { %5798 = vtanh.f32 %v3372_v8  ;;  %v3380_v38 = vmul.f32 0.7978846, %v3364_v10  ;;  %v3382_v17 = vmul.f32 0.7978846, %v3366_v11  ;;  %4284 = vmatpush1.bf16.msra.mxu1 %v5644_v60  ;;  %v3292_v47 = vmul.f32 0.5, %v7268_v19 }
 0xa87   : > { %5800 = vtanh.f32 %v3374_v9  ;;  %4285 = vmatprep.subr.bf16.mxu1 %v5649_v6  ;;  %v3381_v23 = vmul.f32 0.7978846, %v3365_v37  ;;  %v3383_v24 = vmul.f32 0.7978846, %v3367_v31  ;;  %v3300_v48 = vmul.f32 0.5, %v7280_v33 }
 0xa88   : > { %5802 = vtanh.f32 %v3380_v38  ;;  %v3294_v29 = vmul.f32 0.5, %v7270_v0  ;;  %v3302_v50 = vmul.f32 0.5, %v7282_v34  ;;  %v3293_v53 = vmul.f32 0.5, %v7273_v25  ;;  %v5659_v19 = vld [vmem:[%s6748_s1 + $0x1f0] ss:$8 sps:$4 sm:$0xff]  }
 0xa89   : > { %5804 = vtanh.f32 %v3382_v17  ;;  %v3301_v33 = vmul.f32 0.5, %v7286_v14  ;;  %v5664_v25 = vld [vmem:[%s6748_s1 + $0x204] ss:$8 sps:$4 sm:$0xff]   ;;  %v3295_v63 = vmul.f32 0.5, %v7275_v26  ;;  %v3303_v5 = vmul.f32 0.5, %v7288_v22 }
 0xa8a   : > { %4286 = vmatpush1.bf16.msra.mxu1 %v5647_v18  ;;  %5806 = vtanh.f32 %v3373_v28  ;;  %v5662_v11 = vld [vmem:[%s6748_s1 + $0x200] ss:$8 sps:$4 sm:$0xff]   ;;  %v5667_v22 = vld [vmem:[%s6748_s1 + $0x214] ss:$8 sps:$4 sm:$0xff]   ;;  %v5665_v17 = vld [vmem:[%s6748_s1 + $0x210] ss:$8 sps:$4 sm:$0xff]  }
 0xa8b   : > { %4287 = vmatprep.subr.bf16.mxu1 %v5652_v20  ;;  %5808 = vtanh.f32 %v3381_v23  ;;  %v5670_v18 = vld [vmem:[%s6748_s1 + $0x224] ss:$8 sps:$4 sm:$0xff]   ;;  %v5668_v20 = vld [vmem:[%s6748_s1 + $0x220] ss:$8 sps:$4 sm:$0xff]   ;;  %v5673_v28 = vld [vmem:[%s6748_s1 + $0x234] ss:$8 sps:$4 sm:$0xff]  }
 0xa8c   : > { %5810 = vtanh.f32 %v3375_v3  ;;  %v5671_v23 = vld [vmem:[%s6748_s1 + $0x230] ss:$8 sps:$4 sm:$0xff]   ;;  %v5682_v31 = vld [vmem:[%s6748_s1 + $0x264] ss:$8 sps:$4 sm:$0xff]   ;;  %v5685_v3 = vld [vmem:[%s6748_s1 + $0x274] ss:$8 sps:$4 sm:$0xff]  }
 0xa8d   : > { %5812 = vtanh.f32 %v3383_v24  ;;  %v5683_v24 = vld [vmem:[%s6748_s1 + $0x270] ss:$8 sps:$4 sm:$0xff]  }
 0xa8e   : > { %4288 = vmatpush1.bf16.msra.mxu1 %v5650_v32  ;;  %v5680_v32 = vld [vmem:[%s6748_s1 + $0x260] ss:$8 sps:$4 sm:$0xff]  }
 0xa8f   : > { %4289 = vmatprep.subr.bf16.mxu1 %v5655_v40  ;;  %v5688_v40 = vld [vmem:[%s6748_s1 + $0x284] ss:$8 sps:$4 sm:$0xff]  }
 0xa90   : > { %v5799_v39 = vpop.eup %5798 }
 0xa91   : > { %v5801_v41 = vpop.eup %5800  ;;  %v3404_v15 = vadd.f32 1.0, %v5799_v39  ;;  %v5689_v39 = vld [vmem:[%s6748_s1 + $0x290] ss:$8 sps:$4 sm:$0xff]  }
 0xa92   : > { %v5803_v42 = vpop.eup %5802  ;;  %4290 = vmatpush1.bf16.msra.mxu1 %v5653_v35  ;;  %v3406_v44 = vadd.f32 1.0, %v5801_v41  ;;  %v5686_v35 = vld [vmem:[%s6748_s1 + $0x280] ss:$8 sps:$4 sm:$0xff]   ;;  %v5694_v41 = vld [vmem:[%s6748_s1 + $0x2a4] ss:$8 sps:$4 sm:$0xff]  }
 0xa93   : > { %v5805_v45 = vpop.eup %5804  ;;  %4291 = vmatprep.subr.bf16.mxu1 %v5658_v36  ;;  %v3412_v49 = vadd.f32 1.0, %v5803_v42  ;;  %v7335_v55 = vmul.f32 %v3404_v15, %v3292_v47  ;;  %v5691_v36 = vld [vmem:[%s6748_s1 + $0x294] ss:$8 sps:$4 sm:$0xff]   ;;  %v5692_v15 = vld [vmem:[%s6748_s1 + $0x2a0] ss:$8 sps:$4 sm:$0xff]  }
 0xa94   : > { %v5807_v16 = vpop.eup %5806  ;;  %v3414_v51 = vadd.f32 1.0, %v5805_v45  ;;  %v7341_v0 = vmul.f32 %v3406_v44, %v3294_v29  ;;  %v5697_v42 = vld [vmem:[%s6748_s1 + $0x2b4] ss:$8 sps:$4 sm:$0xff]   ;;  %v5700_v44 = vld [vmem:[%s6748_s1 + $0x2c4] ss:$8 sps:$4 sm:$0xff]  }
 0xa95   : > { %v5809_v52 = vpop.eup %5808  ;;  %v3405_v54 = vadd.f32 1.0, %v5807_v16  ;;  %v7337_v56 = vmul.f32 %v3412_v49, %v3300_v48  ;;  %v5698_v45 = vld [vmem:[%s6748_s1 + $0x2c0] ss:$8 sps:$4 sm:$0xff]   ;;  %v5701_v47 = vld [vmem:[%s6748_s1 + $0x2d0] ss:$8 sps:$4 sm:$0xff]  }
 0xa96   : > { %v5811_v57 = vpop.eup %5810  ;;  %4292 = vmatpush1.bf16.msra.mxu1 %v5656_v43  ;;  %v3413_v58 = vadd.f32 1.0, %v5809_v52  ;;  %v7343_v34 = vmul.f32 %v3414_v51, %v3302_v50  ;;  %v5695_v43 = vld [vmem:[%s6748_s1 + $0x2b0] ss:$8 sps:$4 sm:$0xff]   ;;  %v5706_v48 = vld [vmem:[%s6748_s1 + $0x2e4] ss:$8 sps:$4 sm:$0xff]  }
 0xa97   : > { %v5813_v60 = vpop.eup %5812  ;;  %4293 = vmatprep.subr.bf16.mxu1 %v5661_v46  ;;  %v3436_v61 = vpack.c.bf16 %v7337_v56, %v7335_v55  ;;  %v3407_v6 = vadd.f32 1.0, %v5811_v57  ;;  %v3421_v14 = vmul.f32 %v3405_v54, %v3293_v53  ;;  %v5703_v46 = vld [vmem:[%s6748_s1 + $0x2d4] ss:$8 sps:$4 sm:$0xff]   ;;  %v5704_v49 = vld [vmem:[%s6748_s1 + $0x2e0] ss:$8 sps:$4 sm:$0xff]  }
 0xa98   : > { %v3429_v8 = vmul.f32 %v3413_v58, %v3301_v33  ;;  %v3415_v9 = vadd.f32 1.0, %v5813_v60  ;;  %v3438_v10 = vpack.c.bf16 %v7343_v34, %v7341_v0  ;;  %v5709_v16 = vld [vmem:[%s6748_s1 + $0x2f4] ss:$8 sps:$4 sm:$0xff]   ;;  %v5707_v29 = vld [vmem:[%s6748_s1 + $0x2f0] ss:$8 sps:$4 sm:$0xff]  }
 0xa99   : > { %v7353_v37 = vmul.f32 %v3407_v6, %v3295_v63  ;;  %v5712_v50 = vld [vmem:[%s6748_s1 + $0x304] ss:$8 sps:$4 sm:$0xff]   ;;  %v5710_v51 = vld [vmem:[%s6748_s1 + $0x300] ss:$8 sps:$4 sm:$0xff]   ;;  %v5715_v52 = vld [vmem:[%s6748_s1 + $0x314] ss:$8 sps:$4 sm:$0xff]  }
 0xa9a   : > { %4294 = vmatpush1.bf16.msra.mxu1 %v5659_v19  ;;  %v3437_v12 = vpack.c.bf16 %v3429_v8, %v3421_v14  ;;  %v7355_v26 = vmul.f32 %v3415_v9, %v3303_v5  ;;  %v5713_v53 = vld [vmem:[%s6748_s1 + $0x310] ss:$8 sps:$4 sm:$0xff]   ;;  %v5718_v54 = vld [vmem:[%s6748_s1 + $0x324] ss:$8 sps:$4 sm:$0xff]   ;;  %v5716_v57 = vld [vmem:[%s6748_s1 + $0x320] ss:$8 sps:$4 sm:$0xff]  }
 0xa9b   : > { %4306 = vmatprep.subr.bf16.mxu1 %v5664_v25  ;;  %v5721_v19 = vld [vmem:[%s6748_s1 + $0x334] ss:$8 sps:$4 sm:$0xff]   ;;  %v5719_v55 = vld [vmem:[%s6748_s1 + $0x330] ss:$8 sps:$4 sm:$0xff]   ;;  %v5724_v56 = vld [vmem:[%s6748_s1 + $0x344] ss:$8 sps:$4 sm:$0xff]  }
 0xa9c   : > { %v3439_v38 = vpack.c.bf16 %v7355_v26, %v7353_v37  ;;  %v5722_v33 = vld [vmem:[%s6748_s1 + $0x340] ss:$8 sps:$4 sm:$0xff]   ;;  %v5727_v58 = vld [vmem:[%s6748_s1 + $0x354] ss:$8 sps:$4 sm:$0xff]   ;;  %v5725_v60 = vld [vmem:[%s6748_s1 + $0x350] ss:$8 sps:$4 sm:$0xff]  }
 0xa9d   : > { %4296 = vmatmul.mubr.bf16.vlgmr.msra.gmra.mrb[16].mxu1 %v3434_v27  ;;  %v5679_v27 = vld [vmem:[%s6748_s1 + $0x254] ss:$8 sps:$4 sm:$0xff]   ;;  %v5730_v25 = vld [vmem:[%s6748_s1 + $0x364] ss:$8 sps:$4 sm:$0xff]   ;;  %v5731_v5 = vld [vmem:[%s6748_s1 + $0x370] ss:$8 sps:$4 sm:$0xff]  }
 0xa9e   : > { %4307 = vmatpush1.bf16.msra.mxu1 %v5662_v11  ;;  %4338 = vmatprep.mubr.bf16.mxu1 %v3437_v12  ;;  %v5733_v63 = vld [vmem:[%s6748_s1 + $0x374] ss:$8 sps:$4 sm:$0xff]   ;;  %v5736_v6 = vld [vmem:[%s6748_s1 + $0x384] ss:$8 sps:$4 sm:$0xff]   ;;  %v5734_v14 = vld [vmem:[%s6748_s1 + $0x380] ss:$8 sps:$4 sm:$0xff]  }
 0xa9f   : > { %4308 = vmatprep.subr.bf16.mxu1 %v5667_v22  ;;  %v5739_v8 = vld [vmem:[%s6748_s1 + $0x394] ss:$8 sps:$4 sm:$0xff]   ;;  %v5737_v9 = vld [vmem:[%s6748_s1 + $0x390] ss:$8 sps:$4 sm:$0xff]   ;;  %v5742_v11 = vld [vmem:[%s6748_s1 + $0x3a4] ss:$8 sps:$4 sm:$0xff]  }
 0xaa0   : > { %v5740_v12 = vld [vmem:[%s6748_s1 + $0x3a0] ss:$8 sps:$4 sm:$0xff]   ;;  %v5745_v37 = vld [vmem:[%s6748_s1 + $0x3b4] ss:$8 sps:$4 sm:$0xff]   ;;  %v5743_v26 = vld [vmem:[%s6748_s1 + $0x3b0] ss:$8 sps:$4 sm:$0xff]  }
 0xaa1   : > { %v5748_v22 = vld [vmem:[%s6748_s1 + $0x3c4] ss:$8 sps:$4 sm:$0xff]  }
 0xaa2   : > { %4309 = vmatpush1.bf16.msra.mxu1 %v5665_v17  ;;  %v5751_v17 = vld [vmem:[%s6748_s1 + $0x3d4] ss:$8 sps:$4 sm:$0xff]  }
 0xaa3   : > { %4310 = vmatprep.subr.bf16.mxu1 %v5670_v18  ;;  %v5749_v18 = vld [vmem:[%s6748_s1 + $0x3d0] ss:$8 sps:$4 sm:$0xff]  }
 0xaa6   : > { %4311 = vmatpush1.bf16.msra.mxu1 %v5668_v20  ;;  %v5754_v20 = vld [vmem:[%s6748_s1 + $0x3e4] ss:$8 sps:$4 sm:$0xff]  }
 0xaa7   : > { %4312 = vmatprep.subr.bf16.mxu1 %v5673_v28  ;;  %v5752_v28 = vld [vmem:[%s6748_s1 + $0x3e0] ss:$8 sps:$4 sm:$0xff]  }
 0xaaa   : > { %4313 = vmatpush1.bf16.msra.mxu1 %v5671_v23  ;;  %v5757_v23 = vld [vmem:[%s6748_s1 + $0x3f4] ss:$8 sps:$4 sm:$0xff]  }
 0xaab   : > { %4314 = vmatprep.subr.bf16.mxu1 %v5676_v13  ;;  %v5755_v13 = vld [vmem:[%s6748_s1 + $0x3f0] ss:$8 sps:$4 sm:$0xff]  }
 0xaae   : > { %4315 = vmatpush1.bf16.msra.mxu1 %v5674_v21  ;;  %v3568_v21 = vld [vmem:[%s776_s27] sm:$0x3]  ;;  %s7664_s27 = sld [smem:[#allocation29_spill]] }
 0xaaf   : > { %4316 = vmatprep.subr.bf16.mxu1 %v5679_v27  ;;  %v3573_v27 = vrot.slane %v3568_v21, %v6827_v2 }
 0xab2   : > { %4317 = vmatpush1.bf16.msra.mxu1 %v5677_v30  ;;  %v3577_v30 = vrot.slane %v3568_v21, %v6824_v1 }
 0xab3   : > { %4318 = vmatprep.subr.bf16.mxu1 %v5682_v31 }
 0xab4   : > { %p5117_p12 = scmp.ne.s32.totalorder %s7664_s27, 1 }
 0xab6   : > { %4319 = vmatpush1.bf16.msra.mxu1 %v5680_v32 }
 0xab7   : > { %4320 = vmatprep.subr.bf16.mxu1 %v5685_v3 }
 0xaba   : > { %4321 = vmatpush1.bf16.msra.mxu1 %v5683_v24 }
 0xabb   : > { %4322 = vmatprep.subr.bf16.mxu1 %v5688_v40 }
 0xabe   : > { %4323 = vmatpush1.bf16.msra.mxu1 %v5686_v35 }
 0xabf   : > { %4324 = vmatprep.subr.bf16.mxu1 %v5691_v36 }
 0xac2   : > { %4325 = vmatpush1.bf16.msra.mxu1 %v5689_v39 }
 0xac3   : > { %4326 = vmatprep.subr.bf16.mxu1 %v5694_v41 }
 0xac6   : > { %4327 = vmatpush1.bf16.msra.mxu1 %v5692_v15 }
 0xac7   : > { %4328 = vmatprep.subr.bf16.mxu1 %v5697_v42 }
 0xaca   : > { %4329 = vmatpush1.bf16.msra.mxu1 %v5695_v43 }
 0xacb   : > { %4330 = vmatprep.subr.bf16.mxu1 %v5700_v44 }
 0xace   : > { %4331 = vmatpush1.bf16.msra.mxu1 %v5698_v45 }
 0xacf   : > { %4332 = vmatprep.subr.bf16.mxu1 %v5703_v46 }
 0xad2   : > { %4333 = vmatpush1.bf16.msra.mxu1 %v5701_v47 }
 0xad3   : > { %4334 = vmatprep.subr.bf16.mxu1 %v5706_v48 }
 0xad6   : > { %4335 = vmatpush1.bf16.msra.mxu1 %v5704_v49 }
 0xad7   : > { %4336 = vmatprep.subr.bf16.mxu1 %v5709_v16 }
 0xada   : > { %4337 = vmatpush1.bf16.msra.mxu1 %v5707_v29 }
 0xadb   : > { %4349 = vmatprep.subr.bf16.mxu1 %v5712_v50 }
 0xadd   : > { %4339 = vmatmul.mubr.bf16.vlgmr.msra.gmra.mrb[16].mxu1 %v3436_v61  ;;  %v5728_v61 = vld [vmem:[%s6748_s1 + $0x360] ss:$8 sps:$4 sm:$0xff]  }
 0xade   : > { %4350 = vmatpush1.bf16.msra.mxu1 %v5710_v51  ;;  %4381 = vmatprep.mubr.bf16.mxu1 %v3439_v38  ;;  %v5746_v38 = vld [vmem:[%s6748_s1 + $0x3c0] ss:$8 sps:$4 sm:$0xff]  }
 0xadf   : > { %4351 = vmatprep.subr.bf16.mxu1 %v5715_v52 }
 0xae2   : > { %4352 = vmatpush1.bf16.msra.mxu1 %v5713_v53 }
 0xae3   : > { %4353 = vmatprep.subr.bf16.mxu1 %v5718_v54 }
 0xae6   : > { %4354 = vmatpush1.bf16.msra.mxu1 %v5716_v57 }
 0xae7   : > { %4355 = vmatprep.subr.bf16.mxu1 %v5721_v19 }
 0xaea   : > { %4356 = vmatpush1.bf16.msra.mxu1 %v5719_v55 }
 0xaeb   : > { %4357 = vmatprep.subr.bf16.mxu1 %v5724_v56 }
 0xaee   : > { %4358 = vmatpush1.bf16.msra.mxu1 %v5722_v33 }
 0xaef   : > { %4359 = vmatprep.subr.bf16.mxu1 %v5727_v58 }
 0xaf2   : > { %4360 = vmatpush1.bf16.msra.mxu1 %v5725_v60 }
 0xaf3   : > { %4361 = vmatprep.subr.bf16.mxu1 %v5730_v25 }
 0xaf6   : > { %4362 = vmatpush1.bf16.msra.mxu1 %v5728_v61 }
 0xaf7   : > { %4363 = vmatprep.subr.bf16.mxu1 %v5733_v63 }
 0xafa   : > { %4364 = vmatpush1.bf16.msra.mxu1 %v5731_v5 }
 0xafb   : > { %4365 = vmatprep.subr.bf16.mxu1 %v5736_v6 }
 0xafe   : > { %4366 = vmatpush1.bf16.msra.mxu1 %v5734_v14 }
 0xaff   : > { %4367 = vmatprep.subr.bf16.mxu1 %v5739_v8 }
 0xb02   : > { %4368 = vmatpush1.bf16.msra.mxu1 %v5737_v9 }
 0xb03   : > { %4369 = vmatprep.subr.bf16.mxu1 %v5742_v11 }
 0xb06   : > { %4370 = vmatpush1.bf16.msra.mxu1 %v5740_v12 }
 0xb07   : > { %4371 = vmatprep.subr.bf16.mxu1 %v5745_v37 }
 0xb0a   : > { %4372 = vmatpush1.bf16.msra.mxu1 %v5743_v26 }
 0xb0b   : > { %4373 = vmatprep.subr.bf16.mxu1 %v5748_v22 }
 0xb0e   : > { %4374 = vmatpush1.bf16.msra.mxu1 %v5746_v38 }
 0xb0f   : > { %4375 = vmatprep.subr.bf16.mxu1 %v5751_v17 }
 0xb12   : > { %4376 = vmatpush1.bf16.msra.mxu1 %v5749_v18 }
 0xb13   : > { %4377 = vmatprep.subr.bf16.mxu1 %v5754_v20 }
 0xb16   : > { %4378 = vmatpush1.bf16.msra.mxu1 %v5752_v28 }
 0xb17   : > { %4379 = vmatprep.subr.bf16.mxu1 %v5757_v23 }
 0xb1a   : > { %4380 = vmatpush1.bf16.msra.mxu1 %v5755_v13 }
 0xb1d   : > { %4382 = vmatmul.mubr.bf16.vlgmr.msra.gmra.mrb[16].mxu1 %v3438_v10 }
 0xbf0   : > { %v4383_v31 = vpop.f32.mrb[16].mxu1 }
 0xbf1   : > { %v5205_v32 = vadd.f32 %v4383_v31, %v3573_v27  ;;  %v4385_v3 = vpop.f32.mrb[17].mxu1 }
 0xbf2   : > { %v5206_v24 = vadd.f32 %v4385_v3, %v3577_v30  ;;  %v4387_v40 = vpop.f32.mrb[18].mxu1  ;;  %4403 = sbr.rel (%p5117_p12) target bundleno = 3065 (0xbf9), region = 112 }
 0xbf3   : > { %v4392_v35 = vadd.f32 %v5205_v32, %v6972_v59  ;;  %v5207_v36 = vadd.f32 %v4387_v40, %v3573_v27  ;;  %v4389_v39 = vpop.f32.mrb[19].mxu1 }
 0xbf4   : > { %v4393_v0 = vadd.f32 %v5206_v24, %v6974_v62  ;;  %v5208_v34 = vadd.f32 %v4389_v39, %v3577_v30 }
 0xbf5   : > { %4396 = vst [vmem:[#allocation2] sm:$0xff] %v4392_v35  ;;  %v4394_v10 = vadd.f32 %v5207_v36, %v6976_v4  ;;  %4404 = vst [vmem:[%s6781_s5] sm:$0xff] (!%p5117_p12), %v4392_v35 }
 0xbf6   : > { %4397 = vst [vmem:[#allocation2 + $0x8] sm:$0xff] %v4393_v0  ;;  %v4395_v2 = vadd.f32 %v5208_v34, %v6978_v7  ;;  %4405 = vst [vmem:[%s6781_s5 + $0x8] sm:$0xff] (!%p5117_p12), %v4393_v0 }
 0xbf7   : > { %4398 = vst [vmem:[#allocation2 + $0x10] sm:$0xff] %v4394_v10  ;;  %4406 = vst [vmem:[%s6781_s5 + $0x10] sm:$0xff] (!%p5117_p12), %v4394_v10 }
 0xbf8   : > { %4399 = vst [vmem:[#allocation2 + $0x18] sm:$0xff] %v4395_v2  ;;  %4407 = vst [vmem:[%s6781_s5 + $0x18] sm:$0xff] (!%p5117_p12), %v4395_v2 }
 0xbf9 PF: > { %s7665_s10 = sld [smem:[#allocation30_spill]]  ;;  %s7666_s20 = sld [smem:[#allocation40_spill]] }
 0xbfa   : > { %s7667_s21 = sld [smem:[#allocation57_spill]]  ;;  %s4422_s28 = sshll.u32 %s6781_s5, 4  ;;  %s7456_s28 = int_to_ptr.vmem [resolvable:$true] %s4422_s28 }
 0xbfb   : > { %s4409_s17 = scalar_lea.sflag [#allocation5], %s6714_s0  ;;  %s6054_s4 = scalar_lea.vmem %s7456_s28, 512 }
 0xbfc   : > { %p6055_p3 = scmp.ne.s32.totalorder %s7456_s28, %s6054_s4  ;;  %s6214_s12 = smov [#allocation17]  }
 0xbfd   : > { %s6058_s26 = sshll.u32 %s6214_s12, 4  ;;  %s6059_s26 = int_to_ptr.vmem [resolvable:$false] %s6058_s26 }
 0xbfe   : > { %s6060_s25 = scalar_lea.vmem %s6059_s26, 1024  ;;  %p6061_p6 = scmp.lt.s32.totalorder %s7456_s28, %s6059_s26 }
 0xbff   : > { %s5128_s1 = sshll.u32 %s7665_s10, 9  ;;  %p7668_p13 = scmp.ne.s32.totalorder %s7666_s20, 0 }
 0xc00   : > { %s7453_s22 = scalar_lea.hbm %s7667_s21, %s5128_s1  ;;  %p6062_p11 = scmp.lt.s32.totalorder %s6060_s25, %s6054_s4 }
 0xc01   : > { %p6056_p7 = pnand %p6055_p3, %p7668_p13 }
 0xc02   : > { %p6063_p8 = por %p6062_p11, %p6061_p6 }
 0xc03   : > { %p6057_p5 = pneg %p6056_p7 }
 0xc05   : > { %p6064_p4 = pnand %p6063_p8, %p6057_p5 }
 0xc07   : > { %6067 = shalt.err (!%p6064_p4)
}
 0xc08   : > { %s6068_s7 = scalar_lea.hbm %s7453_s22, 512  ;;  %s6072_s2 = scalar_lea.hbm %s7667_s21, 1024 }
 0xc09   : > { %p6069_p1 = scmp.ne.s32.totalorder %s7453_s22, %s6068_s7  ;;  %p6073_p0 = scmp.lt.u32.totalorder %s7453_s22, %s7667_s21 }
 0xc0a   : > { %p6074_p9 = scmp.lt.u32.totalorder %s6072_s2, %s6068_s7  ;;  %p6076_p3 = scmp.lt.u32.totalorder %s6068_s7, %s7453_s22 }
 0xc0b   : > { %p6070_p2 = pnand %p6069_p1, %p7668_p13 }
 0xc0c   : > { %p6075_p12 = por %p6074_p9, %p6073_p0 }
 0xc0d   : > { %p6071_p10 = pneg %p6070_p2 }
 0xc0e   : > { %p6077_p7 = por %p6076_p3, %p6075_p12 }
 0xc10   : > { %p6078_p5 = pnand %p6077_p7, %p6071_p10 }
 0xc12   : > { %6081 = shalt.err (!%p6078_p5)
}
 0xc13   : > { %s6215_s16 = smov 256   ;;  %s6216_s18 = smov 16  }
 0xc14   : > { %5248 = dma.vmem_to_hbm [thread:$0]  (%p7668_p13), %s7456_s28, 512, %s7453_s22, %s4409_s17, %s6215_s16, %s6215_s16, %s6216_s18  }
 0xc15 PF: > { %s7669_s11 = sld [smem:[#allocation33_spill]]  ;;  %s7670_s13 = sld [smem:[#allocation26_spill]] }
 0xc16   : > { %s7671_s8 = sld [smem:[#allocation37_spill]] }
 0xc1b   : > { %p5285_p6 = scmp.ge.s32.totalorder %s7669_s11, 2  ;;  %s4437_s3 = sand.u32 1, %s7670_s13  }
 0xc1c   : > { %p7672_p11 = scmp.ne.s32.totalorder %s7671_s8, 0  ;;  %s4438_s19 = scalar_lea.sflag [#allocation5], %s4437_s3 }
 0xc1e   : > { %p5277_p8 = pnand %p5285_p6, %p7672_p11 }
 0xc20   : > { %6147 = dma.done.wait (!%p5277_p8), %s4438_s19, 512  }
 0xc21   : > { %6149 = vsyncadd (!%p5277_p8), %s4438_s19, 4294966784  ;;  %s39_s18 = sadd.s32 1, %s7669_s11   ;;  %s7673_s25 = sld [smem:[#allocation24_spill]] }
 0xc22   : > { %p36_p4 = scmp.ge.s32.totalorder %s39_s18, 6   ;;  %s7674_s26 = sld [smem:[#allocation25_spill]] }
 0xc23   : > { %s7675_s27 = sld [smem:[#allocation42_spill]]  ;;  %s7676_s28 = sld [smem:[#allocation27_spill]] }
 0xc24   : > { %s7677_s29 = sld [smem:[#allocation28_spill]]  ;;  %s7678_s30 = sld [smem:[#allocation43_spill]] }
 0xc25   : > { %s7679_s14 = sld [smem:[#allocation31_spill]]  ;;  %s7680_s15 = sld [smem:[#allocation32_spill]] }
 0xc26   : > { %s7681_s16 = sld [smem:[#allocation39_spill]]  ;;  %s7682_s17 = sld [smem:[#allocation41_spill]] }
 0xc27   :  { %38 = sbr.rel (!%p36_p4) target bundleno = 31 (0x1f), region = 209 }
 0xc2e   :  { %4443 = vsyncpa [#allocation4], 1 }
 0xc2f   :  { %4445 = vsyncpa [#allocation4 + $0x1], 1 }
 0xc30   :  { %4446 = vsyncpa [#allocation7], 1 }
 0xc31   :  { %4447 = vsyncpa [#allocation10], 1 }
 0xc32   :  { %4449 = vsyncpa [#allocation10 + $0x1], 1 }
 0xc33   :  { %4450 = vsyncpa [#allocation13], 1 }
 0xc34   :  { %4452 = vsyncpa [#allocation13 + $0x1], 1 }
 0xc35   :  { %4453 = vsyncpa [#allocation16], 1 }
 0xc36   :  { %4455 = vsyncpa [#allocation16 + $0x1], 1 }
 0xc37   :  { %4456 = vsyncpa [#allocation5], 1 }
 0xc38   :  { %4458 = vsyncpa [#allocation5 + $0x1], 1 }

</bundles_post_ra>
